<compile_context>
chip_gen: v7x
topology: tpu7x:2x2x1
jax: 0.10.0
libtpu: 0.0.40
codegen_flags: <defaults>
</compile_context>

<pallas_src>
import functools

import numpy as np
import jax
import jax.numpy as jnp
from jax import lax
from jax.experimental import pallas as pl
from jax.experimental.pallas import tpu as pltpu


# ------------------------------ fused Pallas kernel ---------------------------

def _finenet_kernel(a_ref, y_ref, w1_ref, b1_ref, w2_ref, b2_ref, w3_ref, b3_ref,
                    o_ref, xp2_ref, xp3_ref, *, ph, pw, wp, kh, kw, c):
    # a_ref  : (4*ph*pw, Kp)   bf16  conv1 im2col patches for ONE image,
    #                                rows ordered (si, sj, pi, pj)
    # y_ref  : (ph*pw, 1)      f32   y image, flattened (pi, pj)
    # w1_ref : (Kp, c)         bf16  conv1 weight (Cout padded 63->64)
    # w2_ref : (kh*kw*c, c)    bf16  conv2 weight, tap-major then input channel
    # w3_ref : (kh*kw, c)      f32   conv3 weight (Cout==1 squeezed)
    # o_ref  : (ph*pw, 1)      f32   conv3 output, flattened (pi, pj)
    # xp2/xp3: zero-padded activation slabs (row pitch wp), bf16 / f32
    npool = ph * pw
    ext = ph * wp
    pad = kh // 2

    # ---- conv1 + bias + ReLU: one MXU matmul for the whole image ----------------
    h1 = jnp.dot(a_ref[...], w1_ref[...], preferred_element_type=jnp.float32)
    h1 = jnp.maximum(h1 + b1_ref[...], 0.0)                      # (4*npool, c) f32

    # ---- 2x2 maxpool: the four pool members are four contiguous row blocks ------
    pooled = jnp.maximum(jnp.maximum(h1[0:npool], h1[npool:2 * npool]),
                         jnp.maximum(h1[2 * npool:3 * npool], h1[3 * npool:4 * npool]))

    # ---- torch.cat((pooled, y), 1): overwrite the padded last channel with y ----
    lane = lax.broadcasted_iota(jnp.int32, (npool, c), 1)
    hcat = jnp.where(lane == c - 1, y_ref[...], pooled)          # (npool, c) f32

    # ---- zero-padded conv2 input slab (bf16) ------------------------------------
    xp2_ref[...] = jnp.zeros_like(xp2_ref)
    hcat16 = hcat.astype(xp2_ref.dtype)
    for r in range(ph):
        dst = (r + pad) * wp + pad
        xp2_ref[dst:dst + pw, :] = hcat16[r * pw:(r + 1) * pw, :]

    # ---- conv2 + bias + ReLU: 25 whole-image tap matmuls, f32 accumulation ------
    # Rows of acc2 are (pi, q) with q = 0..wp-1; columns q >= pw are wrap-around
    # garbage and are discarded below, which keeps every tap's LHS contiguous.
    acc2 = jnp.zeros((ext, c), jnp.float32)
    for di in range(kh):
        for dj in range(kw):
            t = di * kw + dj
            src = di * wp + dj
            acc2 = acc2 + jnp.dot(xp2_ref[src:src + ext, :],
                                  w2_ref[t * c:(t + 1) * c, :],
                                  preferred_element_type=jnp.float32)
    h2 = jnp.maximum(acc2 + b2_ref[...], 0.0)                    # (ext, c) f32

    # ---- zero-padded conv3 input slab (f32); keep only the valid pw columns -----
    xp3_ref[...] = jnp.zeros_like(xp3_ref)
    for r in range(ph):
        dst = (r + pad) * wp + pad
        xp3_ref[dst:dst + pw, :] = h2[r * wp:r * wp + pw, :]

    # ---- conv3 (Cout=1): 25 whole-image VPU mult-adds + ONE lane reduce ---------
    w3 = w3_ref[...]                                             # (kh*kw, c) f32
    acc3 = jnp.zeros((ext, c), jnp.float32)
    for di in range(kh):
        for dj in range(kw):
            t = di * kw + dj
            src = di * wp + dj
            acc3 = acc3 + xp3_ref[src:src + ext, :] * w3[t:t + 1, :]
    res = jnp.sum(acc3, axis=1, keepdims=True) + b3_ref[...]     # (ext, 1) f32

    # ---- drop the garbage columns and store the (ph*pw, 1) result ---------------
    for r in range(ph):
        o_ref[r * pw:(r + 1) * pw, :] = res[r * wp:r * wp + pw, :]


# ------------------------------- JAX glue -------------------------------------

def _conv1_patches(x_nhwc, kh, kw, stride):
    """im2col for conv1.  Feature order is (dj, di, ch); patch rows are ordered
    (si, sj, pi, pj) so a 2x2 maxpool becomes a max over 4 contiguous row blocks."""
    n, h, w, cin = x_nhwc.shape
    oh = (h - kh) // stride + 1
    ow = (w - kw) // stride + 1
    rows = jnp.concatenate(
        [x_nhwc[:, di:di + stride * (oh - 1) + 1:stride, :, :] for di in range(kh)],
        axis=-1)                                     # (n, oh, w, kh*cin), feat=(di,ch)
    cols = jnp.concatenate(
        [rows[:, :, dj:dj + stride * (ow - 1) + 1:stride, :] for dj in range(kw)],
        axis=-1)                                     # (n, oh, ow, K),    feat=(dj,di,ch)
    k = kh * kw * cin
    p = cols.reshape(n, oh // 2, 2, ow // 2, 2, k)   # (n, pi, si, pj, sj, K)
    p = jnp.transpose(p, (0, 2, 4, 1, 3, 5))         # (n, si, sj, pi, pj, K)
    return p.reshape(n * oh * ow, k), oh, ow


def finenet_forward(x_nchw, y_nchw, params):
    w1, b1 = params["w1"], params["b1"]
    w2, b2 = params["w2"], params["b2"]
    w3, b3 = params["w3"], params["b3"]
    kh1, kw1, cin1, c1 = w1.shape                    # (9, 9, 3, 63)
    kh2, kw2, cin2, cmid = w2.shape                  # (5, 5, 64, 64)
    assert cin2 == cmid and cin2 == c1 + 1
    assert w3.shape == (kh2, kw2, cmid, 1)
    n = x_nchw.shape[0]
    c = cin2

    x = jnp.transpose(x_nchw, (0, 2, 3, 1)).astype(jnp.bfloat16)     # NCHW -> NHWC
    patches, oh, ow = _conv1_patches(x, kh1, kw1, stride=2)
    assert oh % 2 == 0 and ow % 2 == 0
    ph, pw = oh // 2, ow // 2
    npool = ph * pw

    k1 = kh1 * kw1 * cin1
    kp = ((k1 + 127) // 128) * 128                                   # 243 -> 256
    patches = jnp.pad(patches, ((0, 0), (0, kp - k1)))

    # conv1 weight: feature order (dj, di, ch); pad K -> kp and Cout 63 -> 64.
    w1m = jnp.transpose(w1, (1, 0, 2, 3)).reshape(k1, c1)
    w1m = jnp.pad(w1m, ((0, kp - k1), (0, c - c1))).astype(jnp.bfloat16)
    b1m = jnp.pad(b1, (0, c - c1)).astype(jnp.float32).reshape(1, c)
    w2m = w2.reshape(kh2 * kw2 * c, cmid).astype(jnp.bfloat16)
    b2m = b2.astype(jnp.float32).reshape(1, cmid)
    w3m = w3.reshape(kh2 * kw2, cmid).astype(jnp.float32)
    b3m = b3.astype(jnp.float32).reshape(1, 1)
    y_col = y_nchw.astype(jnp.float32).reshape(n * npool, 1)

    pad = kh2 // 2
    wp = pw + 2 * pad
    ext = ph * wp
    need = (kh2 - 1) * wp + (kw2 - 1) + ext          # deepest slab row read by a tap
    scr_rows = ((max(need, (ph + 2 * pad) * wp) + 15) // 16) * 16

    kernel = functools.partial(_finenet_kernel, ph=ph, pw=pw, wp=wp,
                               kh=kh2, kw=kw2, c=c)

    out = pl.pallas_call(
        kernel,
        out_shape=jax.ShapeDtypeStruct((n * npool, 1), jnp.float32),
        grid_spec=pltpu.PrefetchScalarGridSpec(
            num_scalar_prefetch=0,
            grid=(n,),                                             # one image per step
            in_specs=[
                pl.BlockSpec((4 * npool, kp), lambda i: (i, 0)),   # conv1 patches
                pl.BlockSpec((npool, 1), lambda i: (i, 0)),        # y column
                pl.BlockSpec((kp, c), lambda i: (0, 0)),           # w1 (resident)
                pl.BlockSpec((1, c), lambda i: (0, 0)),            # b1
                pl.BlockSpec((kh2 * kw2 * c, cmid), lambda i: (0, 0)),   # w2
                pl.BlockSpec((1, cmid), lambda i: (0, 0)),         # b2
                pl.BlockSpec((kh2 * kw2, cmid), lambda i: (0, 0)),  # w3
                pl.BlockSpec((1, 1), lambda i: (0, 0)),            # b3
            ],
            out_specs=pl.BlockSpec((npool, 1), lambda i: (i, 0)),
            scratch_shapes=[
                pltpu.VMEM((scr_rows, c), jnp.bfloat16),   # padded conv2 input slab
                pltpu.VMEM((scr_rows, cmid), jnp.float32),  # padded conv3 input slab
            ],
        ),
        compiler_params=pltpu.CompilerParams(dimension_semantics=("parallel",)),
    )(patches, y_col, w1m, b1m, w2m, b2m, w3m, b3m)

    # Rows are already in (img, pi, pj) order -> NCHW is a free reshape.
    return out.reshape(n, 1, ph, pw)


# ------------------------- deterministic parameters ---------------------------

def init_params(key):
    k1, k2, k3 = jax.random.split(key, 3)

    def kaiming(k, kh, kw, cin, cout):
        fan_in = cin * kh * kw
        std = np.sqrt(2.0 / fan_in)
        return jax.random.normal(k, (kh, kw, cin, cout), jnp.float32) * std

    return {
        "w1": kaiming(k1, 9, 9, 3, 63), "b1": jnp.zeros((63,), jnp.float32),
        "w2": kaiming(k2, 5, 5, 64, 64), "b2": jnp.zeros((64,), jnp.float32),
        "w3": kaiming(k3, 5, 5, 64, 1), "b3": jnp.zeros((1,), jnp.float32),
    }


# ------------------------- plain-JAX reference (check) ------------------------

def reference_forward(x_nchw, y_nchw, params):
    dn = ("NHWC", "HWIO", "NHWC")
    x = jnp.transpose(x_nchw, (0, 2, 3, 1))
    y = jnp.transpose(y_nchw, (0, 2, 3, 1))
    h = lax.conv_general_dilated(x, params["w1"], (2, 2), "VALID",
                                 dimension_numbers=dn) + params["b1"]
    h = jnp.maximum(h, 0.0)
    h = lax.reduce_window(h, -jnp.inf, lax.max, (1, 2, 2, 1), (1, 2, 2, 1), "VALID")
    h = jnp.concatenate([h, y], axis=-1)
    h = lax.conv_general_dilated(h, params["w2"], (1, 1), [(2, 2), (2, 2)],
                                 dimension_numbers=dn) + params["b2"]
    h = jnp.maximum(h, 0.0)
    h = lax.conv_general_dilated(h, params["w3"], (1, 1), [(2, 2), (2, 2)],
                                 dimension_numbers=dn) + params["b3"]
    return jnp.transpose(h, (0, 3, 1, 2))


# ----------------------------------- main --------------------------------------

if __name__ == "__main__":
    key = jax.random.PRNGKey(0)
    key_p, key_x, key_y = jax.random.split(key, 3)
    params = init_params(key_p)

    # x: (N=2, C=3, H=39, W=39) -> conv1 gives 16x16 -> pool gives 8x8
    # y: (N=2, C=1, 8, 8) so the concat yields 64 channels for conv2.
    x = jax.random.normal(key_x, (2, 3, 39, 39), jnp.float32)
    y = jax.random.normal(key_y, (2, 1, 8, 8), jnp.float32)

    out = jax.jit(finenet_forward)(x, y, params)
    out = jax.block_until_ready(out)
    assert out.shape == (2, 1, 8, 8), out.shape

    ref = reference_forward(x, y, params)
    np.testing.assert_allclose(np.asarray(out), np.asarray(ref), rtol=5e-2, atol=5e-2)

    print("KERNEL_OK")
</pallas_src>

<mosaic_0001>
module attributes {stable_mosaic.version = 11 : i64} {
  func.func @_finenet_kernel(%arg0: i32, %arg1: memref<256x256xbf16, #tpu.memory_space<vmem>>, %arg2: memref<64x1xf32, #tpu.memory_space<vmem>>, %arg3: memref<256x64xbf16, #tpu.memory_space<vmem>>, %arg4: memref<1x64xf32, #tpu.memory_space<vmem>>, %arg5: memref<1600x64xbf16, #tpu.memory_space<vmem>>, %arg6: memref<1x64xf32, #tpu.memory_space<vmem>>, %arg7: memref<25x64xf32, #tpu.memory_space<vmem>>, %arg8: memref<1x1xf32, #tpu.memory_space<vmem>>, %arg9: memref<64x1xf32, #tpu.memory_space<vmem>>, %arg10: memref<160x64xbf16, #tpu.memory_space<vmem>>, %arg11: memref<160x64xf32, #tpu.memory_space<vmem>>) attributes {dimension_semantics = [#tpu.dimension_semantics<parallel>], iteration_bounds = array<i64: 2>, scalar_prefetch = 0 : i64, scratch_operands = 2 : i64, tpu.core_type = #tpu.core_type<tc>, window_params = [{transform_indices = @transform_0, window_bounds = array<i64: 256, 256>}, {transform_indices = @transform_1, window_bounds = array<i64: 64, 1>}, {pipeline_mode = #tpu.pipeline_mode<synchronous>, transform_indices = @transform_2, window_bounds = array<i64: 256, 64>}, {pipeline_mode = #tpu.pipeline_mode<synchronous>, transform_indices = @transform_3, window_bounds = array<i64: 1, 64>}, {pipeline_mode = #tpu.pipeline_mode<synchronous>, transform_indices = @transform_4, window_bounds = array<i64: 1600, 64>}, {pipeline_mode = #tpu.pipeline_mode<synchronous>, transform_indices = @transform_5, window_bounds = array<i64: 1, 64>}, {pipeline_mode = #tpu.pipeline_mode<synchronous>, transform_indices = @transform_6, window_bounds = array<i64: 25, 64>}, {pipeline_mode = #tpu.pipeline_mode<synchronous>, transform_indices = @transform_7, window_bounds = array<i64: 1, 1>}, {transform_indices = @transform_8, window_bounds = array<i64: 64, 1>}]} {
    %c0 = arith.constant 0 : index
    %c0_0 = arith.constant 0 : index
    %0 = vector.load %arg1[%c0, %c0_0] : memref<256x256xbf16, #tpu.memory_space<vmem>>, vector<256x256xbf16>
    %c0_1 = arith.constant 0 : index
    %c0_2 = arith.constant 0 : index
    %1 = vector.load %arg3[%c0_1, %c0_2] : memref<256x64xbf16, #tpu.memory_space<vmem>>, vector<256x64xbf16>
    %cst = arith.constant dense<0.000000e+00> : vector<256x64xf32>
    %2 = tpu.matmul %0, %1, %cst {dimension_numbers = #tpu.dot_dimension_numbers<[1], [0], [0], [1], [0, 0, 1, 1], [], []>} : vector<256x256xbf16>, vector<256x64xbf16>, vector<256x64xf32> -> vector<256x64xf32>
    %c0_3 = arith.constant 0 : index
    %c0_4 = arith.constant 0 : index
    %3 = vector.load %arg4[%c0_3, %c0_4] : memref<1x64xf32, #tpu.memory_space<vmem>>, vector<1x64xf32>
    %4 = vector.broadcast %3 : vector<1x64xf32> to vector<256x64xf32>
    %5 = arith.addf %2, %4 : vector<256x64xf32>
    %cst_5 = arith.constant 0.000000e+00 : f32
    %6 = vector.broadcast %cst_5 : f32 to vector<256x64xf32>
    %7 = arith.maximumf %5, %6 : vector<256x64xf32>
    %8 = vector.extract_strided_slice %7 {offsets = [0, 0], sizes = [64, 64], strides = [1, 1]} : vector<256x64xf32> to vector<64x64xf32>
    %9 = vector.extract_strided_slice %7 {offsets = [64, 0], sizes = [64, 64], strides = [1, 1]} : vector<256x64xf32> to vector<64x64xf32>
    %10 = arith.maximumf %8, %9 : vector<64x64xf32>
    %11 = vector.extract_strided_slice %7 {offsets = [128, 0], sizes = [64, 64], strides = [1, 1]} : vector<256x64xf32> to vector<64x64xf32>
    %12 = vector.extract_strided_slice %7 {offsets = [192, 0], sizes = [64, 64], strides = [1, 1]} : vector<256x64xf32> to vector<64x64xf32>
    %13 = arith.maximumf %11, %12 : vector<64x64xf32>
    %14 = arith.maximumf %10, %13 : vector<64x64xf32>
    %15 = tpu.iota {dimensions = array<i32: 1>} : vector<64x64xi32>
    %c63_i32 = arith.constant 63 : i32
    %16 = vector.broadcast %c63_i32 : i32 to vector<64x64xi32>
    %17 = arith.cmpi eq, %15, %16 : vector<64x64xi32>
    %c0_6 = arith.constant 0 : index
    %c0_7 = arith.constant 0 : index
    %18 = vector.load %arg2[%c0_6, %c0_7] : memref<64x1xf32, #tpu.memory_space<vmem>>, vector<64x1xf32>
    %19 = vector.shape_cast %18 : vector<64x1xf32> to vector<64x1xf32>
    %20 = vector.broadcast %19 : vector<64x1xf32> to vector<64x64xf32>
    %21 = arith.select %17, %20, %14 : vector<64x64xi1>, vector<64x64xf32>
    %cst_8 = arith.constant 0.000000e+00 : bf16
    %22 = vector.broadcast %cst_8 : bf16 to vector<160x64xbf16>
    %c0_9 = arith.constant 0 : index
    %c0_10 = arith.constant 0 : index
    %23 = vector.load %arg10[%c0_9, %c0_10] : memref<160x64xbf16, #tpu.memory_space<vmem>>, vector<160x64xbf16>
    tpu.vector_store %arg10[%c0_9, %c0_10], %22 {strides = array<i32>} : memref<160x64xbf16, #tpu.memory_space<vmem>>, vector<160x64xbf16>,
    %24 = arith.truncf %21 : vector<64x64xf32> to vector<64x64xbf16>
    %25 = vector.extract_strided_slice %24 {offsets = [0, 0], sizes = [8, 64], strides = [1, 1]} : vector<64x64xbf16> to vector<8x64xbf16>
    %c26 = arith.constant 26 : index
    %c0_11 = arith.constant 0 : index
    %26 = vector.load %arg10[%c26, %c0_11] : memref<160x64xbf16, #tpu.memory_space<vmem>>, vector<8x64xbf16>
    tpu.vector_store %arg10[%c26, %c0_11], %25 {strides = array<i32>} : memref<160x64xbf16, #tpu.memory_space<vmem>>, vector<8x64xbf16>,
    %27 = vector.extract_strided_slice %24 {offsets = [8, 0], sizes = [8, 64], strides = [1, 1]} : vector<64x64xbf16> to vector<8x64xbf16>
    %c38 = arith.constant 38 : index
    %c0_12 = arith.constant 0 : index
    %28 = vector.load %arg10[%c38, %c0_12] : memref<160x64xbf16, #tpu.memory_space<vmem>>, vector<8x64xbf16>
    tpu.vector_store %arg10[%c38, %c0_12], %27 {strides = array<i32>} : memref<160x64xbf16, #tpu.memory_space<vmem>>, vector<8x64xbf16>,
    %29 = vector.extract_strided_slice %24 {offsets = [16, 0], sizes = [8, 64], strides = [1, 1]} : vector<64x64xbf16> to vector<8x64xbf16>
    %c50 = arith.constant 50 : index
    %c0_13 = arith.constant 0 : index
    %30 = vector.load %arg10[%c50, %c0_13] : memref<160x64xbf16, #tpu.memory_space<vmem>>, vector<8x64xbf16>
    tpu.vector_store %arg10[%c50, %c0_13], %29 {strides = array<i32>} : memref<160x64xbf16, #tpu.memory_space<vmem>>, vector<8x64xbf16>,
    %31 = vector.extract_strided_slice %24 {offsets = [24, 0], sizes = [8, 64], strides = [1, 1]} : vector<64x64xbf16> to vector<8x64xbf16>
    %c62 = arith.constant 62 : index
    %c0_14 = arith.constant 0 : index
    %32 = vector.load %arg10[%c62, %c0_14] : memref<160x64xbf16, #tpu.memory_space<vmem>>, vector<8x64xbf16>
    tpu.vector_store %arg10[%c62, %c0_14], %31 {strides = array<i32>} : memref<160x64xbf16, #tpu.memory_space<vmem>>, vector<8x64xbf16>,
    %33 = vector.extract_strided_slice %24 {offsets = [32, 0], sizes = [8, 64], strides = [1, 1]} : vector<64x64xbf16> to vector<8x64xbf16>
    %c74 = arith.constant 74 : index
    %c0_15 = arith.constant 0 : index
    %34 = vector.load %arg10[%c74, %c0_15] : memref<160x64xbf16, #tpu.memory_space<vmem>>, vector<8x64xbf16>
    tpu.vector_store %arg10[%c74, %c0_15], %33 {strides = array<i32>} : memref<160x64xbf16, #tpu.memory_space<vmem>>, vector<8x64xbf16>,
    %35 = vector.extract_strided_slice %24 {offsets = [40, 0], sizes = [8, 64], strides = [1, 1]} : vector<64x64xbf16> to vector<8x64xbf16>
    %c86 = arith.constant 86 : index
    %c0_16 = arith.constant 0 : index
    %36 = vector.load %arg10[%c86, %c0_16] : memref<160x64xbf16, #tpu.memory_space<vmem>>, vector<8x64xbf16>
    tpu.vector_store %arg10[%c86, %c0_16], %35 {strides = array<i32>} : memref<160x64xbf16, #tpu.memory_space<vmem>>, vector<8x64xbf16>,
    %37 = vector.extract_strided_slice %24 {offsets = [48, 0], sizes = [8, 64], strides = [1, 1]} : vector<64x64xbf16> to vector<8x64xbf16>
    %c98 = arith.constant 98 : index
    %c0_17 = arith.constant 0 : index
    %38 = vector.load %arg10[%c98, %c0_17] : memref<160x64xbf16, #tpu.memory_space<vmem>>, vector<8x64xbf16>
    tpu.vector_store %arg10[%c98, %c0_17], %37 {strides = array<i32>} : memref<160x64xbf16, #tpu.memory_space<vmem>>, vector<8x64xbf16>,
    %39 = vector.extract_strided_slice %24 {offsets = [56, 0], sizes = [8, 64], strides = [1, 1]} : vector<64x64xbf16> to vector<8x64xbf16>
    %c110 = arith.constant 110 : index
    %c0_18 = arith.constant 0 : index
    %40 = vector.load %arg10[%c110, %c0_18] : memref<160x64xbf16, #tpu.memory_space<vmem>>, vector<8x64xbf16>
    tpu.vector_store %arg10[%c110, %c0_18], %39 {strides = array<i32>} : memref<160x64xbf16, #tpu.memory_space<vmem>>, vector<8x64xbf16>,
    %cst_19 = arith.constant 0.000000e+00 : f32
    %41 = vector.broadcast %cst_19 : f32 to vector<96x64xf32>
    %c0_20 = arith.constant 0 : index
    %c0_21 = arith.constant 0 : index
    %42 = vector.load %arg10[%c0_20, %c0_21] : memref<160x64xbf16, #tpu.memory_space<vmem>>, vector<96x64xbf16>
    %c0_22 = arith.constant 0 : index
    %c0_23 = arith.constant 0 : index
    %43 = vector.load %arg5[%c0_22, %c0_23] : memref<1600x64xbf16, #tpu.memory_space<vmem>>, vector<64x64xbf16>
    %cst_24 = arith.constant dense<0.000000e+00> : vector<96x64xf32>
    %44 = tpu.matmul %42, %43, %cst_24 {dimension_numbers = #tpu.dot_dimension_numbers<[1], [0], [0], [1], [0, 0, 1, 1], [], []>} : vector<96x64xbf16>, vector<64x64xbf16>, vector<96x64xf32> -> vector<96x64xf32>
    %45 = arith.addf %41, %44 : vector<96x64xf32>
    %c1 = arith.constant 1 : index
    %c0_25 = arith.constant 0 : index
    %46 = vector.load %arg10[%c1, %c0_25] : memref<160x64xbf16, #tpu.memory_space<vmem>>, vector<96x64xbf16>
    %c64 = arith.constant 64 : index
    %c0_26 = arith.constant 0 : index
    %47 = vector.load %arg5[%c64, %c0_26] : memref<1600x64xbf16, #tpu.memory_space<vmem>>, vector<64x64xbf16>
    %cst_27 = arith.constant dense<0.000000e+00> : vector<96x64xf32>
    %48 = tpu.matmul %46, %47, %cst_27 {dimension_numbers = #tpu.dot_dimension_numbers<[1], [0], [0], [1], [0, 0, 1, 1], [], []>} : vector<96x64xbf16>, vector<64x64xbf16>, vector<96x64xf32> -> vector<96x64xf32>
    %49 = arith.addf %45, %48 : vector<96x64xf32>
    %c2 = arith.constant 2 : index
    %c0_28 = arith.constant 0 : index
    %50 = vector.load %arg10[%c2, %c0_28] : memref<160x64xbf16, #tpu.memory_space<vmem>>, vector<96x64xbf16>
    %c128 = arith.constant 128 : index
    %c0_29 = arith.constant 0 : index
    %51 = vector.load %arg5[%c128, %c0_29] : memref<1600x64xbf16, #tpu.memory_space<vmem>>, vector<64x64xbf16>
    %cst_30 = arith.constant dense<0.000000e+00> : vector<96x64xf32>
    %52 = tpu.matmul %50, %51, %cst_30 {dimension_numbers = #tpu.dot_dimension_numbers<[1], [0], [0], [1], [0, 0, 1, 1], [], []>} : vector<96x64xbf16>, vector<64x64xbf16>, vector<96x64xf32> -> vector<96x64xf32>
    %53 = arith.addf %49, %52 : vector<96x64xf32>
    %c3 = arith.constant 3 : index
    %c0_31 = arith.constant 0 : index
    %54 = vector.load %arg10[%c3, %c0_31] : memref<160x64xbf16, #tpu.memory_space<vmem>>, vector<96x64xbf16>
    %c192 = arith.constant 192 : index
    %c0_32 = arith.constant 0 : index
    %55 = vector.load %arg5[%c192, %c0_32] : memref<1600x64xbf16, #tpu.memory_space<vmem>>, vector<64x64xbf16>
    %cst_33 = arith.constant dense<0.000000e+00> : vector<96x64xf32>
    %56 = tpu.matmul %54, %55, %cst_33 {dimension_numbers = #tpu.dot_dimension_numbers<[1], [0], [0], [1], [0, 0, 1, 1], [], []>} : vector<96x64xbf16>, vector<64x64xbf16>, vector<96x64xf32> -> vector<96x64xf32>
    %57 = arith.addf %53, %56 : vector<96x64xf32>
    %c4 = arith.constant 4 : index
    %c0_34 = arith.constant 0 : index
    %58 = vector.load %arg10[%c4, %c0_34] : memref<160x64xbf16, #tpu.memory_space<vmem>>, vector<96x64xbf16>
    %c256 = arith.constant 256 : index
    %c0_35 = arith.constant 0 : index
    %59 = vector.load %arg5[%c256, %c0_35] : memref<1600x64xbf16, #tpu.memory_space<vmem>>, vector<64x64xbf16>
    %cst_36 = arith.constant dense<0.000000e+00> : vector<96x64xf32>
    %60 = tpu.matmul %58, %59, %cst_36 {dimension_numbers = #tpu.dot_dimension_numbers<[1], [0], [0], [1], [0, 0, 1, 1], [], []>} : vector<96x64xbf16>, vector<64x64xbf16>, vector<96x64xf32> -> vector<96x64xf32>
    %61 = arith.addf %57, %60 : vector<96x64xf32>
    %c12 = arith.constant 12 : index
    %c0_37 = arith.constant 0 : index
    %62 = vector.load %arg10[%c12, %c0_37] : memref<160x64xbf16, #tpu.memory_space<vmem>>, vector<96x64xbf16>
    %c320 = arith.constant 320 : index
    %c0_38 = arith.constant 0 : index
    %63 = vector.load %arg5[%c320, %c0_38] : memref<1600x64xbf16, #tpu.memory_space<vmem>>, vector<64x64xbf16>
    %cst_39 = arith.constant dense<0.000000e+00> : vector<96x64xf32>
    %64 = tpu.matmul %62, %63, %cst_39 {dimension_numbers = #tpu.dot_dimension_numbers<[1], [0], [0], [1], [0, 0, 1, 1], [], []>} : vector<96x64xbf16>, vector<64x64xbf16>, vector<96x64xf32> -> vector<96x64xf32>
    %65 = arith.addf %61, %64 : vector<96x64xf32>
    %c13 = arith.constant 13 : index
    %c0_40 = arith.constant 0 : index
    %66 = vector.load %arg10[%c13, %c0_40] : memref<160x64xbf16, #tpu.memory_space<vmem>>, vector<96x64xbf16>
    %c384 = arith.constant 384 : index
    %c0_41 = arith.constant 0 : index
    %67 = vector.load %arg5[%c384, %c0_41] : memref<1600x64xbf16, #tpu.memory_space<vmem>>, vector<64x64xbf16>
    %cst_42 = arith.constant dense<0.000000e+00> : vector<96x64xf32>
    %68 = tpu.matmul %66, %67, %cst_42 {dimension_numbers = #tpu.dot_dimension_numbers<[1], [0], [0], [1], [0, 0, 1, 1], [], []>} : vector<96x64xbf16>, vector<64x64xbf16>, vector<96x64xf32> -> vector<96x64xf32>
    %69 = arith.addf %65, %68 : vector<96x64xf32>
    %c14 = arith.constant 14 : index
    %c0_43 = arith.constant 0 : index
    %70 = vector.load %arg10[%c14, %c0_43] : memref<160x64xbf16, #tpu.memory_space<vmem>>, vector<96x64xbf16>
    %c448 = arith.constant 448 : index
    %c0_44 = arith.constant 0 : index
    %71 = vector.load %arg5[%c448, %c0_44] : memref<1600x64xbf16, #tpu.memory_space<vmem>>, vector<64x64xbf16>
    %cst_45 = arith.constant dense<0.000000e+00> : vector<96x64xf32>
    %72 = tpu.matmul %70, %71, %cst_45 {dimension_numbers = #tpu.dot_dimension_numbers<[1], [0], [0], [1], [0, 0, 1, 1], [], []>} : vector<96x64xbf16>, vector<64x64xbf16>, vector<96x64xf32> -> vector<96x64xf32>
    %73 = arith.addf %69, %72 : vector<96x64xf32>
    %c15 = arith.constant 15 : index
    %c0_46 = arith.constant 0 : index
    %74 = vector.load %arg10[%c15, %c0_46] : memref<160x64xbf16, #tpu.memory_space<vmem>>, vector<96x64xbf16>
    %c512 = arith.constant 512 : index
    %c0_47 = arith.constant 0 : index
    %75 = vector.load %arg5[%c512, %c0_47] : memref<1600x64xbf16, #tpu.memory_space<vmem>>, vector<64x64xbf16>
    %cst_48 = arith.constant dense<0.000000e+00> : vector<96x64xf32>
    %76 = tpu.matmul %74, %75, %cst_48 {dimension_numbers = #tpu.dot_dimension_numbers<[1], [0], [0], [1], [0, 0, 1, 1], [], []>} : vector<96x64xbf16>, vector<64x64xbf16>, vector<96x64xf32> -> vector<96x64xf32>
    %77 = arith.addf %73, %76 : vector<96x64xf32>
    %c16 = arith.constant 16 : index
    %c0_49 = arith.constant 0 : index
    %78 = vector.load %arg10[%c16, %c0_49] : memref<160x64xbf16, #tpu.memory_space<vmem>>, vector<96x64xbf16>
    %c576 = arith.constant 576 : index
    %c0_50 = arith.constant 0 : index
    %79 = vector.load %arg5[%c576, %c0_50] : memref<1600x64xbf16, #tpu.memory_space<vmem>>, vector<64x64xbf16>
    %cst_51 = arith.constant dense<0.000000e+00> : vector<96x64xf32>
    %80 = tpu.matmul %78, %79, %cst_51 {dimension_numbers = #tpu.dot_dimension_numbers<[1], [0], [0], [1], [0, 0, 1, 1], [], []>} : vector<96x64xbf16>, vector<64x64xbf16>, vector<96x64xf32> -> vector<96x64xf32>
    %81 = arith.addf %77, %80 : vector<96x64xf32>
    %c24 = arith.constant 24 : index
    %c0_52 = arith.constant 0 : index
    %82 = vector.load %arg10[%c24, %c0_52] : memref<160x64xbf16, #tpu.memory_space<vmem>>, vector<96x64xbf16>
    %c640 = arith.constant 640 : index
    %c0_53 = arith.constant 0 : index
    %83 = vector.load %arg5[%c640, %c0_53] : memref<1600x64xbf16, #tpu.memory_space<vmem>>, vector<64x64xbf16>
    %cst_54 = arith.constant dense<0.000000e+00> : vector<96x64xf32>
    %84 = tpu.matmul %82, %83, %cst_54 {dimension_numbers = #tpu.dot_dimension_numbers<[1], [0], [0], [1], [0, 0, 1, 1], [], []>} : vector<96x64xbf16>, vector<64x64xbf16>, vector<96x64xf32> -> vector<96x64xf32>
    %85 = arith.addf %81, %84 : vector<96x64xf32>
    %c25 = arith.constant 25 : index
    %c0_55 = arith.constant 0 : index
    %86 = vector.load %arg10[%c25, %c0_55] : memref<160x64xbf16, #tpu.memory_space<vmem>>, vector<96x64xbf16>
    %c704 = arith.constant 704 : index
    %c0_56 = arith.constant 0 : index
    %87 = vector.load %arg5[%c704, %c0_56] : memref<1600x64xbf16, #tpu.memory_space<vmem>>, vector<64x64xbf16>
    %cst_57 = arith.constant dense<0.000000e+00> : vector<96x64xf32>
    %88 = tpu.matmul %86, %87, %cst_57 {dimension_numbers = #tpu.dot_dimension_numbers<[1], [0], [0], [1], [0, 0, 1, 1], [], []>} : vector<96x64xbf16>, vector<64x64xbf16>, vector<96x64xf32> -> vector<96x64xf32>
    %89 = arith.addf %85, %88 : vector<96x64xf32>
    %c26_58 = arith.constant 26 : index
    %c0_59 = arith.constant 0 : index
    %90 = vector.load %arg10[%c26_58, %c0_59] : memref<160x64xbf16, #tpu.memory_space<vmem>>, vector<96x64xbf16>
    %c768 = arith.constant 768 : index
    %c0_60 = arith.constant 0 : index
    %91 = vector.load %arg5[%c768, %c0_60] : memref<1600x64xbf16, #tpu.memory_space<vmem>>, vector<64x64xbf16>
    %cst_61 = arith.constant dense<0.000000e+00> : vector<96x64xf32>
    %92 = tpu.matmul %90, %91, %cst_61 {dimension_numbers = #tpu.dot_dimension_numbers<[1], [0], [0], [1], [0, 0, 1, 1], [], []>} : vector<96x64xbf16>, vector<64x64xbf16>, vector<96x64xf32> -> vector<96x64xf32>
    %93 = arith.addf %89, %92 : vector<96x64xf32>
    %c27 = arith.constant 27 : index
    %c0_62 = arith.constant 0 : index
    %94 = vector.load %arg10[%c27, %c0_62] : memref<160x64xbf16, #tpu.memory_space<vmem>>, vector<96x64xbf16>
    %c832 = arith.constant 832 : index
    %c0_63 = arith.constant 0 : index
    %95 = vector.load %arg5[%c832, %c0_63] : memref<1600x64xbf16, #tpu.memory_space<vmem>>, vector<64x64xbf16>
    %cst_64 = arith.constant dense<0.000000e+00> : vector<96x64xf32>
    %96 = tpu.matmul %94, %95, %cst_64 {dimension_numbers = #tpu.dot_dimension_numbers<[1], [0], [0], [1], [0, 0, 1, 1], [], []>} : vector<96x64xbf16>, vector<64x64xbf16>, vector<96x64xf32> -> vector<96x64xf32>
    %97 = arith.addf %93, %96 : vector<96x64xf32>
    %c28 = arith.constant 28 : index
    %c0_65 = arith.constant 0 : index
    %98 = vector.load %arg10[%c28, %c0_65] : memref<160x64xbf16, #tpu.memory_space<vmem>>, vector<96x64xbf16>
    %c896 = arith.constant 896 : index
    %c0_66 = arith.constant 0 : index
    %99 = vector.load %arg5[%c896, %c0_66] : memref<1600x64xbf16, #tpu.memory_space<vmem>>, vector<64x64xbf16>
    %cst_67 = arith.constant dense<0.000000e+00> : vector<96x64xf32>
    %100 = tpu.matmul %98, %99, %cst_67 {dimension_numbers = #tpu.dot_dimension_numbers<[1], [0], [0], [1], [0, 0, 1, 1], [], []>} : vector<96x64xbf16>, vector<64x64xbf16>, vector<96x64xf32> -> vector<96x64xf32>
    %101 = arith.addf %97, %100 : vector<96x64xf32>
    %c36 = arith.constant 36 : index
    %c0_68 = arith.constant 0 : index
    %102 = vector.load %arg10[%c36, %c0_68] : memref<160x64xbf16, #tpu.memory_space<vmem>>, vector<96x64xbf16>
    %c960 = arith.constant 960 : index
    %c0_69 = arith.constant 0 : index
    %103 = vector.load %arg5[%c960, %c0_69] : memref<1600x64xbf16, #tpu.memory_space<vmem>>, vector<64x64xbf16>
    %cst_70 = arith.constant dense<0.000000e+00> : vector<96x64xf32>
    %104 = tpu.matmul %102, %103, %cst_70 {dimension_numbers = #tpu.dot_dimension_numbers<[1], [0], [0], [1], [0, 0, 1, 1], [], []>} : vector<96x64xbf16>, vector<64x64xbf16>, vector<96x64xf32> -> vector<96x64xf32>
    %105 = arith.addf %101, %104 : vector<96x64xf32>
    %c37 = arith.constant 37 : index
    %c0_71 = arith.constant 0 : index
    %106 = vector.load %arg10[%c37, %c0_71] : memref<160x64xbf16, #tpu.memory_space<vmem>>, vector<96x64xbf16>
    %c1024 = arith.constant 1024 : index
    %c0_72 = arith.constant 0 : index
    %107 = vector.load %arg5[%c1024, %c0_72] : memref<1600x64xbf16, #tpu.memory_space<vmem>>, vector<64x64xbf16>
    %cst_73 = arith.constant dense<0.000000e+00> : vector<96x64xf32>
    %108 = tpu.matmul %106, %107, %cst_73 {dimension_numbers = #tpu.dot_dimension_numbers<[1], [0], [0], [1], [0, 0, 1, 1], [], []>} : vector<96x64xbf16>, vector<64x64xbf16>, vector<96x64xf32> -> vector<96x64xf32>
    %109 = arith.addf %105, %108 : vector<96x64xf32>
    %c38_74 = arith.constant 38 : index
    %c0_75 = arith.constant 0 : index
    %110 = vector.load %arg10[%c38_74, %c0_75] : memref<160x64xbf16, #tpu.memory_space<vmem>>, vector<96x64xbf16>
    %c1088 = arith.constant 1088 : index
    %c0_76 = arith.constant 0 : index
    %111 = vector.load %arg5[%c1088, %c0_76] : memref<1600x64xbf16, #tpu.memory_space<vmem>>, vector<64x64xbf16>
    %cst_77 = arith.constant dense<0.000000e+00> : vector<96x64xf32>
    %112 = tpu.matmul %110, %111, %cst_77 {dimension_numbers = #tpu.dot_dimension_numbers<[1], [0], [0], [1], [0, 0, 1, 1], [], []>} : vector<96x64xbf16>, vector<64x64xbf16>, vector<96x64xf32> -> vector<96x64xf32>
    %113 = arith.addf %109, %112 : vector<96x64xf32>
    %c39 = arith.constant 39 : index
    %c0_78 = arith.constant 0 : index
    %114 = vector.load %arg10[%c39, %c0_78] : memref<160x64xbf16, #tpu.memory_space<vmem>>, vector<96x64xbf16>
    %c1152 = arith.constant 1152 : index
    %c0_79 = arith.constant 0 : index
    %115 = vector.load %arg5[%c1152, %c0_79] : memref<1600x64xbf16, #tpu.memory_space<vmem>>, vector<64x64xbf16>
    %cst_80 = arith.constant dense<0.000000e+00> : vector<96x64xf32>
    %116 = tpu.matmul %114, %115, %cst_80 {dimension_numbers = #tpu.dot_dimension_numbers<[1], [0], [0], [1], [0, 0, 1, 1], [], []>} : vector<96x64xbf16>, vector<64x64xbf16>, vector<96x64xf32> -> vector<96x64xf32>
    %117 = arith.addf %113, %116 : vector<96x64xf32>
    %c40 = arith.constant 40 : index
    %c0_81 = arith.constant 0 : index
    %118 = vector.load %arg10[%c40, %c0_81] : memref<160x64xbf16, #tpu.memory_space<vmem>>, vector<96x64xbf16>
    %c1216 = arith.constant 1216 : index
    %c0_82 = arith.constant 0 : index
    %119 = vector.load %arg5[%c1216, %c0_82] : memref<1600x64xbf16, #tpu.memory_space<vmem>>, vector<64x64xbf16>
    %cst_83 = arith.constant dense<0.000000e+00> : vector<96x64xf32>
    %120 = tpu.matmul %118, %119, %cst_83 {dimension_numbers = #tpu.dot_dimension_numbers<[1], [0], [0], [1], [0, 0, 1, 1], [], []>} : vector<96x64xbf16>, vector<64x64xbf16>, vector<96x64xf32> -> vector<96x64xf32>
    %121 = arith.addf %117, %120 : vector<96x64xf32>
    %c48 = arith.constant 48 : index
    %c0_84 = arith.constant 0 : index
    %122 = vector.load %arg10[%c48, %c0_84] : memref<160x64xbf16, #tpu.memory_space<vmem>>, vector<96x64xbf16>
    %c1280 = arith.constant 1280 : index
    %c0_85 = arith.constant 0 : index
    %123 = vector.load %arg5[%c1280, %c0_85] : memref<1600x64xbf16, #tpu.memory_space<vmem>>, vector<64x64xbf16>
    %cst_86 = arith.constant dense<0.000000e+00> : vector<96x64xf32>
    %124 = tpu.matmul %122, %123, %cst_86 {dimension_numbers = #tpu.dot_dimension_numbers<[1], [0], [0], [1], [0, 0, 1, 1], [], []>} : vector<96x64xbf16>, vector<64x64xbf16>, vector<96x64xf32> -> vector<96x64xf32>
    %125 = arith.addf %121, %124 : vector<96x64xf32>
    %c49 = arith.constant 49 : index
    %c0_87 = arith.constant 0 : index
    %126 = vector.load %arg10[%c49, %c0_87] : memref<160x64xbf16, #tpu.memory_space<vmem>>, vector<96x64xbf16>
    %c1344 = arith.constant 1344 : index
    %c0_88 = arith.constant 0 : index
    %127 = vector.load %arg5[%c1344, %c0_88] : memref<1600x64xbf16, #tpu.memory_space<vmem>>, vector<64x64xbf16>
    %cst_89 = arith.constant dense<0.000000e+00> : vector<96x64xf32>
    %128 = tpu.matmul %126, %127, %cst_89 {dimension_numbers = #tpu.dot_dimension_numbers<[1], [0], [0], [1], [0, 0, 1, 1], [], []>} : vector<96x64xbf16>, vector<64x64xbf16>, vector<96x64xf32> -> vector<96x64xf32>
    %129 = arith.addf %125, %128 : vector<96x64xf32>
    %c50_90 = arith.constant 50 : index
    %c0_91 = arith.constant 0 : index
    %130 = vector.load %arg10[%c50_90, %c0_91] : memref<160x64xbf16, #tpu.memory_space<vmem>>, vector<96x64xbf16>
    %c1408 = arith.constant 1408 : index
    %c0_92 = arith.constant 0 : index
    %131 = vector.load %arg5[%c1408, %c0_92] : memref<1600x64xbf16, #tpu.memory_space<vmem>>, vector<64x64xbf16>
    %cst_93 = arith.constant dense<0.000000e+00> : vector<96x64xf32>
    %132 = tpu.matmul %130, %131, %cst_93 {dimension_numbers = #tpu.dot_dimension_numbers<[1], [0], [0], [1], [0, 0, 1, 1], [], []>} : vector<96x64xbf16>, vector<64x64xbf16>, vector<96x64xf32> -> vector<96x64xf32>
    %133 = arith.addf %129, %132 : vector<96x64xf32>
    %c51 = arith.constant 51 : index
    %c0_94 = arith.constant 0 : index
    %134 = vector.load %arg10[%c51, %c0_94] : memref<160x64xbf16, #tpu.memory_space<vmem>>, vector<96x64xbf16>
    %c1472 = arith.constant 1472 : index
    %c0_95 = arith.constant 0 : index
    %135 = vector.load %arg5[%c1472, %c0_95] : memref<1600x64xbf16, #tpu.memory_space<vmem>>, vector<64x64xbf16>
    %cst_96 = arith.constant dense<0.000000e+00> : vector<96x64xf32>
    %136 = tpu.matmul %134, %135, %cst_96 {dimension_numbers = #tpu.dot_dimension_numbers<[1], [0], [0], [1], [0, 0, 1, 1], [], []>} : vector<96x64xbf16>, vector<64x64xbf16>, vector<96x64xf32> -> vector<96x64xf32>
    %137 = arith.addf %133, %136 : vector<96x64xf32>
    %c52 = arith.constant 52 : index
    %c0_97 = arith.constant 0 : index
    %138 = vector.load %arg10[%c52, %c0_97] : memref<160x64xbf16, #tpu.memory_space<vmem>>, vector<96x64xbf16>
    %c1536 = arith.constant 1536 : index
    %c0_98 = arith.constant 0 : index
    %139 = vector.load %arg5[%c1536, %c0_98] : memref<1600x64xbf16, #tpu.memory_space<vmem>>, vector<64x64xbf16>
    %cst_99 = arith.constant dense<0.000000e+00> : vector<96x64xf32>
    %140 = tpu.matmul %138, %139, %cst_99 {dimension_numbers = #tpu.dot_dimension_numbers<[1], [0], [0], [1], [0, 0, 1, 1], [], []>} : vector<96x64xbf16>, vector<64x64xbf16>, vector<96x64xf32> -> vector<96x64xf32>
    %141 = arith.addf %137, %140 : vector<96x64xf32>
    %c0_100 = arith.constant 0 : index
    %c0_101 = arith.constant 0 : index
    %142 = vector.load %arg6[%c0_100, %c0_101] : memref<1x64xf32, #tpu.memory_space<vmem>>, vector<1x64xf32>
    %143 = vector.broadcast %142 : vector<1x64xf32> to vector<96x64xf32>
    %144 = arith.addf %141, %143 : vector<96x64xf32>
    %cst_102 = arith.constant 0.000000e+00 : f32
    %145 = vector.broadcast %cst_102 : f32 to vector<96x64xf32>
    %146 = arith.maximumf %144, %145 : vector<96x64xf32>
    %cst_103 = arith.constant 0.000000e+00 : f32
    %147 = vector.broadcast %cst_103 : f32 to vector<160x64xf32>
    %c0_104 = arith.constant 0 : index
    %c0_105 = arith.constant 0 : index
    %148 = vector.load %arg11[%c0_104, %c0_105] : memref<160x64xf32, #tpu.memory_space<vmem>>, vector<160x64xf32>
    tpu.vector_store %arg11[%c0_104, %c0_105], %147 {strides = array<i32>} : memref<160x64xf32, #tpu.memory_space<vmem>>, vector<160x64xf32>,
    %149 = vector.extract_strided_slice %146 {offsets = [0, 0], sizes = [8, 64], strides = [1, 1]} : vector<96x64xf32> to vector<8x64xf32>
    %c26_106 = arith.constant 26 : index
    %c0_107 = arith.constant 0 : index
    %150 = vector.load %arg11[%c26_106, %c0_107] : memref<160x64xf32, #tpu.memory_space<vmem>>, vector<8x64xf32>
    tpu.vector_store %arg11[%c26_106, %c0_107], %149 {strides = array<i32>} : memref<160x64xf32, #tpu.memory_space<vmem>>, vector<8x64xf32>,
    %151 = vector.extract_strided_slice %146 {offsets = [12, 0], sizes = [8, 64], strides = [1, 1]} : vector<96x64xf32> to vector<8x64xf32>
    %c38_108 = arith.constant 38 : index
    %c0_109 = arith.constant 0 : index
    %152 = vector.load %arg11[%c38_108, %c0_109] : memref<160x64xf32, #tpu.memory_space<vmem>>, vector<8x64xf32>
    tpu.vector_store %arg11[%c38_108, %c0_109], %151 {strides = array<i32>} : memref<160x64xf32, #tpu.memory_space<vmem>>, vector<8x64xf32>,
    %153 = vector.extract_strided_slice %146 {offsets = [24, 0], sizes = [8, 64], strides = [1, 1]} : vector<96x64xf32> to vector<8x64xf32>
    %c50_110 = arith.constant 50 : index
    %c0_111 = arith.constant 0 : index
    %154 = vector.load %arg11[%c50_110, %c0_111] : memref<160x64xf32, #tpu.memory_space<vmem>>, vector<8x64xf32>
    tpu.vector_store %arg11[%c50_110, %c0_111], %153 {strides = array<i32>} : memref<160x64xf32, #tpu.memory_space<vmem>>, vector<8x64xf32>,
    %155 = vector.extract_strided_slice %146 {offsets = [36, 0], sizes = [8, 64], strides = [1, 1]} : vector<96x64xf32> to vector<8x64xf32>
    %c62_112 = arith.constant 62 : index
    %c0_113 = arith.constant 0 : index
    %156 = vector.load %arg11[%c62_112, %c0_113] : memref<160x64xf32, #tpu.memory_space<vmem>>, vector<8x64xf32>
    tpu.vector_store %arg11[%c62_112, %c0_113], %155 {strides = array<i32>} : memref<160x64xf32, #tpu.memory_space<vmem>>, vector<8x64xf32>,
    %157 = vector.extract_strided_slice %146 {offsets = [48, 0], sizes = [8, 64], strides = [1, 1]} : vector<96x64xf32> to vector<8x64xf32>
    %c74_114 = arith.constant 74 : index
    %c0_115 = arith.constant 0 : index
    %158 = vector.load %arg11[%c74_114, %c0_115] : memref<160x64xf32, #tpu.memory_space<vmem>>, vector<8x64xf32>
    tpu.vector_store %arg11[%c74_114, %c0_115], %157 {strides = array<i32>} : memref<160x64xf32, #tpu.memory_space<vmem>>, vector<8x64xf32>,
    %159 = vector.extract_strided_slice %146 {offsets = [60, 0], sizes = [8, 64], strides = [1, 1]} : vector<96x64xf32> to vector<8x64xf32>
    %c86_116 = arith.constant 86 : index
    %c0_117 = arith.constant 0 : index
    %160 = vector.load %arg11[%c86_116, %c0_117] : memref<160x64xf32, #tpu.memory_space<vmem>>, vector<8x64xf32>
    tpu.vector_store %arg11[%c86_116, %c0_117], %159 {strides = array<i32>} : memref<160x64xf32, #tpu.memory_space<vmem>>, vector<8x64xf32>,
    %161 = vector.extract_strided_slice %146 {offsets = [72, 0], sizes = [8, 64], strides = [1, 1]} : vector<96x64xf32> to vector<8x64xf32>
    %c98_118 = arith.constant 98 : index
    %c0_119 = arith.constant 0 : index
    %162 = vector.load %arg11[%c98_118, %c0_119] : memref<160x64xf32, #tpu.memory_space<vmem>>, vector<8x64xf32>
    tpu.vector_store %arg11[%c98_118, %c0_119], %161 {strides = array<i32>} : memref<160x64xf32, #tpu.memory_space<vmem>>, vector<8x64xf32>,
    %163 = vector.extract_strided_slice %146 {offsets = [84, 0], sizes = [8, 64], strides = [1, 1]} : vector<96x64xf32> to vector<8x64xf32>
    %c110_120 = arith.constant 110 : index
    %c0_121 = arith.constant 0 : index
    %164 = vector.load %arg11[%c110_120, %c0_121] : memref<160x64xf32, #tpu.memory_space<vmem>>, vector<8x64xf32>
    tpu.vector_store %arg11[%c110_120, %c0_121], %163 {strides = array<i32>} : memref<160x64xf32, #tpu.memory_space<vmem>>, vector<8x64xf32>,
    %c0_122 = arith.constant 0 : index
    %c0_123 = arith.constant 0 : index
    %165 = vector.load %arg7[%c0_122, %c0_123] : memref<25x64xf32, #tpu.memory_space<vmem>>, vector<25x64xf32>
    %cst_124 = arith.constant 0.000000e+00 : f32
    %166 = vector.broadcast %cst_124 : f32 to vector<96x64xf32>
    %c0_125 = arith.constant 0 : index
    %c0_126 = arith.constant 0 : index
    %167 = vector.load %arg11[%c0_125, %c0_126] : memref<160x64xf32, #tpu.memory_space<vmem>>, vector<96x64xf32>
    %168 = vector.extract_strided_slice %165 {offsets = [0, 0], sizes = [1, 64], strides = [1, 1]} : vector<25x64xf32> to vector<1x64xf32>
    %169 = vector.broadcast %168 : vector<1x64xf32> to vector<96x64xf32>
    %170 = arith.mulf %167, %169 : vector<96x64xf32>
    %171 = arith.addf %166, %170 : vector<96x64xf32>
    %c1_127 = arith.constant 1 : index
    %c0_128 = arith.constant 0 : index
    %172 = vector.load %arg11[%c1_127, %c0_128] : memref<160x64xf32, #tpu.memory_space<vmem>>, vector<96x64xf32>
    %173 = vector.extract_strided_slice %165 {offsets = [1, 0], sizes = [1, 64], strides = [1, 1]} : vector<25x64xf32> to vector<1x64xf32>
    %174 = vector.broadcast %173 : vector<1x64xf32> to vector<96x64xf32>
    %175 = arith.mulf %172, %174 : vector<96x64xf32>
    %176 = arith.addf %171, %175 : vector<96x64xf32>
    %c2_129 = arith.constant 2 : index
    %c0_130 = arith.constant 0 : index
    %177 = vector.load %arg11[%c2_129, %c0_130] : memref<160x64xf32, #tpu.memory_space<vmem>>, vector<96x64xf32>
    %178 = vector.extract_strided_slice %165 {offsets = [2, 0], sizes = [1, 64], strides = [1, 1]} : vector<25x64xf32> to vector<1x64xf32>
    %179 = vector.broadcast %178 : vector<1x64xf32> to vector<96x64xf32>
    %180 = arith.mulf %177, %179 : vector<96x64xf32>
    %181 = arith.addf %176, %180 : vector<96x64xf32>
    %c3_131 = arith.constant 3 : index
    %c0_132 = arith.constant 0 : index
    %182 = vector.load %arg11[%c3_131, %c0_132] : memref<160x64xf32, #tpu.memory_space<vmem>>, vector<96x64xf32>
    %183 = vector.extract_strided_slice %165 {offsets = [3, 0], sizes = [1, 64], strides = [1, 1]} : vector<25x64xf32> to vector<1x64xf32>
    %184 = vector.broadcast %183 : vector<1x64xf32> to vector<96x64xf32>
    %185 = arith.mulf %182, %184 : vector<96x64xf32>
    %186 = arith.addf %181, %185 : vector<96x64xf32>
    %c4_133 = arith.constant 4 : index
    %c0_134 = arith.constant 0 : index
    %187 = vector.load %arg11[%c4_133, %c0_134] : memref<160x64xf32, #tpu.memory_space<vmem>>, vector<96x64xf32>
    %188 = vector.extract_strided_slice %165 {offsets = [4, 0], sizes = [1, 64], strides = [1, 1]} : vector<25x64xf32> to vector<1x64xf32>
    %189 = vector.broadcast %188 : vector<1x64xf32> to vector<96x64xf32>
    %190 = arith.mulf %187, %189 : vector<96x64xf32>
    %191 = arith.addf %186, %190 : vector<96x64xf32>
    %c12_135 = arith.constant 12 : index
    %c0_136 = arith.constant 0 : index
    %192 = vector.load %arg11[%c12_135, %c0_136] : memref<160x64xf32, #tpu.memory_space<vmem>>, vector<96x64xf32>
    %193 = vector.extract_strided_slice %165 {offsets = [5, 0], sizes = [1, 64], strides = [1, 1]} : vector<25x64xf32> to vector<1x64xf32>
    %194 = vector.broadcast %193 : vector<1x64xf32> to vector<96x64xf32>
    %195 = arith.mulf %192, %194 : vector<96x64xf32>
    %196 = arith.addf %191, %195 : vector<96x64xf32>
    %c13_137 = arith.constant 13 : index
    %c0_138 = arith.constant 0 : index
    %197 = vector.load %arg11[%c13_137, %c0_138] : memref<160x64xf32, #tpu.memory_space<vmem>>, vector<96x64xf32>
    %198 = vector.extract_strided_slice %165 {offsets = [6, 0], sizes = [1, 64], strides = [1, 1]} : vector<25x64xf32> to vector<1x64xf32>
    %199 = vector.broadcast %198 : vector<1x64xf32> to vector<96x64xf32>
    %200 = arith.mulf %197, %199 : vector<96x64xf32>
    %201 = arith.addf %196, %200 : vector<96x64xf32>
    %c14_139 = arith.constant 14 : index
    %c0_140 = arith.constant 0 : index
    %202 = vector.load %arg11[%c14_139, %c0_140] : memref<160x64xf32, #tpu.memory_space<vmem>>, vector<96x64xf32>
    %203 = vector.extract_strided_slice %165 {offsets = [7, 0], sizes = [1, 64], strides = [1, 1]} : vector<25x64xf32> to vector<1x64xf32>
    %204 = vector.broadcast %203 : vector<1x64xf32> to vector<96x64xf32>
    %205 = arith.mulf %202, %204 : vector<96x64xf32>
    %206 = arith.addf %201, %205 : vector<96x64xf32>
    %c15_141 = arith.constant 15 : index
    %c0_142 = arith.constant 0 : index
    %207 = vector.load %arg11[%c15_141, %c0_142] : memref<160x64xf32, #tpu.memory_space<vmem>>, vector<96x64xf32>
    %208 = vector.extract_strided_slice %165 {offsets = [8, 0], sizes = [1, 64], strides = [1, 1]} : vector<25x64xf32> to vector<1x64xf32>
    %209 = vector.broadcast %208 : vector<1x64xf32> to vector<96x64xf32>
    %210 = arith.mulf %207, %209 : vector<96x64xf32>
    %211 = arith.addf %206, %210 : vector<96x64xf32>
    %c16_143 = arith.constant 16 : index
    %c0_144 = arith.constant 0 : index
    %212 = vector.load %arg11[%c16_143, %c0_144] : memref<160x64xf32, #tpu.memory_space<vmem>>, vector<96x64xf32>
    %213 = vector.extract_strided_slice %165 {offsets = [9, 0], sizes = [1, 64], strides = [1, 1]} : vector<25x64xf32> to vector<1x64xf32>
    %214 = vector.broadcast %213 : vector<1x64xf32> to vector<96x64xf32>
    %215 = arith.mulf %212, %214 : vector<96x64xf32>
    %216 = arith.addf %211, %215 : vector<96x64xf32>
    %c24_145 = arith.constant 24 : index
    %c0_146 = arith.constant 0 : index
    %217 = vector.load %arg11[%c24_145, %c0_146] : memref<160x64xf32, #tpu.memory_space<vmem>>, vector<96x64xf32>
    %218 = vector.extract_strided_slice %165 {offsets = [10, 0], sizes = [1, 64], strides = [1, 1]} : vector<25x64xf32> to vector<1x64xf32>
    %219 = vector.broadcast %218 : vector<1x64xf32> to vector<96x64xf32>
    %220 = arith.mulf %217, %219 : vector<96x64xf32>
    %221 = arith.addf %216, %220 : vector<96x64xf32>
    %c25_147 = arith.constant 25 : index
    %c0_148 = arith.constant 0 : index
    %222 = vector.load %arg11[%c25_147, %c0_148] : memref<160x64xf32, #tpu.memory_space<vmem>>, vector<96x64xf32>
    %223 = vector.extract_strided_slice %165 {offsets = [11, 0], sizes = [1, 64], strides = [1, 1]} : vector<25x64xf32> to vector<1x64xf32>
    %224 = vector.broadcast %223 : vector<1x64xf32> to vector<96x64xf32>
    %225 = arith.mulf %222, %224 : vector<96x64xf32>
    %226 = arith.addf %221, %225 : vector<96x64xf32>
    %c26_149 = arith.constant 26 : index
    %c0_150 = arith.constant 0 : index
    %227 = vector.load %arg11[%c26_149, %c0_150] : memref<160x64xf32, #tpu.memory_space<vmem>>, vector<96x64xf32>
    %228 = vector.extract_strided_slice %165 {offsets = [12, 0], sizes = [1, 64], strides = [1, 1]} : vector<25x64xf32> to vector<1x64xf32>
    %229 = vector.broadcast %228 : vector<1x64xf32> to vector<96x64xf32>
    %230 = arith.mulf %227, %229 : vector<96x64xf32>
    %231 = arith.addf %226, %230 : vector<96x64xf32>
    %c27_151 = arith.constant 27 : index
    %c0_152 = arith.constant 0 : index
    %232 = vector.load %arg11[%c27_151, %c0_152] : memref<160x64xf32, #tpu.memory_space<vmem>>, vector<96x64xf32>
    %233 = vector.extract_strided_slice %165 {offsets = [13, 0], sizes = [1, 64], strides = [1, 1]} : vector<25x64xf32> to vector<1x64xf32>
    %234 = vector.broadcast %233 : vector<1x64xf32> to vector<96x64xf32>
    %235 = arith.mulf %232, %234 : vector<96x64xf32>
    %236 = arith.addf %231, %235 : vector<96x64xf32>
    %c28_153 = arith.constant 28 : index
    %c0_154 = arith.constant 0 : index
    %237 = vector.load %arg11[%c28_153, %c0_154] : memref<160x64xf32, #tpu.memory_space<vmem>>, vector<96x64xf32>
    %238 = vector.extract_strided_slice %165 {offsets = [14, 0], sizes = [1, 64], strides = [1, 1]} : vector<25x64xf32> to vector<1x64xf32>
    %239 = vector.broadcast %238 : vector<1x64xf32> to vector<96x64xf32>
    %240 = arith.mulf %237, %239 : vector<96x64xf32>
    %241 = arith.addf %236, %240 : vector<96x64xf32>
    %c36_155 = arith.constant 36 : index
    %c0_156 = arith.constant 0 : index
    %242 = vector.load %arg11[%c36_155, %c0_156] : memref<160x64xf32, #tpu.memory_space<vmem>>, vector<96x64xf32>
    %243 = vector.extract_strided_slice %165 {offsets = [15, 0], sizes = [1, 64], strides = [1, 1]} : vector<25x64xf32> to vector<1x64xf32>
    %244 = vector.broadcast %243 : vector<1x64xf32> to vector<96x64xf32>
    %245 = arith.mulf %242, %244 : vector<96x64xf32>
    %246 = arith.addf %241, %245 : vector<96x64xf32>
    %c37_157 = arith.constant 37 : index
    %c0_158 = arith.constant 0 : index
    %247 = vector.load %arg11[%c37_157, %c0_158] : memref<160x64xf32, #tpu.memory_space<vmem>>, vector<96x64xf32>
    %248 = vector.extract_strided_slice %165 {offsets = [16, 0], sizes = [1, 64], strides = [1, 1]} : vector<25x64xf32> to vector<1x64xf32>
    %249 = vector.broadcast %248 : vector<1x64xf32> to vector<96x64xf32>
    %250 = arith.mulf %247, %249 : vector<96x64xf32>
    %251 = arith.addf %246, %250 : vector<96x64xf32>
    %c38_159 = arith.constant 38 : index
    %c0_160 = arith.constant 0 : index
    %252 = vector.load %arg11[%c38_159, %c0_160] : memref<160x64xf32, #tpu.memory_space<vmem>>, vector<96x64xf32>
    %253 = vector.extract_strided_slice %165 {offsets = [17, 0], sizes = [1, 64], strides = [1, 1]} : vector<25x64xf32> to vector<1x64xf32>
    %254 = vector.broadcast %253 : vector<1x64xf32> to vector<96x64xf32>
    %255 = arith.mulf %252, %254 : vector<96x64xf32>
    %256 = arith.addf %251, %255 : vector<96x64xf32>
    %c39_161 = arith.constant 39 : index
    %c0_162 = arith.constant 0 : index
    %257 = vector.load %arg11[%c39_161, %c0_162] : memref<160x64xf32, #tpu.memory_space<vmem>>, vector<96x64xf32>
    %258 = vector.extract_strided_slice %165 {offsets = [18, 0], sizes = [1, 64], strides = [1, 1]} : vector<25x64xf32> to vector<1x64xf32>
    %259 = vector.broadcast %258 : vector<1x64xf32> to vector<96x64xf32>
    %260 = arith.mulf %257, %259 : vector<96x64xf32>
    %261 = arith.addf %256, %260 : vector<96x64xf32>
    %c40_163 = arith.constant 40 : index
    %c0_164 = arith.constant 0 : index
    %262 = vector.load %arg11[%c40_163, %c0_164] : memref<160x64xf32, #tpu.memory_space<vmem>>, vector<96x64xf32>
    %263 = vector.extract_strided_slice %165 {offsets = [19, 0], sizes = [1, 64], strides = [1, 1]} : vector<25x64xf32> to vector<1x64xf32>
    %264 = vector.broadcast %263 : vector<1x64xf32> to vector<96x64xf32>
    %265 = arith.mulf %262, %264 : vector<96x64xf32>
    %266 = arith.addf %261, %265 : vector<96x64xf32>
    %c48_165 = arith.constant 48 : index
    %c0_166 = arith.constant 0 : index
    %267 = vector.load %arg11[%c48_165, %c0_166] : memref<160x64xf32, #tpu.memory_space<vmem>>, vector<96x64xf32>
    %268 = vector.extract_strided_slice %165 {offsets = [20, 0], sizes = [1, 64], strides = [1, 1]} : vector<25x64xf32> to vector<1x64xf32>
    %269 = vector.broadcast %268 : vector<1x64xf32> to vector<96x64xf32>
    %270 = arith.mulf %267, %269 : vector<96x64xf32>
    %271 = arith.addf %266, %270 : vector<96x64xf32>
    %c49_167 = arith.constant 49 : index
    %c0_168 = arith.constant 0 : index
    %272 = vector.load %arg11[%c49_167, %c0_168] : memref<160x64xf32, #tpu.memory_space<vmem>>, vector<96x64xf32>
    %273 = vector.extract_strided_slice %165 {offsets = [21, 0], sizes = [1, 64], strides = [1, 1]} : vector<25x64xf32> to vector<1x64xf32>
    %274 = vector.broadcast %273 : vector<1x64xf32> to vector<96x64xf32>
    %275 = arith.mulf %272, %274 : vector<96x64xf32>
    %276 = arith.addf %271, %275 : vector<96x64xf32>
    %c50_169 = arith.constant 50 : index
    %c0_170 = arith.constant 0 : index
    %277 = vector.load %arg11[%c50_169, %c0_170] : memref<160x64xf32, #tpu.memory_space<vmem>>, vector<96x64xf32>
    %278 = vector.extract_strided_slice %165 {offsets = [22, 0], sizes = [1, 64], strides = [1, 1]} : vector<25x64xf32> to vector<1x64xf32>
    %279 = vector.broadcast %278 : vector<1x64xf32> to vector<96x64xf32>
    %280 = arith.mulf %277, %279 : vector<96x64xf32>
    %281 = arith.addf %276, %280 : vector<96x64xf32>
    %c51_171 = arith.constant 51 : index
    %c0_172 = arith.constant 0 : index
    %282 = vector.load %arg11[%c51_171, %c0_172] : memref<160x64xf32, #tpu.memory_space<vmem>>, vector<96x64xf32>
    %283 = vector.extract_strided_slice %165 {offsets = [23, 0], sizes = [1, 64], strides = [1, 1]} : vector<25x64xf32> to vector<1x64xf32>
    %284 = vector.broadcast %283 : vector<1x64xf32> to vector<96x64xf32>
    %285 = arith.mulf %282, %284 : vector<96x64xf32>
    %286 = arith.addf %281, %285 : vector<96x64xf32>
    %c52_173 = arith.constant 52 : index
    %c0_174 = arith.constant 0 : index
    %287 = vector.load %arg11[%c52_173, %c0_174] : memref<160x64xf32, #tpu.memory_space<vmem>>, vector<96x64xf32>
    %288 = vector.extract_strided_slice %165 {offsets = [24, 0], sizes = [1, 64], strides = [1, 1]} : vector<25x64xf32> to vector<1x64xf32>
    %289 = vector.broadcast %288 : vector<1x64xf32> to vector<96x64xf32>
    %290 = arith.mulf %287, %289 : vector<96x64xf32>
    %291 = arith.addf %286, %290 : vector<96x64xf32>
    %cst_175 = arith.constant dense<0.000000e+00> : vector<96xf32>
    %292 = vector.multi_reduction <add>, %291, %cst_175 [1] : vector<96x64xf32> to vector<96xf32>
    %293 = vector.shape_cast %292 : vector<96xf32> to vector<96x1xf32>
    %c0_176 = arith.constant 0 : index
    %c0_177 = arith.constant 0 : index
    %294 = vector.load %arg8[%c0_176, %c0_177] : memref<1x1xf32, #tpu.memory_space<vmem>>, vector<1x1xf32>
    %295 = vector.broadcast %294 : vector<1x1xf32> to vector<96x1xf32>
    %296 = arith.addf %293, %295 : vector<96x1xf32>
    %297 = vector.extract_strided_slice %296 {offsets = [0, 0], sizes = [8, 1], strides = [1, 1]} : vector<96x1xf32> to vector<8x1xf32>
    %c0_178 = arith.constant 0 : index
    %c0_179 = arith.constant 0 : index
    %298 = vector.load %arg9[%c0_178, %c0_179] : memref<64x1xf32, #tpu.memory_space<vmem>>, vector<8x1xf32>
    tpu.vector_store %arg9[%c0_178, %c0_179], %297 {strides = array<i32>} : memref<64x1xf32, #tpu.memory_space<vmem>>, vector<8x1xf32>,
    %299 = vector.extract_strided_slice %296 {offsets = [12, 0], sizes = [8, 1], strides = [1, 1]} : vector<96x1xf32> to vector<8x1xf32>
    %c8 = arith.constant 8 : index
    %c0_180 = arith.constant 0 : index
    %300 = vector.load %arg9[%c8, %c0_180] : memref<64x1xf32, #tpu.memory_space<vmem>>, vector<8x1xf32>
    tpu.vector_store %arg9[%c8, %c0_180], %299 {strides = array<i32>} : memref<64x1xf32, #tpu.memory_space<vmem>>, vector<8x1xf32>,
    %301 = vector.extract_strided_slice %296 {offsets = [24, 0], sizes = [8, 1], strides = [1, 1]} : vector<96x1xf32> to vector<8x1xf32>
    %c16_181 = arith.constant 16 : index
    %c0_182 = arith.constant 0 : index
    %302 = vector.load %arg9[%c16_181, %c0_182] : memref<64x1xf32, #tpu.memory_space<vmem>>, vector<8x1xf32>
    tpu.vector_store %arg9[%c16_181, %c0_182], %301 {strides = array<i32>} : memref<64x1xf32, #tpu.memory_space<vmem>>, vector<8x1xf32>,
    %303 = vector.extract_strided_slice %296 {offsets = [36, 0], sizes = [8, 1], strides = [1, 1]} : vector<96x1xf32> to vector<8x1xf32>
    %c24_183 = arith.constant 24 : index
    %c0_184 = arith.constant 0 : index
    %304 = vector.load %arg9[%c24_183, %c0_184] : memref<64x1xf32, #tpu.memory_space<vmem>>, vector<8x1xf32>
    tpu.vector_store %arg9[%c24_183, %c0_184], %303 {strides = array<i32>} : memref<64x1xf32, #tpu.memory_space<vmem>>, vector<8x1xf32>,
    %305 = vector.extract_strided_slice %296 {offsets = [48, 0], sizes = [8, 1], strides = [1, 1]} : vector<96x1xf32> to vector<8x1xf32>
    %c32 = arith.constant 32 : index
    %c0_185 = arith.constant 0 : index
    %306 = vector.load %arg9[%c32, %c0_185] : memref<64x1xf32, #tpu.memory_space<vmem>>, vector<8x1xf32>
    tpu.vector_store %arg9[%c32, %c0_185], %305 {strides = array<i32>} : memref<64x1xf32, #tpu.memory_space<vmem>>, vector<8x1xf32>,
    %307 = vector.extract_strided_slice %296 {offsets = [60, 0], sizes = [8, 1], strides = [1, 1]} : vector<96x1xf32> to vector<8x1xf32>
    %c40_186 = arith.constant 40 : index
    %c0_187 = arith.constant 0 : index
    %308 = vector.load %arg9[%c40_186, %c0_187] : memref<64x1xf32, #tpu.memory_space<vmem>>, vector<8x1xf32>
    tpu.vector_store %arg9[%c40_186, %c0_187], %307 {strides = array<i32>} : memref<64x1xf32, #tpu.memory_space<vmem>>, vector<8x1xf32>,
    %309 = vector.extract_strided_slice %296 {offsets = [72, 0], sizes = [8, 1], strides = [1, 1]} : vector<96x1xf32> to vector<8x1xf32>
    %c48_188 = arith.constant 48 : index
    %c0_189 = arith.constant 0 : index
    %310 = vector.load %arg9[%c48_188, %c0_189] : memref<64x1xf32, #tpu.memory_space<vmem>>, vector<8x1xf32>
    tpu.vector_store %arg9[%c48_188, %c0_189], %309 {strides = array<i32>} : memref<64x1xf32, #tpu.memory_space<vmem>>, vector<8x1xf32>,
    %311 = vector.extract_strided_slice %296 {offsets = [84, 0], sizes = [8, 1], strides = [1, 1]} : vector<96x1xf32> to vector<8x1xf32>
    %c56 = arith.constant 56 : index
    %c0_190 = arith.constant 0 : index
    %312 = vector.load %arg9[%c56, %c0_190] : memref<64x1xf32, #tpu.memory_space<vmem>>, vector<8x1xf32>
    tpu.vector_store %arg9[%c56, %c0_190], %311 {strides = array<i32>} : memref<64x1xf32, #tpu.memory_space<vmem>>, vector<8x1xf32>,
    return
  }
  func.func @transform_0(%arg0: i32) -> (i32, i32) {
    %c0_i32 = arith.constant 0 : i32
    %c0_i32_0 = arith.constant 0 : i32
    return %arg0, %c0_i32 : i32, i32
  }
  func.func @transform_1(%arg0: i32) -> (i32, i32) {
    %c0_i32 = arith.constant 0 : i32
    %c0_i32_0 = arith.constant 0 : i32
    return %arg0, %c0_i32 : i32, i32
  }
  func.func @transform_2(%arg0: i32) -> (i32, i32) {
    %c0_i32 = arith.constant 0 : i32
    %c0_i32_0 = arith.constant 0 : i32
    %c0_i32_1 = arith.constant 0 : i32
    return %c0_i32, %c0_i32_0 : i32, i32
  }
  func.func @transform_3(%arg0: i32) -> (i32, i32) {
    %c0_i32 = arith.constant 0 : i32
    %c0_i32_0 = arith.constant 0 : i32
    %c0_i32_1 = arith.constant 0 : i32
    return %c0_i32, %c0_i32_0 : i32, i32
  }
  func.func @transform_4(%arg0: i32) -> (i32, i32) {
    %c0_i32 = arith.constant 0 : i32
    %c0_i32_0 = arith.constant 0 : i32
    %c0_i32_1 = arith.constant 0 : i32
    return %c0_i32, %c0_i32_0 : i32, i32
  }
  func.func @transform_5(%arg0: i32) -> (i32, i32) {
    %c0_i32 = arith.constant 0 : i32
    %c0_i32_0 = arith.constant 0 : i32
    %c0_i32_1 = arith.constant 0 : i32
    return %c0_i32, %c0_i32_0 : i32, i32
  }
  func.func @transform_6(%arg0: i32) -> (i32, i32) {
    %c0_i32 = arith.constant 0 : i32
    %c0_i32_0 = arith.constant 0 : i32
    %c0_i32_1 = arith.constant 0 : i32
    return %c0_i32, %c0_i32_0 : i32, i32
  }
  func.func @transform_7(%arg0: i32) -> (i32, i32) {
    %c0_i32 = arith.constant 0 : i32
    %c0_i32_0 = arith.constant 0 : i32
    %c0_i32_1 = arith.constant 0 : i32
    return %c0_i32, %c0_i32_0 : i32, i32
  }
  func.func @transform_8(%arg0: i32) -> (i32, i32) {
    %c0_i32 = arith.constant 0 : i32
    %c0_i32_0 = arith.constant 0 : i32
    return %arg0, %c0_i32 : i32, i32
  }
}

</mosaic_0001>

<bundles_post_ra>
// kernel: finenet_forward.1
= control target key start
LH: loop header
LB: loop body
LE: loop exit
PB: predicated region body
PF: predicated region fallthrough
CT: control target
= control target key end

     0   :  { %s8002_s29 = smov 0   ;;  %s10303_s0 = inlined_call_operand.vmem [shape: bf16[512,256], index: 0, kind: input, shape index: {}]   ;;  %s10304_s1 = inlined_call_operand.vmem [shape: f32[128,1], index: 1, kind: input, shape index: {}]   ;;  %s10305_s2 = inlined_call_operand.vmem [shape: bf16[256,64], index: 2, kind: input, shape index: {}]   ;;  %s10306_s3 = inlined_call_operand.vmem [shape: f32[1,64], index: 3, kind: input, shape index: {}]   ;;  %s10307_s4 = inlined_call_operand.vmem [shape: bf16[1600,64], index: 4, kind: input, shape index: {}]   ;;  %s10308_s5 = inlined_call_operand.vmem [shape: f32[1,64], index: 5, kind: input, shape index: {}]   ;;  %s10309_s6 = inlined_call_operand.vmem [shape: f32[25,64], index: 6, kind: input, shape index: {}]   ;;  %s10310_s7 = inlined_call_operand.<no memory space> [shape: f32[1,1], index: 7, kind: input, shape index: {}]   ;;  %s10311_s8 = inlined_call_operand.vmem [shape: f32[128,1], index: 8, kind: output, shape index: {}]  }
   0x1   :  { %v13_v0 = vstv %s10310_s7 }
   0x2   :  { %14 = vst [vmem:[#allocation4] sm:$0x1] %v13_v0 }
   0x3 LB: > { %s6262_s30 = sadd.s32 4294967295, %s7950_s29   ;;  %p6266_p0 = scmp.ge.s32.totalorder %s7950_s29, 1  ;;  %s7950_s29 = sphi %s8002_s29, %s20_s29  }
   0x4   : > { %p277_p1 = scmp.lt.s32.totalorder %s7950_s29, 3 }
   0x6   : > { %p278_p2 = pnand %p6266_p0, %p277_p1 }
   0x8   : > { %281 = sbr.rel (%p278_p2) target bundleno = 1280 (0x500), region = 52 }
   0xf   : > { %v7769_v1 = vld [vmem:[%s10305_s2 + $0x40] sm:$0xff]   ;;  %s6267_s7 = sshll.u32 %s6262_s30, 5  ;;  %v7771_v3 = vld [vmem:[%s10305_s2 + $0x48] sm:$0xff]   ;;  %v7773_v5 = vld [vmem:[%s10305_s2 + $0x50] sm:$0xff]   ;;  %v7952_v18 = vmov 0   ;;  %s6270_s24 = sshll.u32 %s6262_s30, 3 }
  0x10   : > { %v7770_v2 = vld [vmem:[%s10305_s2] sm:$0xff]   ;;  %6579 = vmatprep.subr.bf16.mxu0 %v7769_v1  ;;  %v7772_v4 = vld [vmem:[%s10305_s2 + $0x8] sm:$0xff]   ;;  %p318_p3 = scmp.lt.s32.totalorder %s6267_s7, 63  ;;  %v7774_v6 = vld [vmem:[%s10305_s2 + $0x10] sm:$0xff]   ;;  %7758 = vset.pattern.permute.xlu1 %v7952_v18  ;;  %p325_p4 = scmp.lt.s32.totalorder %s6270_s24, 15  ;;  %vm940_vm0 = vcmask 523264  }
  0x11   : > { %6580 = vmatpush3.bf16.msra.mxu0 %v7770_v2  ;;  %v7775_v7 = vld [vmem:[%s10305_s2 + $0x58] sm:$0xff]   ;;  %v7777_v9 = vld [vmem:[%s10305_s2 + $0x60] sm:$0xff]   ;;  %v7779_v11 = vld [vmem:[%s10305_s2 + $0x68] sm:$0xff]   ;;  %7747 = vset.pattern.permute.xlu0 %v7952_v18  ;;  %942 = vst.msk [vmem:[#allocation2 + $0x8] sm:$0xff] %vm940_vm0, %v7952_v18  ;;  %vm958_vm2 = vcmask 523269   ;;  %vm960_vm3 = vcmask 516096  }
  0x12   : > { %6581 = vmatprep.subr.bf16.mxu0 %v7771_v3  ;;  %s10481_s7 = smov (!%p318_p3, %s6267_s7), 63  ;;  %v7776_v8 = vld [vmem:[%s10305_s2 + $0x18] sm:$0xff]   ;;  %v7778_v10 = vld [vmem:[%s10305_s2 + $0x20] sm:$0xff]   ;;  %v7780_v13 = vld [vmem:[%s10305_s2 + $0x28] sm:$0xff]   ;;  %s10483_s24 = smov (!%p325_p4, %s6270_s24), 15  ;;  %943 = vst.msk [vmem:[#allocation2 + $0x10] sm:$0xff] %vm940_vm0, %v7952_v18 }
  0x13   : > { %s6578_s25 = sshll.u32 %s10481_s7, 3  ;;  %v7781_v14 = vld [vmem:[%s10305_s2 + $0x70] sm:$0xff]   ;;  %v7783_v16 = vld [vmem:[%s10305_s2 + $0x78] sm:$0xff]   ;;  %941 = vst.msk [vmem:[#allocation2] sm:$0xff] %vm940_vm0, %v7952_v18  ;;  %944 = vst.msk [vmem:[#allocation2 + $0x18] sm:$0xff] %vm940_vm0, %v7952_v18  ;;  %vm964_vm4 = vcmask 522243  }
  0x14   : > { %s8042_s10 = scalar_lea.vmem %s10303_s0, %s6578_s25  ;;  %v7782_v15 = vld [vmem:[%s10305_s2 + $0x30] sm:$0xff]   ;;  %v7784_v17 = vld [vmem:[%s10305_s2 + $0x38] sm:$0xff]   ;;  %s6271_s25 = sshll.u32 %s10483_s24, 3  ;;  %945 = vst.msk [vmem:[#allocation2 + $0x20] sm:$0xff] %vm940_vm0, %v7952_v18  ;;  %946 = vst.msk [vmem:[#allocation2 + $0x28] sm:$0xff] %vm940_vm0, %v7952_v18  ;;  %vm969_vm5 = vcmask 520193  }
  0x15   : > { %6582 = vmatpush3.bf16.msra.mxu0 %v7772_v4  ;;  %v7787_v12 = vld [vmem:[%s8042_s10 + $0x4] ss:$8 sps:$4 sm:$0xff]   ;;  %v7785_v19 = vld [vmem:[%s8042_s10] ss:$8 sps:$4 sm:$0xff]   ;;  %v7788_v20 = vld [vmem:[%s8042_s10 + $0x14] ss:$8 sps:$4 sm:$0xff]   ;;  %s328_s28 = scalar_lea.vmem %s10304_s1, %s6271_s25  ;;  %s10274_s12 = scalar_lea.vmem %s10311_s8, %s6271_s25 }
  0x16   : > { %6583 = vmatprep.subr.bf16.mxu0 %v7773_v5  ;;  %696 = vmatprep.mubr.bf16.mxu0 %v7787_v12  ;;  %v7790_v21 = vld [vmem:[%s8042_s10 + $0x10] ss:$8 sps:$4 sm:$0xff]   ;;  %v7791_v22 = vld [vmem:[%s8042_s10 + $0x24] ss:$8 sps:$4 sm:$0xff]   ;;  %v7793_v35 = vld [vmem:[%s8042_s10 + $0x20] ss:$8 sps:$4 sm:$0xff]  }
  0x17   : > { %v890_v23 = vld [vmem:[%s328_s28 + $0x30] sm:$0xff]  ;;  %v891_v24 = vld [vmem:[%s328_s28 + $0x38] sm:$0xff]  ;;  %v884_v26 = vld [vmem:[%s328_s28] sm:$0xff]  ;;  %947 = vst.msk [vmem:[#allocation2 + $0x30] sm:$0xff] %vm940_vm0, %v7952_v18  ;;  %vm973_vm6 = vcmask 523271   ;;  %vm975_vm7 = vcmask 518144  }
  0x18   : > { %v7759_v25 = vpack.i.bf16 %v891_v24, %v890_v23  ;;  %v885_v27 = vld [vmem:[%s328_s28 + $0x8] sm:$0xff]  ;;  %v886_v28 = vld [vmem:[%s328_s28 + $0x10] sm:$0xff]  ;;  %v887_v29 = vld [vmem:[%s328_s28 + $0x18] sm:$0xff]  ;;  %948 = vst.msk [vmem:[#allocation2 + $0x38] sm:$0xff] %vm940_vm0, %v7952_v18  ;;  %vm1016_vm8 = vsmask.f32 7424 }
  0x19   : > { %6584 = vmatpush3.bf16.msra.mxu0 %v7774_v6  ;;  %v888_v30 = vld [vmem:[%s328_s28 + $0x20] sm:$0xff]  ;;  %v889_v31 = vld [vmem:[%s328_s28 + $0x28] sm:$0xff]  ;;  %v7764_v32 = vpack.i.bf16 %v885_v27, %v884_v26  ;;  %v7748_v33 = vpack.i.bf16 %v887_v29, %v886_v28  ;;  %v7794_v36 = vld [vmem:[%s8042_s10 + $0x34] ss:$8 sps:$4 sm:$0xff]   ;;  %949 = vst.msk [vmem:[#allocation2 + $0x40] sm:$0xff] %vm940_vm0, %v7952_v18  ;;  %vm2640_vm9 = vcmask 1043456  }
  0x1a   : > { %6585 = vmatprep.subr.bf16.mxu0 %v7775_v7  ;;  %7760 = vperm.xlu1 %7758, %v7759_v25   ;;  %v7753_v34 = vpack.i.bf16 %v889_v31, %v888_v30  ;;  %v7796_v37 = vld [vmem:[%s8042_s10 + $0x30] ss:$8 sps:$4 sm:$0xff]   ;;  %v7797_v38 = vld [vmem:[%s8042_s10 + $0x44] ss:$8 sps:$4 sm:$0xff]   ;;  %v7799_v39 = vld [vmem:[%s8042_s10 + $0x40] ss:$8 sps:$4 sm:$0xff]  }
  0x1b   : > { %7749 = vperm.xlu0 %7747, %v7748_v33   ;;  %v7800_v40 = vld [vmem:[%s8042_s10 + $0x54] ss:$8 sps:$4 sm:$0xff]   ;;  %v7802_v41 = vld [vmem:[%s8042_s10 + $0x50] ss:$8 sps:$4 sm:$0xff]   ;;  %v7803_v42 = vld [vmem:[%s8042_s10 + $0x64] ss:$8 sps:$4 sm:$0xff]  }
  0x1c   : > { %v7805_v43 = vld [vmem:[%s8042_s10 + $0x60] ss:$8 sps:$4 sm:$0xff]   ;;  %v7806_v44 = vld [vmem:[%s8042_s10 + $0x74] ss:$8 sps:$4 sm:$0xff]   ;;  %v7808_v45 = vld [vmem:[%s8042_s10 + $0x70] ss:$8 sps:$4 sm:$0xff]  }
  0x1d   : > { %6586 = vmatpush3.bf16.msra.mxu0 %v7776_v8  ;;  %v7809_v46 = vld [vmem:[%s8042_s10 + $0x84] ss:$8 sps:$4 sm:$0xff]   ;;  %v7811_v47 = vld [vmem:[%s8042_s10 + $0x80] ss:$8 sps:$4 sm:$0xff]   ;;  %v7812_v48 = vld [vmem:[%s8042_s10 + $0x94] ss:$8 sps:$4 sm:$0xff]  }
  0x1e   : > { %6587 = vmatprep.subr.bf16.mxu0 %v7777_v9  ;;  %7765 = vperm.xlu1 %7758, %v7764_v32   ;;  %v7814_v49 = vld [vmem:[%s8042_s10 + $0x90] ss:$8 sps:$4 sm:$0xff]   ;;  %v7815_v50 = vld [vmem:[%s8042_s10 + $0xa4] ss:$8 sps:$4 sm:$0xff]   ;;  %v7817_v51 = vld [vmem:[%s8042_s10 + $0xa0] ss:$8 sps:$4 sm:$0xff]  }
  0x1f   : > { %7754 = vperm.xlu0 %7747, %v7753_v34   ;;  %v7818_v52 = vld [vmem:[%s8042_s10 + $0xb4] ss:$8 sps:$4 sm:$0xff]   ;;  %v7820_v53 = vld [vmem:[%s8042_s10 + $0xb0] ss:$8 sps:$4 sm:$0xff]   ;;  %v7821_v54 = vld [vmem:[%s8042_s10 + $0xc4] ss:$8 sps:$4 sm:$0xff]  }
  0x20   : > { %v7823_v55 = vld [vmem:[%s8042_s10 + $0xc0] ss:$8 sps:$4 sm:$0xff]   ;;  %v7824_v56 = vld [vmem:[%s8042_s10 + $0xd4] ss:$8 sps:$4 sm:$0xff]   ;;  %v7826_v57 = vld [vmem:[%s8042_s10 + $0xd0] ss:$8 sps:$4 sm:$0xff]  }
  0x21   : > { %6588 = vmatpush3.bf16.msra.mxu0 %v7778_v10  ;;  %v7827_v58 = vld [vmem:[%s8042_s10 + $0xe4] ss:$8 sps:$4 sm:$0xff]   ;;  %v7829_v59 = vld [vmem:[%s8042_s10 + $0xe0] ss:$8 sps:$4 sm:$0xff]   ;;  %v7830_v60 = vld [vmem:[%s8042_s10 + $0xf4] ss:$8 sps:$4 sm:$0xff]  }
  0x22   : > { %6589 = vmatprep.subr.bf16.mxu0 %v7779_v11  ;;  %v7832_v61 = vld [vmem:[%s8042_s10 + $0xf0] ss:$8 sps:$4 sm:$0xff]   ;;  %950 = vst.msk [vmem:[#allocation2 + $0x48] sm:$0xff] %vm940_vm0, %v7952_v18  ;;  %v7833_v62 = vld [vmem:[%s10307_s4 + $0x20] sm:$0xff]   ;;  %v7834_v63 = vld [vmem:[%s10307_s4 + $0x28] sm:$0xff]   ;;  %vm1667_vm12 = vcmask 1045504  }
  0x23   : > { %v7835_v0 = vld [vmem:[%s10307_s4 + $0x30] sm:$0xff]   ;;  %v7836_v1 = vld [vmem:[%s10307_s4 + $0x120] sm:$0xff]   ;;  %v7837_v2 = vld [vmem:[%s10307_s4 + $0x38] sm:$0xff]   ;;  %vm1483_vm10 = vsmask.f32 6400  ;;  %vm1828_vm14 = vcmask 1041408  }
  0x24   : > { %7441 = vmatprep.subr.bf16.mxu1 %v7836_v1  ;;  %v7838_v3 = vld [vmem:[%s10307_s4 + $0x128] sm:$0xff]   ;;  %v7839_v6 = vld [vmem:[%s10307_s4 + $0x130] sm:$0xff]   ;;  %v7840_v11 = vld [vmem:[%s10307_s4 + $0x138] sm:$0xff]   ;;  %vm3165_vm11 = vsmask.f32 2304  ;;  %vm1325_vm15 = vcmask 1046528  }
  0x25   : > { %6590 = vmatpush3.bf16.msra.mxu0 %v7780_v13  ;;  %7445 = vmatpush3.bf16.msra.mxu1 %v7836_v1  ;;  %v8168_v32 = vld [vmem:[%s10306_s3] ss:$0 sm:$0xff]  ;;  %vm2798_vm13 = vsmask.f32 3328 }
  0x26   : > { %6591 = vmatprep.subr.bf16.mxu0 %v7781_v14  ;;  %7442 = vmatprep.subr.bf16.mxu1 %v7838_v3  ;;  %v8156_v14 = vld [vmem:[%s10307_s4 + $0x140] sm:$0xff]  }
  0x29   : > { %6592 = vmatpush3.bf16.msra.mxu0 %v7782_v15  ;;  %7446 = vmatpush3.bf16.msra.mxu1 %v7838_v3 }
  0x2a   : > { %6593 = vmatprep.subr.bf16.mxu0 %v7783_v16  ;;  %7443 = vmatprep.subr.bf16.mxu1 %v7839_v6 }
  0x2d   : > { %6594 = vmatpush3.bf16.msra.mxu0 %v7784_v17  ;;  %7447 = vmatpush3.bf16.msra.mxu1 %v7839_v6 }
  0x2e   : > { %6941 = vmatprep.subr.bf16.mxu0 %v7833_v62  ;;  %7444 = vmatprep.subr.bf16.mxu1 %v7840_v11 }
  0x30   : > { %697 = vmatmul.mubr.bf16.vlgmr.msra.gmra.mrb[0].mxu0 %v7785_v19  ;;  %v8162_v19 = vld [vmem:[%s10307_s4] sm:$0xff]  }
  0x31   : > { %704 = vmatprep.mubr.bf16.mxu0 %v7788_v20  ;;  %6942 = vmatpush3.bf16.msra.mxu0 %v7833_v62 }
  0x32   : > { %6943 = vmatprep.subr.bf16.mxu0 %v7834_v63  ;;  %7448 = vmatpush3.bf16.msra.mxu1 %v7840_v11 }
  0x33   : > { %7141 = vmatprep.subr.bf16.mxu1 %v8156_v14 }
  0x35   : > { %6944 = vmatpush3.bf16.msra.mxu0 %v7834_v63 }
  0x36   : > { %6945 = vmatprep.subr.bf16.mxu0 %v7835_v0 }
  0x38   : > { %705 = vmatmul.mubr.bf16.gmra.mrb[4].mxu0 %v7790_v21 }
  0x39   : > { %712 = vmatprep.mubr.bf16.mxu0 %v7791_v22  ;;  %6946 = vmatpush3.bf16.msra.mxu0 %v7835_v0 }
  0x3a   : > { %6947 = vmatprep.subr.bf16.mxu0 %v7837_v2 }
  0x3d   : > { %6948 = vmatpush3.bf16.msra.mxu0 %v7837_v2 }
  0x3e   : > { %6961 = vmatprep.subr.bf16.mxu0 %v8162_v19 }
  0x40   : > { %713 = vmatmul.mubr.bf16.gmra.mrb[8].mxu0 %v7793_v35 }
  0x41   : > { %720 = vmatprep.mubr.bf16.mxu0 %v7794_v36 }
  0x48   : > { %721 = vmatmul.mubr.bf16.gmra.mrb[12].mxu0 %v7796_v37 }
  0x49   : > { %728 = vmatprep.mubr.bf16.mxu0 %v7797_v38 }
  0x50   : > { %729 = vmatmul.mubr.bf16.gmra.mrb[16].mxu0 %v7799_v39 }
  0x51   : > { %736 = vmatprep.mubr.bf16.mxu0 %v7800_v40 }
  0x58   : > { %737 = vmatmul.mubr.bf16.gmra.mrb[20].mxu0 %v7802_v41 }
  0x59   : > { %744 = vmatprep.mubr.bf16.mxu0 %v7803_v42 }
  0x60   : > { %745 = vmatmul.mubr.bf16.gmra.mrb[24].mxu0 %v7805_v43 }
  0x61   : > { %752 = vmatprep.mubr.bf16.mxu0 %v7806_v44 }
  0x68   : > { %753 = vmatmul.mubr.bf16.gmra.mrb[28].mxu0 %v7808_v45 }
  0x69   : > { %760 = vmatprep.mubr.bf16.mxu0 %v7809_v46 }
  0x70   : > { %761 = vmatmul.mubr.bf16.gmra.mrb[32].mxu0 %v7811_v47 }
  0x71   : > { %768 = vmatprep.mubr.bf16.mxu0 %v7812_v48 }
  0x78   : > { %769 = vmatmul.mubr.bf16.gmra.mrb[36].mxu0 %v7814_v49 }
  0x79   : > { %776 = vmatprep.mubr.bf16.mxu0 %v7815_v50 }
  0x80   : > { %777 = vmatmul.mubr.bf16.gmra.mrb[40].mxu0 %v7817_v51 }
  0x81   : > { %784 = vmatprep.mubr.bf16.mxu0 %v7818_v52 }
  0x88   : > { %785 = vmatmul.mubr.bf16.gmra.mrb[44].mxu0 %v7820_v53 }
  0x89   : > { %792 = vmatprep.mubr.bf16.mxu0 %v7821_v54 }
  0x90   : > { %793 = vmatmul.mubr.bf16.gmra.mrb[48].mxu0 %v7823_v55 }
  0x91   : > { %800 = vmatprep.mubr.bf16.mxu0 %v7824_v56 }
  0x98   : > { %801 = vmatmul.mubr.bf16.gmra.mrb[52].mxu0 %v7826_v57 }
  0x99   : > { %808 = vmatprep.mubr.bf16.mxu0 %v7827_v58 }
  0xa0   : > { %809 = vmatmul.mubr.bf16.gmra.mrb[56].mxu0 %v7829_v59 }
  0xa1   : > { %816 = vmatprep.mubr.bf16.mxu0 %v7830_v60 }
  0xa8   : > { %817 = vmatmul.mubr.bf16.gmra.mrb[60].mxu0 %v7832_v61 }
 0x103   : > { %v6595_v4 = vpop.f32.mrb[0].mxu0 }
 0x104   : > { %v6596_v5 = vpop.f32.mrb[1].mxu0 }
 0x105   : > { %v6597_v7 = vadd.f32 %v6596_v5, %v6595_v4  ;;  %v6598_v8 = vpop.f32.mrb[2].mxu0 }
 0x106   : > { %v6599_v9 = vpop.f32.mrb[3].mxu0 }
 0x107   : > { %v6600_v10 = vadd.f32 %v6599_v9, %v6598_v8  ;;  %v699_v35 = vadd.f32 %v6597_v7, %v8168_v32 }
 0x109   : > { %v702_v39 = vadd.f32 %v6600_v10, %v8168_v32  ;;  %v825_v42 = vmax.f32 %v699_v35, 0.0 }
 0x10b   : > { %v6601_v12 = vpop.f32.mrb[4].mxu0  ;;  %v826_v45 = vmax.f32 %v702_v39, 0.0 }
 0x10c   : > { %v6602_v13 = vpop.f32.mrb[5].mxu0 }
 0x10d   : > { %v6603_v15 = vadd.f32 %v6602_v13, %v6601_v12  ;;  %v6604_v16 = vpop.f32.mrb[6].mxu0 }
 0x10e   : > { %v6605_v17 = vpop.f32.mrb[7].mxu0 }
 0x10f   : > { %v6606_v18 = vadd.f32 %v6605_v17, %v6604_v16  ;;  %v707_v50 = vadd.f32 %v6603_v15, %v8168_v32 }
 0x111   : > { %v710_v55 = vadd.f32 %v6606_v18, %v8168_v32  ;;  %v827_v58 = vmax.f32 %v707_v50, 0.0 }
 0x113   : > { %v6607_v20 = vpop.f32.mrb[8].mxu0  ;;  %v828_v61 = vmax.f32 %v710_v55, 0.0 }
 0x114   : > { %v6608_v21 = vpop.f32.mrb[9].mxu0 }
 0x115   : > { %v6609_v22 = vadd.f32 %v6608_v21, %v6607_v20  ;;  %v6610_v23 = vpop.f32.mrb[10].mxu0 }
 0x116   : > { %v6611_v24 = vpop.f32.mrb[11].mxu0 }
 0x117   : > { %v6612_v25 = vadd.f32 %v6611_v24, %v6610_v23  ;;  %v715_v2 = vadd.f32 %v6609_v22, %v8168_v32 }
 0x119   : > { %v718_v7 = vadd.f32 %v6612_v25, %v8168_v32  ;;  %v829_v10 = vmax.f32 %v715_v2, 0.0 }
 0x11b   : > { %v6613_v26 = vpop.f32.mrb[12].mxu0  ;;  %v830_v13 = vmax.f32 %v718_v7, 0.0  ;;  %v10312_v7 = vlaneseq }
 0x11c   : > { %v6614_v27 = vpop.f32.mrb[13].mxu0 }
 0x11d   : > { %v6615_v28 = vadd.f32 %v6614_v27, %v6613_v26  ;;  %v6616_v29 = vpop.f32.mrb[14].mxu0 }
 0x11e   : > { %v6617_v30 = vpop.f32.mrb[15].mxu0 }
 0x11f   : > { %v6618_v31 = vadd.f32 %v6617_v30, %v6616_v29  ;;  %v723_v20 = vadd.f32 %v6615_v28, %v8168_v32 }
 0x121   : > { %v726_v25 = vadd.f32 %v6618_v31, %v8168_v32  ;;  %v831_v29 = vmax.f32 %v723_v20, 0.0 }
 0x123   : > { %v6619_v33 = vpop.f32.mrb[16].mxu0 }
 0x124   : > { %v6620_v34 = vpop.f32.mrb[17].mxu0 }
 0x125   : > { %v6621_v36 = vadd.f32 %v6620_v34, %v6619_v33  ;;  %v6622_v37 = vpop.f32.mrb[18].mxu0  ;;  %v832_v34 = vmax.f32 %v726_v25, 0.0 }
 0x126   : > { %v6623_v38 = vpop.f32.mrb[19].mxu0 }
 0x127   : > { %v731_v40 = vadd.f32 %v6621_v36, %v8168_v32  ;;  %v6624_v41 = vadd.f32 %v6623_v38, %v6622_v37 }
 0x129   : > { %v833_v43 = vmax.f32 %v731_v40, 0.0  ;;  %v734_v44 = vadd.f32 %v6624_v41, %v8168_v32 }
 0x12b   : > { %v8174_v46 = vmax.f32 %v825_v42, %v833_v43  ;;  %v834_v47 = vmax.f32 %v734_v44, 0.0  ;;  %v6625_v48 = vpop.f32.mrb[20].mxu0 }
 0x12c   : > { %v6626_v49 = vpop.f32.mrb[21].mxu0 }
 0x12d   : > { %v8177_v51 = vmax.f32 %v826_v45, %v834_v47  ;;  %v6627_v52 = vadd.f32 %v6626_v49, %v6625_v48  ;;  %v6628_v53 = vpop.f32.mrb[22].mxu0 }
 0x12e   : > { %v6629_v54 = vpop.f32.mrb[23].mxu0 }
 0x12f   : > { %v739_v56 = vadd.f32 %v6627_v52, %v8168_v32  ;;  %v6630_v57 = vadd.f32 %v6629_v54, %v6628_v53 }
 0x131   : > { %v835_v59 = vmax.f32 %v739_v56, 0.0  ;;  %v742_v60 = vadd.f32 %v6630_v57, %v8168_v32 }
 0x133   : > { %v8182_v62 = vmax.f32 %v827_v58, %v835_v59  ;;  %v836_v63 = vmax.f32 %v742_v60, 0.0  ;;  %v6631_v0 = vpop.f32.mrb[24].mxu0 }
 0x134   : > { %v6632_v1 = vpop.f32.mrb[25].mxu0 }
 0x135   : > { %v8185_v3 = vmax.f32 %v828_v61, %v836_v63  ;;  %v6633_v4 = vadd.f32 %v6632_v1, %v6631_v0  ;;  %v6634_v5 = vpop.f32.mrb[26].mxu0  ;;  %v8208_v0 = vpop.permute.xlu1 %7760 }
 0x136   : > { %v6635_v6 = vpop.f32.mrb[27].mxu0 }
 0x137   : > { %v747_v8 = vadd.f32 %v6633_v4, %v8168_v32  ;;  %v6636_v9 = vadd.f32 %v6635_v6, %v6634_v5 }
 0x139   : > { %v837_v11 = vmax.f32 %v747_v8, 0.0  ;;  %v750_v12 = vadd.f32 %v6636_v9, %v8168_v32 }
 0x13b   : > { %v8190_v15 = vmax.f32 %v829_v10, %v837_v11  ;;  %v838_v16 = vmax.f32 %v750_v12, 0.0  ;;  %v6637_v17 = vpop.f32.mrb[28].mxu0 }
 0x13c   : > { %v6638_v18 = vpop.f32.mrb[29].mxu0 }
 0x13d   : > { %v8193_v21 = vmax.f32 %v830_v13, %v838_v16  ;;  %v6639_v22 = vadd.f32 %v6638_v18, %v6637_v17  ;;  %v6640_v23 = vpop.f32.mrb[30].mxu0  ;;  %v7766_v16 = vpop.permute.xlu1 %7765  ;;  %v8215_v17 = vand.u32 127, %v10312_v7 }
 0x13e   : > { %v6641_v24 = vpop.f32.mrb[31].mxu0  ;;  %v7767_v25 = vunpack.i.l.bf16 %v7766_v16 }
 0x13f   : > { %v755_v26 = vadd.f32 %v6639_v22, %v8168_v32  ;;  %v6642_v27 = vadd.f32 %v6641_v24, %v6640_v23  ;;  %vm883_vm1 = vcmp.eq.s32.totalorder %v8215_v17, 63 }
 0x141   : > { %v839_v30 = vmax.f32 %v755_v26, 0.0  ;;  %v758_v33 = vadd.f32 %v6642_v27, %v8168_v32 }
 0x143   : > { %v8198_v35 = vmax.f32 %v831_v29, %v839_v30  ;;  %v840_v36 = vmax.f32 %v758_v33, 0.0  ;;  %v6643_v37 = vpop.f32.mrb[32].mxu0  ;;  %v7768_v30 = vunpack.i.h.bf16 %v7766_v16 }
 0x144   : > { %v6644_v28 = vpop.f32.mrb[33].mxu0 }
 0x145   : > { %v8200_v38 = vmax.f32 %v832_v34, %v840_v36  ;;  %v6645_v39 = vadd.f32 %v6644_v28, %v6643_v37  ;;  %v6646_v40 = vpop.f32.mrb[34].mxu0 }
 0x146   : > { %v6647_v41 = vpop.f32.mrb[35].mxu0 }
 0x147   : > { %v6648_v42 = vadd.f32 %v6647_v41, %v6646_v40  ;;  %v763_v2 = vadd.f32 %v6645_v39, %v8168_v32 }
 0x149   : > { %v766_v8 = vadd.f32 %v6648_v42, %v8168_v32  ;;  %v841_v11 = vmax.f32 %v763_v2, 0.0 }
 0x14b   : > { %v6649_v31 = vpop.f32.mrb[36].mxu0  ;;  %v842_v18 = vmax.f32 %v766_v8, 0.0 }
 0x14c   : > { %v6650_v43 = vpop.f32.mrb[37].mxu0 }
 0x14d   : > { %v6651_v44 = vadd.f32 %v6650_v43, %v6649_v31  ;;  %v6652_v45 = vpop.f32.mrb[38].mxu0 }
 0x14e   : > { %v6653_v47 = vpop.f32.mrb[39].mxu0 }
 0x14f   : > { %v6654_v48 = vadd.f32 %v6653_v47, %v6652_v45  ;;  %v771_v24 = vadd.f32 %v6651_v44, %v8168_v32  ;;  %v7750_v45 = vpop.permute.xlu0 %7749 }
 0x151   : > { %v774_v37 = vadd.f32 %v6654_v48, %v8168_v32  ;;  %v843_v41 = vmax.f32 %v771_v24, 0.0 }
 0x153   : > { %v6655_v49 = vpop.f32.mrb[40].mxu0  ;;  %v844_v47 = vmax.f32 %v774_v37, 0.0 }
 0x154   : > { %v6656_v50 = vpop.f32.mrb[41].mxu0 }
 0x155   : > { %v6657_v52 = vadd.f32 %v6656_v50, %v6655_v49  ;;  %v6658_v53 = vpop.f32.mrb[42].mxu0  ;;  %v8228_v50 = vld [vmem:[#allocation2] sm:$0xff] }
 0x156   : > { %v6659_v54 = vpop.f32.mrb[43].mxu0 }
 0x157   : > { %v8202_v55 = vadd.f32 %v6659_v54, %v6658_v53  ;;  %v779_v53 = vadd.f32 %v6657_v52, %v8168_v32 }
 0x159   : > { %v782_v52 = vadd.f32 %v8202_v55, %v8168_v32  ;;  %v1018_v55 = vshrl.u32 %v8228_v50, 16 }
 0x15b   : > { %v6661_v56 = vpop.f32.mrb[44].mxu0 }
 0x15c   : > { %v6662_v57 = vpop.f32.mrb[45].mxu0 }
 0x15d   : > { %v8204_v58 = vadd.f32 %v6662_v57, %v6661_v56  ;;  %v6664_v59 = vpop.f32.mrb[46].mxu0  ;;  %v7752_v57 = vunpack.i.h.bf16 %v7750_v45 }
 0x15e   : > { %v6665_v60 = vpop.f32.mrb[47].mxu0 }
 0x15f   : > { %v8206_v61 = vadd.f32 %v6665_v60, %v6664_v59 }
 0x163   : > { %v6667_v63 = vpop.f32.mrb[48].mxu0 }
 0x164   : > { %v6668_v1 = vpop.f32.mrb[49].mxu0 }
 0x165   : > { %v6669_v4 = vadd.f32 %v6668_v1, %v6667_v63  ;;  %v6670_v5 = vpop.f32.mrb[50].mxu0  ;;  %v7751_v1 = vunpack.i.l.bf16 %v7750_v45 }
 0x166   : > { %v6671_v6 = vpop.f32.mrb[51].mxu0 }
 0x167   : > { %v795_v9 = vadd.f32 %v6669_v4, %v8168_v32  ;;  %v6672_v10 = vadd.f32 %v6671_v6, %v6670_v5  ;;  %v1020_v6 = vshll.u32 %v8228_v50, 16 }
 0x169   : > { %v849_v12 = vmax.f32 %v795_v9, 0.0  ;;  %v798_v13 = vadd.f32 %v6672_v10, %v8168_v32  ;;  %v845_v10 = vmax.f32 %v779_v53, 0.0 }
 0x16b   : > { %v865_v20 = vmax.f32 %v841_v11, %v849_v12  ;;  %v850_v22 = vmax.f32 %v798_v13, 0.0  ;;  %v6673_v23 = vpop.f32.mrb[52].mxu0 }
 0x16c   : > { %v6674_v26 = vpop.f32.mrb[53].mxu0 }
 0x16d   : > { %v873_v27 = vmax.f32 %v8174_v46, %v865_v20  ;;  %v866_v29 = vmax.f32 %v842_v18, %v850_v22  ;;  %v6675_v33 = vadd.f32 %v6674_v26, %v6673_v23  ;;  %v6676_v34 = vpop.f32.mrb[54].mxu0  ;;  %v7755_v18 = vpop.permute.xlu0 %7754  ;;  %v846_v22 = vmax.f32 %v782_v52, 0.0 }
 0x16e   : > { %v6677_v36 = vpop.f32.mrb[55].mxu0  ;;  %v787_v26 = vadd.f32 %v8204_v58, %v8168_v32  ;;  %v7756_v37 = vunpack.i.l.bf16 %v7755_v18  ;;  %v7762_v52 = vunpack.i.l.bf16 %v8208_v0 }
 0x16f   : > { %v874_v28 = vmax.f32 %v8177_v51, %v866_v29  ;;  %v803_v39 = vadd.f32 %v6675_v33, %v8168_v32  ;;  %v6678_v40 = vadd.f32 %v6677_v36, %v6676_v34  ;;  %v932_v42 = vsel %vm883_vm1, %v7767_v25, %v873_v27 }
 0x171   : > { %v933_v46 = vsel %vm883_vm1, %v7768_v30, %v874_v28  ;;  %v851_v31 = vmax.f32 %v803_v39, 0.0  ;;  %v806_v43 = vadd.f32 %v6678_v40, %v8168_v32  ;;  %v7757_v30 = vunpack.i.h.bf16 %v7755_v18 }
 0x172   : > { %v951_v44 = vpack.c.bf16 %v933_v46, %v932_v42 }
 0x173   : > { %v867_v51 = vmax.f32 %v843_v41, %v851_v31  ;;  %v852_v48 = vmax.f32 %v806_v43, 0.0  ;;  %v6679_v49 = vpop.f32.mrb[56].mxu0  ;;  %v790_v31 = vadd.f32 %v8206_v61, %v8168_v32 }
 0x174   : > { %v956_v54 = vrot.slane %v951_v44, 3  ;;  %v962_v56 = vrot.slane %v951_v44, 1  ;;  %v6680_v59 = vpop.f32.mrb[57].mxu0 }
 0x175   : > { %v875_v60 = vmax.f32 %v8182_v62, %v867_v51  ;;  %v868_v63 = vmax.f32 %v844_v47, %v852_v48  ;;  %v6681_v2 = vadd.f32 %v6680_v59, %v6679_v49  ;;  %v6682_v4 = vpop.f32.mrb[58].mxu0  ;;  %v847_v47 = vmax.f32 %v787_v26, 0.0 }
 0x176   : > { %959 = vst.msk [vmem:[#allocation2 + $0x8] sm:$0xe0] %vm958_vm2, %v956_v54  ;;  %v6683_v5 = vpop.f32.mrb[59].mxu0 }
 0x177   : > { %961 = vst.msk [vmem:[#allocation2 + $0x10] sm:$0x1] %vm960_vm3, %v956_v54  ;;  %v876_v8 = vmax.f32 %v8185_v3, %v868_v63  ;;  %v811_v62 = vadd.f32 %v6681_v2, %v8168_v32  ;;  %v6684_v9 = vadd.f32 %v6683_v5, %v6682_v4  ;;  %v934_v11 = vsel %vm883_vm1, %v7751_v1, %v875_v60  ;;  %v7845_v2 = vld [vmem:[%s10307_s4 + $0x8] sm:$0xff]  }
 0x178   : > { %965 = vst.msk [vmem:[#allocation2 + $0x10] sm:$0x78] %vm964_vm4, %v962_v56  ;;  %v1022_v3 = vrot.slane %v1020_v6, 1  ;;  %v848_v60 = vmax.f32 %v790_v31, 0.0  ;;  %v7763_v6 = vunpack.i.h.bf16 %v8208_v0 }
 0x179   : > { %v935_v12 = vsel %vm883_vm1, %v7752_v57, %v876_v8  ;;  %v853_v13 = vmax.f32 %v811_v62, 0.0  ;;  %v814_v16 = vadd.f32 %v6684_v9, %v8168_v32 }
 0x17a   : > { %v952_v20 = vpack.c.bf16 %v935_v12, %v934_v11  ;;  %v1023_v42 = vor.u32 %v1022_v3, %v1018_v55  ;;  %v7847_v11 = vld [vmem:[%s10307_s4 + $0x10] sm:$0xff]   ;;  %v7842_v3 = vld [vmem:[%s10307_s4 + $0x148] sm:$0xff]  }
 0x17b   : > { %v869_v23 = vmax.f32 %v845_v10, %v853_v13  ;;  %v854_v24 = vmax.f32 %v814_v16, 0.0  ;;  %v6685_v25 = vpop.f32.mrb[60].mxu0 }
 0x17c   : > { %v967_v27 = vrot.slane %v952_v20, 7  ;;  %v971_v29 = vrot.slane %v952_v20, 5  ;;  %v6686_v33 = vpop.f32.mrb[61].mxu0 }
 0x17d   : > { %v877_v34 = vmax.f32 %v8190_v15, %v869_v23  ;;  %v870_v36 = vmax.f32 %v846_v22, %v854_v24  ;;  %v6687_v28 = vadd.f32 %v6686_v33, %v6685_v25  ;;  %v6688_v39 = vpop.f32.mrb[62].mxu0  ;;  %v8249_v40 = vld [vmem:[#allocation2 + $0x8] sm:$0xff]  ;;  %v7849_v22 = vld [vmem:[%s10307_s4 + $0x18] sm:$0xff]  }
 0x17e   : > { %970 = vst.msk [vmem:[#allocation2 + $0x18] sm:$0x1e] %vm969_vm5, %v967_v27  ;;  %v6689_v58 = vpop.f32.mrb[63].mxu0  ;;  %v8257_v46 = vshll.u32 %v8249_v40, 16  ;;  %v8268_v48 = vshrl.u32 %v8249_v40, 16 }
 0x17f   : > { %v8251_v41 = vld [vmem:[#allocation2 + $0x10] sm:$0xff]  ;;  %974 = vst.msk [vmem:[#allocation2 + $0x18] sm:$0x80] %vm973_vm6, %v971_v29  ;;  %v878_v43 = vmax.f32 %v8193_v21, %v870_v36  ;;  %v819_v44 = vadd.f32 %v6687_v28, %v8168_v32  ;;  %v6690_v45 = vadd.f32 %v6689_v58, %v6688_v39  ;;  %v936_v49 = vsel %vm883_vm1, %v7756_v37, %v877_v34  ;;  %v8337_v27 = vld [vmem:[#allocation2 + $0x8] sm:$0xf0] }
 0x180   : > { %976 = vst.msk [vmem:[#allocation2 + $0x20] sm:$0x7] %vm975_vm7, %v971_v29  ;;  %v8260_v15 = vshll.u32 %v8251_v41, 16  ;;  %v1027_v51 = vrot.slane %v8257_v46, 1  ;;  %v8295_v10 = vshrl.u32 %v8251_v41, 16  ;;  %v7844_v34 = vld [vmem:[%s10307_s4 + $0x150] sm:$0xff]  }
 0x181   : > { %v937_v53 = vsel %vm883_vm1, %v7757_v30, %v878_v43  ;;  %v855_v54 = vmax.f32 %v819_v44, 0.0  ;;  %v822_v61 = vadd.f32 %v6690_v45, %v8168_v32  ;;  %v8350_v36 = vld [vmem:[#allocation2 + $0x30] sm:$0x1]  ;;  %v2641_v37 = vrot.slane %v8337_v27, 4  ;;  %v7846_v44 = vld [vmem:[%s10307_s4 + $0x158] sm:$0xff]  }
 0x182   : > { %v953_v56 = vpack.c.bf16 %v937_v53, %v936_v49  ;;  %v1028_v21 = vsel %vm1016_vm8, %v1023_v42, %v1027_v51  ;;  %v1031_v57 = vor.u32 %v8268_v48, %v1027_v51  ;;  %v1035_v59 = vrot.slane %v8260_v15, 1 }
 0x183   : > { %v871_v63 = vmax.f32 %v847_v47, %v855_v54  ;;  %v856_v1 = vmax.f32 %v822_v61, 0.0  ;;  %6949 = vmatprep.mubr.msk.bf16.mxu0 %vm940_vm0, %v1028_v21  ;;  %v1065_v28 = vshll.u32 %v8350_v36, 16  ;;  %v2642_v31 = vrot.slane %v8251_v41, 4  ;;  %v7848_v21 = vld [vmem:[%s10307_s4 + $0x160] sm:$0xff]  }
 0x184   : > { %v978_v4 = vrot.slane %v953_v56, 3  ;;  %v982_v5 = vrot.slane %v953_v56, 1  ;;  %v1036_v32 = vsel %vm1016_vm8, %v1031_v57, %v1035_v59  ;;  %v1039_v12 = vor.u32 %v8295_v10, %v1035_v59 }
 0x185   : > { %v879_v8 = vmax.f32 %v8198_v35, %v871_v63  ;;  %v872_v62 = vmax.f32 %v848_v60, %v856_v1  ;;  %6950 = vmatmul.mubr.msk.bf16.vlgmr.msra.gmra.mrb[64].mxu0 %vm940_vm0, %v1036_v32  ;;  %v2643_v49 = vsel %vm2640_vm9, %v2641_v37, %v2642_v31  ;;  %v1067_v54 = vrot.slane %v1065_v28, 1  ;;  %v7850_v1 = vld [vmem:[%s10307_s4 + $0x168] sm:$0xff]   ;;  %v7855_v37 = vld [vmem:[%s10307_s4 + $0x50] sm:$0xff]  }
 0x186   : > { %v8287_v9 = vld [vmem:[#allocation2 + $0x18] sm:$0xff]  ;;  %980 = vst.msk [vmem:[#allocation2 + $0x20] sm:$0xe0] %vm958_vm2, %v978_v4  ;;  %6962 = vmatpush3.bf16.msra.mxu0 %v8162_v19  ;;  %vm3007_vm2 = vcmask 1042432  }
 0x187   : > { %981 = vst.msk [vmem:[#allocation2 + $0x28] sm:$0x1] %vm960_vm3, %v978_v4  ;;  %7133 = vmatprep.mubr.msk.bf16.mxu1 %vm940_vm0, %v8287_v9  ;;  %v8298_v0 = vshll.u32 %v8287_v9, 16  ;;  %v880_v35 = vmax.f32 %v8200_v38, %v872_v62  ;;  %6963 = vmatprep.subr.bf16.mxu0 %v7845_v2  ;;  %v938_v16 = vsel %vm883_vm1, %v7762_v52, %v879_v8  ;;  %v8329_v24 = vshrl.u32 %v8287_v9, 16  ;;  %v7851_v8 = vld [vmem:[%s10307_s4 + $0x170] sm:$0xff]  }
 0x188   : > { %984 = vst.msk [vmem:[#allocation2 + $0x28] sm:$0x78] %vm964_vm4, %v982_v5  ;;  %v2644_v57 = vrot.slane %v8287_v9, 4  ;;  %v2800_v62 = vshrl.u32 %v8337_v27, 16  ;;  %vm2170_vm3 = vcmask 1040384  }
 0x189   : > { %v1043_v13 = vrot.slane %v8298_v0, 1  ;;  %v939_v18 = vsel %vm883_vm1, %v7763_v6, %v880_v35  ;;  %vm1986_vm1 = vsmask.f32 1280  ;;  %v1500_v7 = vrot.slane %v8329_v24, 1 }
 0x18a   : > { %v954_v20 = vpack.c.bf16 %v939_v18, %v938_v16  ;;  %6964 = vmatpush3.bf16.msra.mxu0 %v7845_v2  ;;  %v2645_v5 = vsel %vm2640_vm9, %v2642_v31, %v2644_v57  ;;  %v7853_v16 = vld [vmem:[%s10307_s4 + $0x48] sm:$0xff]   ;;  %vm2328_vm4 = vsmask.f32 256 }
 0x18b   : > { %v1044_v19 = vsel %vm1016_vm8, %v1039_v12, %v1043_v13  ;;  %6965 = vmatprep.subr.bf16.mxu0 %v7847_v11  ;;  %v1047_v29 = vor.u32 %v8329_v24, %v1043_v13 }
 0x18c   : > { %6953 = vmatprep.mubr.msk.bf16.mxu0 %vm940_vm0, %v1044_v19  ;;  %v986_v38 = vrot.slane %v954_v20, 7  ;;  %v989_v55 = vrot.slane %v954_v20, 5  ;;  %v7854_v20 = vld [vmem:[%s10307_s4 + $0x178] sm:$0xff]   ;;  %v2802_v19 = vrot.slane %v2800_v62, 4 }
 0x18d   : > { %v8319_v23 = vld [vmem:[#allocation2 + $0x20] sm:$0xff] }
 0x18e   : > { %988 = vst.msk [vmem:[#allocation2 + $0x30] sm:$0x1e] %vm969_vm5, %v986_v38  ;;  %7134 = vmatmul.mubr.msk.bf16.vlgmr.msra.gmra.mrb[0].mxu1 %vm940_vm0, %v8319_v23  ;;  %v8332_v25 = vshll.u32 %v8319_v23, 16  ;;  %6966 = vmatpush3.bf16.msra.mxu0 %v7847_v11  ;;  %v8345_v33 = vshrl.u32 %v8319_v23, 16  ;;  %v2646_v63 = vrot.slane %v8319_v23, 4  ;;  %v2803_v11 = vshll.u32 %v8337_v27, 16 }
 0x18f   : > { %v8321_v17 = vld [vmem:[#allocation2 + $0x28] sm:$0xff]  ;;  %991 = vst.msk [vmem:[#allocation2 + $0x30] sm:$0x80] %vm973_vm6, %v989_v55  ;;  %7142 = vmatpush3.bf16.msra.mxu1 %v8156_v14  ;;  %6967 = vmatprep.subr.bf16.mxu0 %v7849_v22  ;;  %v8355_v14 = vld [vmem:[%s10307_s4 + $0x40] sm:$0xff]   ;;  %v2810_v27 = vrot.slane %v8295_v10, 4  ;;  %vm3885_vm6 = vcmask 1044480  }
 0x190   : > { %992 = vst.msk [vmem:[#allocation2 + $0x38] sm:$0x7] %vm975_vm7, %v989_v55  ;;  %v8335_v26 = vshll.u32 %v8321_v17, 16  ;;  %7137 = vmatprep.mubr.msk.bf16.mxu1 %vm940_vm0, %v8321_v17  ;;  %7143 = vmatprep.subr.bf16.mxu1 %v7842_v3  ;;  %v1051_v30 = vrot.slane %v8332_v25, 1  ;;  %v8369_v45 = vshrl.u32 %v8321_v17, 16  ;;  %v1504_v2 = vrot.slane %v8345_v33, 1 }
 0x191   : > { %v1505_v4 = vrot.slane %v8332_v25, 2  ;;  %v2647_v32 = vsel %vm2640_vm9, %v2644_v57, %v2646_v63  ;;  %v2648_v35 = vrot.slane %v8321_v17, 4  ;;  %v3182_v38 = vrot.slane %v8345_v33, 5 }
 0x192   : > { %v1052_v39 = vsel %vm1016_vm8, %v1047_v29, %v1051_v30  ;;  %v1055_v58 = vor.u32 %v8345_v33, %v1051_v30  ;;  %v1059_v42 = vrot.slane %v8335_v26, 1  ;;  %6968 = vmatpush3.bf16.msra.mxu0 %v7849_v22  ;;  %v1508_v52 = vrot.slane %v8369_v45, 1 }
 0x193   : > { %7144 = vmatpush3.bf16.msra.mxu1 %v7842_v3  ;;  %6954 = vmatmul.mubr.msk.bf16.gmra.mrb[68].mxu0 %vm940_vm0, %v1052_v39  ;;  %v8407_v6 = vor.u32 %v1505_v4, %v1504_v2  ;;  %v3183_v55 = vrot.slane %v8332_v25, 6  ;;  %v2649_v3 = vsel %vm2640_vm9, %v2646_v63, %v2648_v35  ;;  %v2805_v22 = vrot.slane %v2803_v11, 5  ;;  %v8484_v63 = vld [vmem:[#allocation2] sm:$0xfe] }
 0x194   : > { %v1060_v43 = vsel %vm1016_vm8, %v1055_v58, %v1059_v42  ;;  %7145 = vmatprep.subr.bf16.mxu1 %v7844_v34  ;;  %6981 = vmatprep.subr.bf16.mxu0 %v8355_v14  ;;  %v1063_v53 = vor.u32 %v8369_v45, %v1059_v42  ;;  %v2813_v29 = vrot.slane %v8260_v15, 5  ;;  %v3186_v39 = vrot.slane %v8369_v45, 5  ;;  %v8455_v58 = vld [vmem:[%s10307_s4 + $0x180] sm:$0xff]  }
 0x195   : > { %6957 = vmatprep.mubr.msk.bf16.mxu0 %vm940_vm0, %v1060_v43  ;;  %v8447_v28 = vor.u32 %v3183_v55, %v3182_v38  ;;  %v10318_v43 = vrot.slane %v8287_v9, 2  ;;  %v2822_v2 = vrot.slane %v8298_v0, 5  ;;  %v2828_v4 = vrot.slane %v8345_v33, 4 }
 0x196   : > { %v8373_v47 = vld [vmem:[#allocation2 + $0x30] sm:$0xff]  ;;  %v1068_v60 = vsel %vm1016_vm8, %v1063_v53, %v1067_v54  ;;  %v2806_v53 = vor.u32 %v2805_v22, %v2802_v19  ;;  %v2814_v54 = vor.u32 %v2813_v29, %v2810_v27  ;;  %v1329_v29 = vrot.slane %v8251_v41, 1 }
 0x197   : > { %v8376_v51 = vshrl.u32 %v8373_v47, 16  ;;  %7138 = vmatmul.mubr.msk.bf16.gmra.mrb[4].mxu1 %vm940_vm0, %v8373_v47  ;;  %v8385_v56 = vshll.u32 %v8373_v47, 16  ;;  %v2650_v13 = vrot.slane %v8373_v47, 4  ;;  %v10315_v11 = vrot.slane %v8373_v47, 6 }
 0x198   : > { %7146 = vmatpush3.bf16.msra.mxu1 %v7844_v34  ;;  %7149 = vmatprep.mubr.msk.bf16.mxu1 %vm940_vm0, %v2643_v49  ;;  %v2624_v34 = vld [vmem:[#allocation2 + $0x38] sm:$0xf]  ;;  %v10317_v49 = vrot.slane %v8321_v17, 2  ;;  %v2815_v62 = vsel %vm2798_vm13, %v2806_v53, %v2814_v54  ;;  %vm3676_vm5 = vsmask.f32 5376 }
 0x199   : > { %v2351_v61 = vrot.slane %v8376_v51, 7  ;;  %7147 = vmatprep.subr.bf16.mxu1 %v7846_v44  ;;  %v2651_v30 = vsel %vm2640_vm9, %v2648_v35, %v2650_v13  ;;  %v2652_v31 = vrot.slane %v2624_v34, 4  ;;  %v7860_v35 = vld [vmem:[%s10307_s4 + $0x60] sm:$0xff]   ;;  %v8537_v53 = vld [vmem:[#allocation2 + $0x38] sm:$0x1f] }
 0x19a   : > { %vm4043_vm7 = vsmask.f32 4352 }
 0x19b   : > { %v8392_v59 = vor.u32 %v8385_v56, %v2351_v61  ;;  %6958 = vmatmul.mubr.msk.bf16.gmra.mrb[72].mxu0 %vm940_vm0, %v1068_v60  ;;  %v7857_v61 = vld [vmem:[%s10307_s4 + $0x58] sm:$0xff]  }
 0x19c   : > { %7148 = vmatpush3.bf16.msra.mxu1 %v7846_v44  ;;  %6969 = vmatprep.mubr.msk.bf16.mxu0 %vm940_vm0, %v8228_v50  ;;  %v1509_v50 = vrot.slane %v8335_v26, 2  ;;  %v1675_v44 = vrot.slane %v8319_v23, 2 }
 0x19d   : > { %7161 = vmatprep.subr.bf16.mxu1 %v7848_v21 }
 0x19e   : > { %v8418_v12 = vor.u32 %v1509_v50, %v1508_v52  ;;  %v8475_v57 = vsel %vm1667_vm12, %v10318_v43, %v1675_v44  ;;  %v8480_v60 = vsel %vm1667_vm12, %v1675_v44, %v10317_v49  ;;  %v10316_v52 = vrot.slane %v8287_v9, 6 }
 0x19f   : > { %7150 = vmatmul.mubr.msk.bf16.vlgmr.msra.gmra.mrb[8].mxu1 %vm940_vm0, %v2645_v5  ;;  %v2831_v5 = vrot.slane %v8332_v25, 5  ;;  %v3354_v50 = vrot.slane %v8319_v23, 6  ;;  %v2849_v44 = vrot.slane %v8385_v56, 5 }
 0x1a0   : > { %7162 = vmatpush3.bf16.msra.mxu1 %v7848_v21  ;;  %7153 = vmatprep.mubr.msk.bf16.mxu1 %vm940_vm0, %v2647_v32  ;;  %v8429_v18 = vsel %vm1483_vm10, %v8407_v6, %v8418_v12  ;;  %v2653_v32 = vsel %vm2640_vm9, %v2650_v13, %v2652_v31  ;;  %v1326_v13 = vrot.slane %v8484_v63, 1  ;;  %v2846_v31 = vrot.slane %v8376_v51, 4 }
 0x1a1   : > { %7163 = vmatprep.subr.bf16.mxu1 %v7850_v1 }
 0x1a3   : > { %6970 = vmatmul.mubr.msk.bf16.vlgmr.msra.gmra.mrb[64].mxu0 %vm940_vm0, %v8249_v40 }
 0x1a4   : > { %7164 = vmatpush3.bf16.msra.mxu1 %v7850_v1  ;;  %6973 = vmatprep.mubr.msk.bf16.mxu0 %vm940_vm0, %v8251_v41  ;;  %v2819_v1 = vrot.slane %v8329_v24, 4 }
 0x1a5   : > { %7165 = vmatprep.subr.bf16.mxu1 %v7851_v8  ;;  %6982 = vmatpush3.bf16.msra.mxu0 %v8355_v14  ;;  %v3187_v14 = vrot.slane %v8335_v26, 6 }
 0x1a6   : > { %6983 = vmatprep.subr.bf16.mxu0 %v7853_v16  ;;  %v2823_v38 = vor.u32 %v2822_v2, %v2819_v1  ;;  %v1331_v1 = vrot.slane %v8287_v9, 1  ;;  %v2012_v2 = vrot.slane %v8335_v26, 7 }
 0x1a7   : > { %7154 = vmatmul.mubr.msk.bf16.gmra.mrb[0].mxu1 %vm940_vm0, %v2649_v3  ;;  %v8457_v42 = vor.u32 %v3187_v14, %v3186_v39  ;;  %v2832_v3 = vor.u32 %v2831_v5, %v2828_v4  ;;  %v2840_v39 = vrot.slane %v8335_v26, 5  ;;  %v2007_v14 = vrot.slane %v8345_v33, 6  ;;  %v7859_v4 = vld [vmem:[%s10307_s4 + $0x190] sm:$0xff]  }
 0x1a8   : > { %7157 = vmatprep.mubr.msk.bf16.mxu1 %vm940_vm0, %v2651_v30  ;;  %7166 = vmatpush3.bf16.msra.mxu1 %v7851_v8  ;;  %v8495_v8 = vrot.slane %v8321_v17, 6  ;;  %v2824_v27 = vsel %vm2798_vm13, %v2814_v54, %v2823_v38  ;;  %v7858_v30 = vld [vmem:[%s10307_s4 + $0x188] sm:$0xff]   ;;  %v2008_v54 = vrot.slane %v8332_v25, 7 }
 0x1a9   : > { %7167 = vmatprep.subr.bf16.mxu1 %v7854_v20  ;;  %6984 = vmatpush3.bf16.msra.mxu0 %v7853_v16  ;;  %v8468_v21 = vsel %vm3165_vm11, %v8447_v28, %v8457_v42  ;;  %v1327_v16 = vrot.slane %v8249_v40, 1  ;;  %v2833_v34 = vsel %vm2798_vm13, %v2823_v38, %v2832_v3  ;;  %v2850_v38 = vor.u32 %v2849_v44, %v2846_v31 }
 0x1aa   : > { %6985 = vmatprep.subr.bf16.mxu0 %v7855_v37  ;;  %v8513_v19 = vsel %vm1828_vm14, %v3354_v50, %v8495_v8  ;;  %v8519_v55 = vsel %vm1828_vm14, %v8495_v8, %v10315_v11  ;;  %v8548_v5 = vor.u32 %v2008_v54, %v2007_v14  ;;  %v1333_v44 = vrot.slane %v8319_v23, 1  ;;  %v8575_v54 = vld [vmem:[#allocation2 + $0x8] sm:$0xe0] }
 0x1ab   : > { %6974 = vmatmul.mubr.msk.bf16.gmra.mrb[68].mxu0 %vm940_vm0, %v8287_v9  ;;  %v1328_v22 = vsel %vm1325_vm15, %v1326_v13, %v1327_v16 }
 0x1ac   : > { %7168 = vmatpush3.bf16.msra.mxu1 %v7854_v20  ;;  %6977 = vmatprep.mubr.msk.bf16.mxu0 %vm940_vm0, %v8319_v23  ;;  %v8509_v20 = vsel %vm1828_vm14, %v10316_v52, %v3354_v50  ;;  %10366 = vst [vmem:[#allocation5_spill] sm:$0xff] %v8548_v5  ;;  %v2853_v50 = vshrl.u32 %v8537_v53, 16 }
 0x1ad   : > { %7181 = vmatprep.subr.bf16.mxu1 %v8455_v58  ;;  %6986 = vmatpush3.bf16.msra.mxu0 %v7855_v37  ;;  %v2837_v37 = vrot.slane %v8369_v45, 4 }
 0x1ae   : > { %6987 = vmatprep.subr.bf16.mxu0 %v7857_v61  ;;  %v2855_v14 = vrot.slane %v2853_v50, 4 }
 0x1af   : > { %7158 = vmatmul.mubr.msk.bf16.gmra.mrb[4].mxu1 %vm940_vm0, %v2653_v32  ;;  %v2841_v32 = vor.u32 %v2840_v39, %v2837_v37  ;;  %v1485_v37 = vshrl.u32 %v8484_v63, 16 }
 0x1b0   : > { %7169 = vmatprep.mubr.msk.bf16.mxu1 %vm940_vm0, %v2815_v62  ;;  %v2856_v62 = vshll.u32 %v8537_v53, 16 }
 0x1b1   : > { %6988 = vmatpush3.bf16.msra.mxu0 %v7857_v61  ;;  %v2011_v61 = vrot.slane %v8369_v45, 6  ;;  %v2842_v39 = vsel %vm2798_vm13, %v2832_v3, %v2841_v32  ;;  %v2851_v31 = vsel %vm2798_vm13, %v2841_v32, %v2850_v38  ;;  %v1487_v32 = vrot.slane %v1485_v37, 1 }
 0x1b2   : > { %7001 = vmatprep.subr.bf16.mxu0 %v7860_v35 }
 0x1b3   : > { %6978 = vmatmul.mubr.msk.bf16.gmra.mrb[72].mxu0 %vm940_vm0, %v8321_v17  ;;  %v8552_v13 = vor.u32 %v2012_v2, %v2011_v61  ;;  %v7863_v61 = vld [vmem:[%s10307_s4 + $0x70] sm:$0xff]   ;;  %v3008_v2 = vrot.slane %v8575_v54, 5 }
 0x1b4   : > { %6989 = vmatprep.mubr.msk.bf16.mxu0 %vm940_vm0, %v1328_v22  ;;  %v7861_v22 = vld [vmem:[%s10307_s4 + $0x68] sm:$0xff]  }
 0x1b5   : > { %10367 = vst [vmem:[#allocation6_spill] sm:$0xff] %v8552_v13 }
 0x1b7   : > { %7170 = vmatmul.mubr.msk.bf16.vlgmr.msra.gmra.mrb[8].mxu1 %vm940_vm0, %v2824_v27  ;;  %v1332_v27 = vsel %vm1325_vm15, %v1329_v29, %v1331_v1 }
 0x1b8   : > { %7182 = vmatpush3.bf16.msra.mxu1 %v8455_v58  ;;  %7173 = vmatprep.mubr.msk.bf16.mxu1 %vm940_vm0, %v2833_v34  ;;  %v1330_v58 = vsel %vm1325_vm15, %v1327_v16, %v1329_v29  ;;  %v8563_v34 = vsel %vm1986_vm1, %v8548_v5, %v8552_v13  ;;  %v7862_v16 = vld [vmem:[%s10307_s4 + $0x198] sm:$0xff]   ;;  %v2858_v29 = vrot.slane %v2856_v62, 5  ;;  %v1334_v62 = vsel %vm1325_vm15, %v1331_v1, %v1333_v44 }
 0x1b9   : > { %7183 = vmatprep.subr.bf16.mxu1 %v7858_v30  ;;  %10368 = vst [vmem:[#allocation7_spill] sm:$0xff] %v8563_v34  ;;  %v1493_v1 = vrot.slane %v8257_v46, 2  ;;  %v7873_v5 = vld [vmem:[%s10307_s4 + $0x98] sm:$0xff]  }
 0x1ba   : > { %v2859_v3 = vor.u32 %v2858_v29, %v2855_v14  ;;  %v10313_v29 = vrot.slane %v8321_v17, 7 }
 0x1bb   : > { %6990 = vmatmul.mubr.msk.bf16.vlgmr.msra.gmra.mrb[64].mxu0 %vm940_vm0, %v1330_v58  ;;  %v3009_v58 = vrot.slane %v8251_v41, 5 }
 0x1bc   : > { %7184 = vmatpush3.bf16.msra.mxu1 %v7858_v30  ;;  %6993 = vmatprep.mubr.msk.bf16.mxu0 %vm940_vm0, %v1332_v27  ;;  %v1488_v30 = vshll.u32 %v8484_v63, 16  ;;  %v7864_v63 = vld [vmem:[%s10307_s4 + $0x1a0] sm:$0xff]   ;;  %v10314_v27 = vrot.slane %v8287_v9, 7 }
 0x1bd   : > { %7185 = vmatprep.subr.bf16.mxu1 %v7859_v4  ;;  %7002 = vmatpush3.bf16.msra.mxu0 %v7860_v35  ;;  %v1335_v35 = vrot.slane %v8321_v17, 1 }
 0x1be   : > { %7003 = vmatprep.subr.bf16.mxu0 %v7861_v22  ;;  %v1490_v50 = vrot.slane %v1488_v30, 2  ;;  %v2860_v30 = vsel %vm2798_vm13, %v2850_v38, %v2859_v3 }
 0x1bf   : > { %7174 = vmatmul.mubr.msk.bf16.gmra.mrb[0].mxu1 %vm940_vm0, %v2842_v39  ;;  %v2178_v39 = vrot.slane %v8319_v23, 7  ;;  %v1336_v14 = vsel %vm1325_vm15, %v1333_v44, %v1335_v35  ;;  %v7868_v44 = vld [vmem:[%s10307_s4 + $0x80] sm:$0xff]  }
 0x1c0   : > { %7177 = vmatprep.mubr.msk.bf16.mxu1 %vm940_vm0, %v2851_v31  ;;  %7186 = vmatpush3.bf16.msra.mxu1 %v7859_v4  ;;  %v7865_v4 = vld [vmem:[%s10307_s4 + $0x78] sm:$0xff]   ;;  %v1337_v31 = vrot.slane %v8350_v36, 1  ;;  %v1491_v38 = vor.u32 %v1490_v50, %v1487_v32  ;;  %v3011_v36 = vrot.slane %v8287_v9, 5  ;;  %v2345_v32 = vrot.slane %v8369_v45, 7 }
 0x1c1   : > { %7187 = vmatprep.subr.bf16.mxu1 %v7862_v16  ;;  %7004 = vmatpush3.bf16.msra.mxu0 %v7861_v22  ;;  %v1492_v22 = vrot.slane %v8268_v48, 1  ;;  %v8601_v37 = vsel %vm2170_vm3, %v10314_v27, %v2178_v39  ;;  %v3015_v45 = vrot.slane %v8321_v17, 5 }
 0x1c2   : > { %7005 = vmatprep.subr.bf16.mxu0 %v7863_v61  ;;  %10369 = vst [vmem:[#allocation8_spill] sm:$0xff] %v8601_v37 }
 0x1c3   : > { %6994 = vmatmul.mubr.msk.bf16.gmra.mrb[68].mxu0 %vm940_vm0, %v1334_v62  ;;  %v8614_v62 = vsel %vm2170_vm3, %v2178_v39, %v10313_v29  ;;  %v1494_v3 = vor.u32 %v1493_v1, %v1492_v22  ;;  %v1501_v39 = vrot.slane %v8298_v0, 2  ;;  %v3012_v22 = vsel %vm3007_vm2, %v3009_v58, %v3011_v36 }
 0x1c4   : > { %7188 = vmatpush3.bf16.msra.mxu1 %v7862_v16  ;;  %6997 = vmatprep.mubr.msk.bf16.mxu0 %vm940_vm0, %v1336_v14  ;;  %v3010_v16 = vsel %vm3007_vm2, %v3008_v2, %v3009_v58  ;;  %10370 = vst [vmem:[#allocation9_spill] sm:$0xff] %v8614_v62  ;;  %v3013_v2 = vrot.slane %v8319_v23, 5  ;;  %v1496_v14 = vrot.slane %v8295_v10, 1  ;;  %v7866_v23 = vld [vmem:[%s10307_s4 + $0x1a8] sm:$0xff]   ;;  %v8652_v58 = vsel %vm2328_vm4, %v2345_v32, %v8392_v59 }
 0x1c5   : > { %7201 = vmatprep.subr.bf16.mxu1 %v7864_v63  ;;  %7006 = vmatpush3.bf16.msra.mxu0 %v7863_v61  ;;  %v1338_v61 = vsel %vm1325_vm15, %v1335_v35, %v1337_v31  ;;  %v1495_v35 = vsel %vm1483_vm10, %v1491_v38, %v1494_v3  ;;  %v1502_v31 = vor.u32 %v1501_v39, %v1500_v7  ;;  %v10319_v38 = vrot.slane %v8373_v47, 5  ;;  %v8654_v7 = vld [vmem:[#allocation2 + $0x20] sm:$0xff] }
 0x1c6   : > { %7007 = vmatprep.subr.bf16.mxu0 %v7865_v4  ;;  %10373 = vst [vmem:[#allocation12_spill] sm:$0xff] %v8652_v58  ;;  %v3170_v39 = vshll.u32 %v8575_v54, 16  ;;  %v8710_v49 = vshrl.u32 %v8654_v7, 16 }
 0x1c7   : > { %7178 = vmatmul.mubr.msk.bf16.gmra.mrb[4].mxu1 %vm940_vm0, %v2860_v30  ;;  %v1497_v30 = vrot.slane %v8260_v15, 2 }
 0x1c8   : > { %7189 = vmatprep.mubr.msk.bf16.mxu1 %vm940_vm0, %v3010_v16  ;;  %v2342_v16 = vrot.slane %v8345_v33, 7  ;;  %v3014_v33 = vsel %vm3007_vm2, %v3011_v36, %v3013_v2  ;;  %v8656_v36 = vld [vmem:[#allocation2 + $0x28] sm:$0xff]  ;;  %v3172_v11 = vrot.slane %v3170_v39, 6 }
 0x1c9   : > { %7008 = vmatpush3.bf16.msra.mxu0 %v7865_v4  ;;  %v2346_v4 = vor.u32 %v2345_v32, %v8335_v26  ;;  %v1498_v1 = vor.u32 %v1497_v30, %v1496_v14  ;;  %v8648_v26 = vld [vmem:[#allocation2 + $0x18] sm:$0xff]  ;;  %v8658_v14 = vld [vmem:[#allocation2 + $0x30] sm:$0xff]  ;;  %v3167_v30 = vshrl.u32 %v8575_v54, 16  ;;  %v3018_v32 = vsel %vm3007_vm2, %v3015_v45, %v10319_v38 }
 0x1ca   : > { %7021 = vmatprep.subr.bf16.mxu0 %v7868_v44  ;;  %v8633_v50 = vor.u32 %v2342_v16, %v8332_v25  ;;  %v7867_v25 = vld [vmem:[%s10307_s4 + $0x1b0] sm:$0xff]   ;;  %v3019_v54 = vrot.slane %v8537_v53, 5  ;;  %v3174_v53 = vrot.slane %v8295_v10, 5 }
 0x1cb   : > { %6998 = vmatmul.mubr.msk.bf16.gmra.mrb[72].mxu0 %vm940_vm0, %v1338_v61  ;;  %v8642_v61 = vsel %vm2328_vm4, %v2342_v16, %v2346_v4  ;;  %v8663_v16 = vld [vmem:[#allocation2 + $0x38] sm:$0xff]  ;;  %v1503_v59 = vsel %vm1483_vm10, %v1498_v1, %v1502_v31  ;;  %v7869_v4 = vld [vmem:[%s10307_s4 + $0x88] sm:$0xff]   ;;  %v3169_v27 = vrot.slane %v3167_v30, 5 }
 0x1cc   : > { %7009 = vmatprep.mubr.msk.bf16.mxu0 %vm940_vm0, %v1495_v35  ;;  %10371 = vst [vmem:[#allocation10_spill] sm:$0xff] %v8633_v50  ;;  %10372 = vst [vmem:[#allocation11_spill] sm:$0xff] %v8642_v61  ;;  %v1499_v35 = vsel %vm1483_vm10, %v1494_v3, %v1498_v1  ;;  %v8681_v3 = vshll.u32 %v8654_v7, 16  ;;  %v1507_v1 = vsel %vm1483_vm10, %v1502_v31, %v8407_v6  ;;  %v8698_v29 = vshll.u32 %v8663_v16, 16  ;;  %v7871_v6 = vld [vmem:[%s10307_s4 + $0x90] sm:$0xff]   ;;  %v8726_v61 = vld [vmem:[%s10307_s4 + $0x1c0] sm:$0xff]  }
 0x1cd   : > { %v8707_v31 = vshrl.u32 %v8648_v26, 16  ;;  %v8729_v50 = vshrl.u32 %v8663_v16, 16 }
 0x1ce   : > { %v4539_v39 = vrot.slane %v8681_v3, 1 }
 0x1cf   : > { %7190 = vmatmul.mubr.msk.bf16.vlgmr.msra.gmra.mrb[8].mxu1 %vm940_vm0, %v3012_v22  ;;  %v8673_v22 = vld [vmem:[#allocation2 + $0x30] sm:$0x3] }
 0x1d0   : > { %7202 = vmatpush3.bf16.msra.mxu1 %v7864_v63  ;;  %7193 = vmatprep.mubr.msk.bf16.mxu1 %vm940_vm0, %v3014_v33  ;;  %v3016_v63 = vsel %vm3007_vm2, %v3013_v2, %v3015_v45  ;;  %v8676_v2 = vshll.u32 %v8648_v26, 16  ;;  %v8684_v33 = vshll.u32 %v8656_v36, 16  ;;  %v8687_v45 = vshll.u32 %v8658_v14, 16 }
 0x1d1   : > { %7203 = vmatprep.subr.bf16.mxu1 %v7866_v23  ;;  %v1516_v52 = vshll.u32 %v8673_v22, 16  ;;  %v4543_v37 = vor.u32 %v4539_v39, %v8710_v49 }
 0x1d2   : > { %10374 = vst [vmem:[#allocation13_spill] sm:$0xff] %v8676_v2  ;;  %v4534_v30 = vrot.slane %v8676_v2, 1  ;;  %v4547_v43 = vrot.slane %v8684_v33, 1  ;;  %v4555_v38 = vrot.slane %v8687_v45, 1 }
 0x1d3   : > { %7010 = vmatmul.mubr.msk.bf16.vlgmr.msra.gmra.mrb[64].mxu0 %vm940_vm0, %v1499_v35  ;;  %v3175_v35 = vrot.slane %v8260_v15, 6  ;;  %v1518_v34 = vrot.slane %v1516_v52, 2 }
 0x1d4   : > { %7204 = vmatpush3.bf16.msra.mxu1 %v7866_v23  ;;  %7013 = vmatprep.mubr.msk.bf16.mxu0 %vm940_vm0, %v1503_v59  ;;  %v7870_v23 = vld [vmem:[%s10307_s4 + $0x1b8] sm:$0xff]   ;;  %v1513_v59 = vshrl.u32 %v8673_v22, 16 }
 0x1d5   : > { %7205 = vmatprep.subr.bf16.mxu1 %v7867_v25  ;;  %7022 = vmatpush3.bf16.msra.mxu0 %v7868_v44  ;;  %v8713_v44 = vshrl.u32 %v8656_v36, 16  ;;  %v3176_v58 = vor.u32 %v3175_v35, %v3174_v53  ;;  %v3173_v35 = vor.u32 %v3172_v11, %v3169_v27  ;;  %v1656_v27 = vld [vmem:[#allocation2] sm:$0xfc] }
 0x1d6   : > { %7023 = vmatprep.subr.bf16.mxu0 %v7869_v4  ;;  %v1515_v62 = vrot.slane %v1513_v59, 1 }
 0x1d7   : > { %7194 = vmatmul.mubr.msk.bf16.gmra.mrb[0].mxu1 %vm940_vm0, %v3016_v63  ;;  %v8718_v63 = vshrl.u32 %v8658_v14, 16  ;;  %v4551_v13 = vor.u32 %v4547_v43, %v8713_v44  ;;  %v4901_v59 = vrot.slane %v8713_v44, 1 }
 0x1d8   : > { %7197 = vmatprep.mubr.msk.bf16.mxu1 %vm940_vm0, %v3018_v32  ;;  %7206 = vmatpush3.bf16.msra.mxu1 %v7867_v25  ;;  %v4535_v25 = vor.u32 %v4534_v30, %v8707_v31  ;;  %v4563_v32 = vrot.slane %v8698_v29, 1 }
 0x1d9   : > { %7207 = vmatprep.subr.bf16.mxu1 %v7870_v23  ;;  %7024 = vmatpush3.bf16.msra.mxu0 %v7869_v4  ;;  %v4559_v53 = vor.u32 %v4555_v38, %v8718_v63  ;;  %v8747_v4 = vsel %vm1016_vm8, %v4543_v37, %v4547_v43  ;;  %v8750_v11 = vsel %vm1016_vm8, %v4551_v13, %v4555_v38  ;;  %v3178_v43 = vrot.slane %v8329_v24, 5 }
 0x1da   : > { %7025 = vmatprep.subr.bf16.mxu0 %v7871_v6  ;;  %v8740_v2 = vsel %vm1016_vm8, %v4535_v25, %v4539_v39  ;;  %v8743_v30 = vor.u32 %v4563_v32, %v8729_v50  ;;  %10376 = vst [vmem:[#allocation15_spill] sm:$0xff] %v8750_v11  ;;  %v3179_v13 = vrot.slane %v8298_v0, 6  ;;  %v4897_v37 = vrot.slane %v8710_v49, 1  ;;  %v7876_v39 = vld [vmem:[%s10307_s4 + $0xa0] sm:$0xff]  }
 0x1db   : > { %7014 = vmatmul.mubr.msk.bf16.gmra.mrb[68].mxu0 %vm940_vm0, %v1507_v1  ;;  %v8753_v52 = vsel %vm1016_vm8, %v4559_v53, %v4563_v32  ;;  %v10378_v1 = vrot.slane %v8373_v47, 5  ;;  %v1519_v38 = vor.u32 %v1518_v34, %v1515_v62  ;;  %v4898_v25 = vrot.slane %v8681_v3, 2 }
 0x1dc   : > { %10375 = vst [vmem:[#allocation14_spill] sm:$0xff] %v8743_v30  ;;  %7208 = vmatpush3.bf16.msra.mxu1 %v7870_v23  ;;  %10377 = vst [vmem:[#allocation16_spill] sm:$0xff] %v8753_v52  ;;  %7017 = vmatprep.mubr.msk.bf16.mxu0 %vm940_vm0, %v8429_v18  ;;  %v3177_v18 = vsel %vm3165_vm11, %v3173_v35, %v3176_v58  ;;  %v1669_v32 = vrot.slane %v8249_v40, 2  ;;  %v4905_v53 = vrot.slane %v8718_v63, 1  ;;  %v4909_v62 = vrot.slane %v8729_v50, 1 }
 0x1dd   : > { %7221 = vmatprep.subr.bf16.mxu1 %v8726_v61  ;;  %v3020_v23 = vsel %vm3007_vm2, %v10378_v1, %v3019_v54  ;;  %7026 = vmatpush3.bf16.msra.mxu0 %v7871_v6  ;;  %v4902_v54 = vrot.slane %v8684_v33, 2  ;;  %v1668_v6 = vrot.slane %v1656_v27, 2  ;;  %v4906_v1 = vrot.slane %v8687_v45, 2 }
 0x1de   : > { %7027 = vmatprep.subr.bf16.mxu0 %v7873_v5  ;;  %v8776_v35 = vor.u32 %v4898_v25, %v4897_v37  ;;  %v3180_v30 = vor.u32 %v3179_v13, %v3178_v43  ;;  %v3190_v25 = vrot.slane %v8376_v51, 5 }
 0x1df   : > { %7198 = vmatmul.mubr.msk.bf16.gmra.mrb[4].mxu1 %vm940_vm0, %v3020_v23  ;;  %v4903_v34 = vor.u32 %v4902_v54, %v4901_v59  ;;  %v4910_v23 = vrot.slane %v8698_v29, 2  ;;  %v4907_v52 = vor.u32 %v4906_v1, %v4905_v53  ;;  %v1670_v59 = vsel %vm1667_vm12, %v1668_v6, %v1669_v32  ;;  %v8808_v6 = vld [vmem:[#allocation2 + $0x38] sm:$0x3f] }
 0x1e0   : > { %7209 = vmatprep.mubr.msk.bf16.mxu1 %vm940_vm0, %v3177_v18  ;;  %v1520_v18 = vsel %vm1483_vm10, %v8418_v12, %v1519_v38  ;;  %v7874_v12 = vld [vmem:[%s10307_s4 + $0x1c8] sm:$0xff]   ;;  %v3181_v43 = vsel %vm3165_vm11, %v3176_v58, %v3180_v30  ;;  %v3185_v13 = vsel %vm3165_vm11, %v3180_v30, %v8447_v28  ;;  %v1671_v38 = vrot.slane %v8251_v41, 2  ;;  %v7875_v58 = vld [vmem:[%s10307_s4 + $0x1d0] sm:$0xff]   ;;  %v7878_v1 = vld [vmem:[%s10307_s4 + $0x1d8] sm:$0xff]  }
 0x1e1   : > { %7028 = vmatpush3.bf16.msra.mxu0 %v7873_v5  ;;  %v8784_v27 = vsel %vm1483_vm10, %v8776_v35, %v4903_v34  ;;  %v8786_v11 = vor.u32 %v4910_v23, %v4909_v62  ;;  %v8791_v37 = vsel %vm1483_vm10, %v4903_v34, %v4907_v52  ;;  %v3191_v54 = vrot.slane %v8385_v56, 6  ;;  %v7877_v56 = vld [vmem:[%s10307_s4 + $0xa8] sm:$0xff]   ;;  %v7879_v23 = vld [vmem:[%s10307_s4 + $0xb0] sm:$0xff]  }
 0x1e2   : > { %7041 = vmatprep.subr.bf16.mxu0 %v7876_v39  ;;  %v3198_v28 = vshll.u32 %v8808_v6, 16  ;;  %v1672_v30 = vsel %vm1667_vm12, %v1669_v32, %v1671_v38 }
 0x1e3   : > { %7018 = vmatmul.mubr.msk.bf16.gmra.mrb[72].mxu0 %vm940_vm0, %v1520_v18  ;;  %v8799_v5 = vsel %vm1483_vm10, %v4907_v52, %v8786_v11  ;;  %v3195_v52 = vshrl.u32 %v8808_v6, 16  ;;  %v3192_v51 = vor.u32 %v3191_v54, %v3190_v25  ;;  %v3338_v18 = vld [vmem:[#allocation2 + $0x8] sm:$0xc0]  ;;  %v10380_v54 = vrot.slane %v8321_v17, 2 }
 0x1e4   : > { %7029 = vmatprep.mubr.msk.bf16.mxu0 %vm940_vm0, %v1670_v59  ;;  %v3200_v34 = vrot.slane %v3198_v28, 6  ;;  %v10381_v28 = vrot.slane %v8287_v9, 6 }
 0x1e5   : > { %v3197_v32 = vrot.slane %v3195_v52, 5  ;;  %v3193_v62 = vsel %vm3165_vm11, %v8457_v42, %v3192_v51  ;;  %v7881_v42 = vld [vmem:[%s10307_s4 + $0xb8] sm:$0xff]   ;;  %v7882_v52 = vld [vmem:[%s10307_s4 + $0x1e8] sm:$0xff]  }
 0x1e7   : > { %7210 = vmatmul.mubr.msk.bf16.vlgmr.msra.gmra.mrb[8].mxu1 %vm940_vm0, %v3181_v43  ;;  %v3201_v59 = vor.u32 %v3200_v34, %v3197_v32  ;;  %v1816_v43 = vld [vmem:[#allocation2] sm:$0xc0] }
 0x1e8   : > { %7222 = vmatpush3.bf16.msra.mxu1 %v8726_v61  ;;  %7213 = vmatprep.mubr.msk.bf16.mxu1 %vm940_vm0, %v3185_v13  ;;  %v10379_v61 = vrot.slane %v8287_v9, 2  ;;  %v1829_v25 = vrot.slane %v1816_v43, 6  ;;  %v1991_v32 = vshll.u32 %v1816_v43, 16  ;;  %v7888_v34 = vld [vmem:[%s10307_s4 + $0x200] sm:$0xff]  }
 0x1e9   : > { %7223 = vmatprep.subr.bf16.mxu1 %v7874_v12  ;;  %v3202_v13 = vsel %vm3165_vm11, %v3192_v51, %v3201_v59  ;;  %vm6181_vm11 = vcmask 7172  }
 0x1ea   : > { %v1674_v53 = vsel %vm1667_vm12, %v1671_v38, %v10379_v61  ;;  %v1679_v38 = vrot.slane %v8673_v22, 2  ;;  %v7886_v61 = vld [vmem:[%s10307_s4 + $0x1f8] sm:$0xff]  }
 0x1eb   : > { %7030 = vmatmul.mubr.msk.bf16.vlgmr.msra.gmra.mrb[64].mxu0 %vm940_vm0, %v1672_v30  ;;  %v7883_v30 = vld [vmem:[%s10307_s4 + $0x1f0] sm:$0xff]  }
 0x1ec   : > { %7224 = vmatpush3.bf16.msra.mxu1 %v7874_v12  ;;  %7033 = vmatprep.mubr.msk.bf16.mxu0 %vm940_vm0, %v1674_v53  ;;  %v3350_v12 = vrot.slane %v8251_v41, 6  ;;  %v7887_v53 = vld [vmem:[%s10307_s4 + $0xd0] sm:$0xff]  }
 0x1ed   : > { %7225 = vmatprep.subr.bf16.mxu1 %v7875_v58  ;;  %7042 = vmatpush3.bf16.msra.mxu0 %v7876_v39  ;;  %v7880_v39 = vld [vmem:[%s10307_s4 + $0x1e0] sm:$0xff]  }
 0x1ee   : > { %7043 = vmatprep.subr.bf16.mxu0 %v7877_v56 }
 0x1ef   : > { %7214 = vmatmul.mubr.msk.bf16.gmra.mrb[0].mxu1 %vm940_vm0, %v8468_v21  ;;  %v3349_v21 = vrot.slane %v3338_v18, 6  ;;  %v3520_v18 = vrot.slane %v8648_v26, 2 }
 0x1f0   : > { %7217 = vmatprep.mubr.msk.bf16.mxu1 %vm940_vm0, %v3193_v62  ;;  %7226 = vmatpush3.bf16.msra.mxu1 %v7875_v58  ;;  %v1680_v58 = vsel %vm1667_vm12, %v10380_v54, %v1679_v38  ;;  %v3360_v62 = vrot.slane %v8808_v6, 6  ;;  %v1996_v6 = vrot.slane %v8257_v46, 7  ;;  %v7892_v38 = vld [vmem:[%s10307_s4 + $0xe0] sm:$0xff]   ;;  %v1999_v54 = vrot.slane %v8295_v10, 6 }
 0x1f1   : > { %7227 = vmatprep.subr.bf16.mxu1 %v7878_v1  ;;  %7044 = vmatpush3.bf16.msra.mxu0 %v7877_v56  ;;  %v3351_v41 = vsel %vm1828_vm14, %v3349_v21, %v3350_v12  ;;  %v7885_v56 = vld [vmem:[%s10307_s4 + $0xc8] sm:$0xff]   ;;  %v1993_v21 = vrot.slane %v1991_v32, 7 }
 0x1f2   : > { %7045 = vmatprep.subr.bf16.mxu0 %v7879_v23 }
 0x1f3   : > { %7034 = vmatmul.mubr.msk.bf16.gmra.mrb[68].mxu0 %vm940_vm0, %v8475_v57  ;;  %v7884_v57 = vld [vmem:[%s10307_s4 + $0xc0] sm:$0xff]  }
 0x1f4   : > { %7228 = vmatpush3.bf16.msra.mxu1 %v7878_v1  ;;  %7037 = vmatprep.mubr.msk.bf16.mxu0 %vm940_vm0, %v8480_v60  ;;  %v1830_v60 = vrot.slane %v8249_v40, 6  ;;  %v3353_v40 = vsel %vm1828_vm14, %v3350_v12, %v10381_v28  ;;  %v1988_v1 = vshrl.u32 %v1816_v43, 16  ;;  %v10382_v43 = vrot.slane %v8373_v47, 6 }
 0x1f5   : > { %7241 = vmatprep.subr.bf16.mxu1 %v7880_v39  ;;  %7046 = vmatpush3.bf16.msra.mxu0 %v7879_v23  ;;  %v8895_v23 = vld [vmem:[#allocation2 + $0x10] sm:$0xfc]  ;;  %v2004_v28 = vrot.slane %v8298_v0, 7 }
 0x1f6   : > { %7047 = vmatprep.subr.bf16.mxu0 %v7881_v42  ;;  %v1831_v22 = vsel %vm1828_vm14, %v1829_v25, %v1830_v60  ;;  %v1833_v51 = vsel %vm1828_vm14, %v1830_v60, %v3350_v12  ;;  %v1990_v59 = vrot.slane %v1988_v1, 6  ;;  %v1995_v12 = vrot.slane %v8268_v48, 6 }
 0x1f7   : > { %7218 = vmatmul.mubr.msk.bf16.gmra.mrb[4].mxu1 %vm940_vm0, %v3202_v13  ;;  %v3361_v13 = vsel %vm1828_vm14, %v10382_v43, %v3360_v62  ;;  %v3522_v25 = vrot.slane %v8654_v7, 2  ;;  %v3524_v60 = vrot.slane %v8656_v36, 2  ;;  %v3528_v1 = vrot.slane %v8663_v16, 2  ;;  %v7893_v62 = vld [vmem:[%s10307_s4 + $0xe8] sm:$0xff]   ;;  %v10383_v43 = vld [vmem:[#allocation13_spill] sm:$0xff] }
 0x1f8   : > { %7229 = vmatprep.mubr.msk.bf16.mxu1 %vm940_vm0, %v3351_v41 }
 0x1f9   : > { %7048 = vmatpush3.bf16.msra.mxu0 %v7881_v42  ;;  %v3519_v42 = vrot.slane %v8895_v23, 2 }
 0x1fa   : > { %7061 = vmatprep.subr.bf16.mxu0 %v7884_v57 }
 0x1fb   : > { %7038 = vmatmul.mubr.msk.bf16.gmra.mrb[72].mxu0 %vm940_vm0, %v1680_v58  ;;  %v2000_v58 = vrot.slane %v8260_v15, 7 }
 0x1fc   : > { %7049 = vmatprep.mubr.msk.bf16.mxu0 %vm940_vm0, %v1831_v22 }
 0x1ff   : > { %7230 = vmatmul.mubr.msk.bf16.vlgmr.msra.gmra.mrb[8].mxu1 %vm940_vm0, %v3353_v40 }
 0x200   : > { %7242 = vmatpush3.bf16.msra.mxu1 %v7880_v39  ;;  %7233 = vmatprep.mubr.msk.bf16.mxu1 %vm940_vm0, %v8509_v20  ;;  %v1817_v39 = vld [vmem:[#allocation2 + $0x30] sm:$0x3f] }
 0x201   : > { %7243 = vmatprep.subr.bf16.mxu1 %v7882_v52  ;;  %v1840_v41 = vrot.slane %v1817_v39, 6  ;;  %v3678_v39 = vshrl.u32 %v8895_v23, 16 }
 0x203   : > { %7050 = vmatmul.mubr.msk.bf16.vlgmr.msra.gmra.mrb[64].mxu0 %vm940_vm0, %v1833_v51  ;;  %v1841_v47 = vsel %vm1828_vm14, %v8495_v8, %v1840_v41  ;;  %v7890_v8 = vld [vmem:[%s10307_s4 + $0x208] sm:$0xff]   ;;  %v2001_v51 = vor.u32 %v2000_v58, %v1999_v54 }
 0x204   : > { %7244 = vmatpush3.bf16.msra.mxu1 %v7882_v52  ;;  %7053 = vmatprep.mubr.msk.bf16.mxu0 %vm940_vm0, %v3353_v40  ;;  %v2003_v52 = vrot.slane %v8329_v24, 6  ;;  %v3523_v40 = vsel %vm1667_vm12, %v3520_v18, %v3522_v25 }
 0x205   : > { %7245 = vmatprep.subr.bf16.mxu1 %v7883_v30  ;;  %7062 = vmatpush3.bf16.msra.mxu0 %v7884_v57  ;;  %v1997_v57 = vor.u32 %v1996_v6, %v1995_v12  ;;  %v3503_v6 = vld [vmem:[#allocation2 + $0x40] sm:$0x3] }
 0x206   : > { %7063 = vmatprep.subr.bf16.mxu0 %v7885_v56 }
 0x207   : > { %7234 = vmatmul.mubr.msk.bf16.gmra.mrb[0].mxu1 %vm940_vm0, %v8513_v19  ;;  %v2002_v32 = vsel %vm1986_vm1, %v1997_v57, %v2001_v51 }
 0x208   : > { %7237 = vmatprep.mubr.msk.bf16.mxu1 %vm940_vm0, %v8519_v55  ;;  %7246 = vmatpush3.bf16.msra.mxu1 %v7883_v30  ;;  %v7889_v55 = vld [vmem:[%s10307_s4 + $0xd8] sm:$0xff]   ;;  %v3525_v30 = vsel %vm1667_vm12, %v3522_v25, %v3524_v60  ;;  %v3530_v25 = vrot.slane %v3503_v6, 2 }
 0x209   : > { %7247 = vmatprep.subr.bf16.mxu1 %v7886_v61  ;;  %7064 = vmatpush3.bf16.msra.mxu0 %v7885_v56  ;;  %v2005_v56 = vor.u32 %v2004_v28, %v2003_v52  ;;  %v7897_v52 = vld [vmem:[%s10307_s4 + $0xf8] sm:$0xff]   ;;  %v10385_v28 = vld [vmem:[#allocation7_spill] sm:$0xff] }
 0x20a   : > { %7065 = vmatprep.subr.bf16.mxu0 %v7887_v53 }
 0x20b   : > { %7054 = vmatmul.mubr.msk.bf16.gmra.mrb[68].mxu0 %vm940_vm0, %v8509_v20  ;;  %v3521_v20 = vsel %vm1667_vm12, %v3519_v42, %v3520_v18  ;;  %v8946_v18 = vld [vmem:[#allocation2 + $0x30] sm:$0x7f]  ;;  %v3688_v42 = vrot.slane %v8707_v31, 2 }
 0x20c   : > { %7248 = vmatpush3.bf16.msra.mxu1 %v7886_v61  ;;  %7057 = vmatprep.mubr.msk.bf16.mxu0 %vm940_vm0, %v8513_v19  ;;  %v1994_v19 = vor.u32 %v1993_v21, %v1990_v59  ;;  %v7891_v61 = vld [vmem:[%s10307_s4 + $0x210] sm:$0xff]   ;;  %v3681_v59 = vshll.u32 %v8895_v23, 16  ;;  %v2019_v41 = vshll.u32 %v8946_v18, 16 }
 0x20d   : > { %7261 = vmatprep.subr.bf16.mxu1 %v7888_v34  ;;  %7066 = vmatpush3.bf16.msra.mxu0 %v7887_v53  ;;  %v3526_v53 = vrot.slane %v8658_v14, 2  ;;  %v7895_v23 = vld [vmem:[%s10307_s4 + $0xf0] sm:$0xff]  }
 0x20e   : > { %7067 = vmatprep.subr.bf16.mxu0 %v7889_v55  ;;  %v1998_v22 = vsel %vm1986_vm1, %v1994_v19, %v1997_v57  ;;  %v3683_v19 = vrot.slane %v3681_v59, 3  ;;  %v7896_v57 = vld [vmem:[%s10307_s4 + $0x220] sm:$0xff]  }
 0x20f   : > { %7238 = vmatmul.mubr.msk.bf16.gmra.mrb[4].mxu1 %vm940_vm0, %v3361_v13  ;;  %v3527_v21 = vsel %vm1667_vm12, %v3524_v60, %v3526_v53  ;;  %v3529_v12 = vsel %vm1667_vm12, %v3526_v53, %v3528_v1  ;;  %v3691_v13 = vrot.slane %v10383_v43, 3 }
 0x210   : > { %7249 = vmatprep.mubr.msk.bf16.mxu1 %vm940_vm0, %v3521_v20  ;;  %v2016_v20 = vshrl.u32 %v8946_v18, 16 }
 0x211   : > { %7068 = vmatpush3.bf16.msra.mxu0 %v7889_v55  ;;  %v7894_v55 = vld [vmem:[%s10307_s4 + $0x218] sm:$0xff]   ;;  %v3692_v54 = vor.u32 %v3691_v13, %v3688_v42  ;;  %v7898_v13 = vld [vmem:[%s10307_s4 + $0x228] sm:$0xff]  }
 0x212   : > { %7081 = vmatprep.subr.bf16.mxu0 %v7892_v38  ;;  %v2018_v58 = vrot.slane %v2016_v20, 6 }
 0x213   : > { %7058 = vmatmul.mubr.msk.bf16.gmra.mrb[72].mxu0 %vm940_vm0, %v1841_v47  ;;  %v10384_v47 = vld [vmem:[#allocation5_spill] sm:$0xff] }
 0x214   : > { %7069 = vmatprep.mubr.msk.bf16.mxu0 %vm940_vm0, %v1998_v22  ;;  %v2010_v60 = vsel %vm1986_vm1, %v2005_v56, %v10384_v47  ;;  %v2021_v22 = vrot.slane %v2019_v41, 7  ;;  %v3715_v41 = vrot.slane %v8718_v63, 2  ;;  %v3724_v47 = vrot.slane %v8729_v50, 2 }
 0x216   : > { %v2022_v53 = vor.u32 %v2021_v22, %v2018_v58  ;;  %v9011_v58 = vld [vmem:[#allocation2 + $0x40] sm:$0x7] }
 0x217   : > { %7250 = vmatmul.mubr.msk.bf16.vlgmr.msra.gmra.mrb[8].mxu1 %vm940_vm0, %v3523_v40  ;;  %v8976_v40 = vld [vmem:[#allocation2] sm:$0x80] }
 0x218   : > { %7262 = vmatpush3.bf16.msra.mxu1 %v7888_v34  ;;  %7253 = vmatprep.mubr.msk.bf16.mxu1 %vm940_vm0, %v3525_v30  ;;  %v2006_v34 = vsel %vm1986_vm1, %v2001_v51, %v2005_v56  ;;  %v3531_v30 = vsel %vm1667_vm12, %v3528_v1, %v3530_v25  ;;  %v3697_v51 = vrot.slane %v8710_v49, 2  ;;  %v3700_v56 = vrot.slane %v8681_v3, 3 }
 0x219   : > { %7263 = vmatprep.subr.bf16.mxu1 %v7890_v8  ;;  %v2171_v1 = vrot.slane %v8976_v40, 7 }
 0x21a   : > { %v3701_v59 = vor.u32 %v3700_v56, %v3697_v51  ;;  %v7901_v51 = vld [vmem:[%s10307_s4 + $0x108] sm:$0xff]  }
 0x21b   : > { %7070 = vmatmul.mubr.msk.bf16.vlgmr.msra.gmra.mrb[64].mxu0 %vm940_vm0, %v2002_v32  ;;  %v3706_v32 = vrot.slane %v8713_v44, 2 }
 0x21c   : > { %7264 = vmatpush3.bf16.msra.mxu1 %v7890_v8  ;;  %7073 = vmatprep.mubr.msk.bf16.mxu0 %vm940_vm0, %v2006_v34  ;;  %v7900_v34 = vld [vmem:[%s10307_s4 + $0x100] sm:$0xff]   ;;  %v3702_v20 = vsel %vm3676_vm5, %v3692_v54, %v3701_v59 }
 0x21d   : > { %7265 = vmatprep.subr.bf16.mxu1 %v7891_v61  ;;  %7082 = vmatpush3.bf16.msra.mxu0 %v7892_v38  ;;  %v3680_v38 = vrot.slane %v3678_v39, 2 }
 0x21e   : > { %7083 = vmatprep.subr.bf16.mxu0 %v7893_v62 }
 0x21f   : > { %7254 = vmatmul.mubr.msk.bf16.gmra.mrb[0].mxu1 %vm940_vm0, %v3527_v21  ;;  %v3684_v8 = vor.u32 %v3683_v19, %v3680_v38  ;;  %v10386_v21 = vld [vmem:[#allocation6_spill] sm:$0xff]  ;;  %v9006_v19 = vld [vmem:[#allocation2 + $0x10] sm:$0xff] }
 0x220   : > { %7257 = vmatprep.mubr.msk.bf16.mxu1 %vm940_vm0, %v3529_v12  ;;  %7266 = vmatpush3.bf16.msra.mxu1 %v7891_v61  ;;  %v2023_v12 = vsel %vm1986_vm1, %v10386_v21, %v2022_v53  ;;  %v2174_v25 = vrot.slane %v9006_v19, 7  ;;  %v3887_v21 = vrot.slane %v8648_v26, 3 }
 0x221   : > { %7267 = vmatprep.subr.bf16.mxu1 %v7894_v55  ;;  %7084 = vmatpush3.bf16.msra.mxu0 %v7893_v62  ;;  %v3693_v61 = vsel %vm3676_vm5, %v3684_v8, %v3692_v54  ;;  %v3709_v62 = vrot.slane %v8684_v33, 3  ;;  %v7899_v54 = vld [vmem:[%s10307_s4 + $0x230] sm:$0xff]  }
 0x222   : > { %7085 = vmatprep.subr.bf16.mxu0 %v7895_v23 }
 0x223   : > { %7074 = vmatmul.mubr.msk.bf16.gmra.mrb[68].mxu0 %vm940_vm0, %v2010_v60  ;;  %v3710_v6 = vor.u32 %v3709_v62, %v3706_v32  ;;  %v3727_v60 = vrot.slane %v8698_v29, 3 }
 0x224   : > { %7268 = vmatpush3.bf16.msra.mxu1 %v7894_v55  ;;  %7077 = vmatprep.mubr.msk.bf16.mxu0 %vm940_vm0, %v10385_v28  ;;  %v8990_v55 = vld [vmem:[#allocation2 + $0x8] sm:$0xff]  ;;  %v3734_v28 = vshll.u32 %v9011_v58, 16 }
 0x225   : > { %7281 = vmatprep.subr.bf16.mxu1 %v7896_v57  ;;  %7086 = vmatpush3.bf16.msra.mxu0 %v7895_v23  ;;  %v2172_v39 = vrot.slane %v8990_v55, 7  ;;  %v3718_v23 = vrot.slane %v8687_v45, 3  ;;  %v3711_v38 = vsel %vm3676_vm5, %v3701_v59, %v3710_v6  ;;  %v9041_v59 = vld [vmem:[#allocation2 + $0x10] sm:$0xf8] }
 0x226   : > { %7087 = vmatprep.subr.bf16.mxu0 %v7897_v52  ;;  %v3736_v62 = vrot.slane %v3734_v28, 3  ;;  %v2339_v28 = vrot.slane %v8329_v24, 7  ;;  %v7907_v24 = vld [vmem:[%s10307_s4 + $0x250] sm:$0xff]  }
 0x227   : > { %7258 = vmatmul.mubr.msk.bf16.gmra.mrb[4].mxu1 %vm940_vm0, %v3531_v30  ;;  %v2173_v42 = vsel %vm2170_vm3, %v2171_v1, %v2172_v39  ;;  %v3719_v22 = vor.u32 %v3718_v23, %v3715_v41  ;;  %v2175_v8 = vsel %vm2170_vm3, %v2172_v39, %v2174_v25  ;;  %v3728_v30 = vor.u32 %v3727_v60, %v3724_v47  ;;  %v7904_v39 = vld [vmem:[%s10307_s4 + $0x240] sm:$0xff]  }
 0x228   : > { %7269 = vmatprep.mubr.msk.bf16.mxu1 %vm940_vm0, %v3693_v61  ;;  %v7902_v61 = vld [vmem:[%s10307_s4 + $0x238] sm:$0xff]   ;;  %v3886_v41 = vrot.slane %v9041_v59, 3  ;;  %v3889_v47 = vrot.slane %v8654_v7, 3  ;;  %v10390_v60 = vrot.slane %v8321_v17, 7  ;;  %v7906_v17 = vld [vmem:[%s10307_s4 + $0x248] sm:$0xff]  }
 0x229   : > { %7088 = vmatpush3.bf16.msra.mxu0 %v7897_v52  ;;  %v3731_v52 = vshrl.u32 %v9011_v58, 16  ;;  %v3720_v53 = vsel %vm3676_vm5, %v3710_v6, %v3719_v22  ;;  %v3729_v1 = vsel %vm3676_vm5, %v3719_v22, %v3728_v30  ;;  %v10388_v6 = vld [vmem:[#allocation8_spill] sm:$0xff]  ;;  %v3891_v22 = vrot.slane %v8656_v36, 3 }
 0x22a   : > { %7101 = vmatprep.subr.bf16.mxu0 %v7900_v34 }
 0x22b   : > { %7078 = vmatmul.mubr.msk.bf16.gmra.mrb[72].mxu0 %vm940_vm0, %v2023_v12  ;;  %v3733_v32 = vrot.slane %v3731_v52, 2  ;;  %v7905_v12 = vld [vmem:[%s10307_s4 + $0x118] sm:$0xff]   ;;  %v2336_v52 = vrot.slane %v8295_v10, 7  ;;  %v3892_v10 = vsel %vm3885_vm6, %v3889_v47, %v3891_v22 }
 0x22c   : > { %7089 = vmatprep.mubr.msk.bf16.mxu0 %vm940_vm0, %v2173_v42  ;;  %v2330_v42 = vshrl.u32 %v8976_v40, 16 }
 0x22e   : > { %v2332_v40 = vrot.slane %v2330_v42, 7  ;;  %v10391_v42 = vld [vmem:[#allocation10_spill] sm:$0xff] }
 0x22f   : > { %7270 = vmatmul.mubr.msk.bf16.vlgmr.msra.gmra.mrb[8].mxu1 %vm940_vm0, %v3702_v20  ;;  %v10389_v20 = vld [vmem:[#allocation9_spill] sm:$0xff] }
 0x230   : > { %7282 = vmatpush3.bf16.msra.mxu1 %v7896_v57  ;;  %7273 = vmatprep.mubr.msk.bf16.mxu1 %vm940_vm0, %v3711_v38  ;;  %v10387_v57 = vrot.slane %v8287_v9, 7  ;;  %v7903_v9 = vld [vmem:[%s10307_s4 + $0x110] sm:$0xff]   ;;  %v3888_v38 = vsel %vm3885_vm6, %v3886_v41, %v3887_v21 }
 0x231   : > { %7283 = vmatprep.subr.bf16.mxu1 %v7898_v13 }
 0x232   : > { %v2177_v56 = vsel %vm2170_vm3, %v2174_v25, %v10387_v57  ;;  %v2182_v25 = vrot.slane %v8946_v18, 7  ;;  %v7935_v18 = vld [vmem:[%s10307_s4 + $0x120] sm:$0xff]   ;;  %v3893_v57 = vrot.slane %v8658_v14, 3 }
 0x233   : > { %7090 = vmatmul.mubr.msk.bf16.vlgmr.msra.gmra.mrb[64].mxu0 %vm940_vm0, %v2175_v8  ;;  %v3890_v8 = vsel %vm3885_vm6, %v3887_v21, %v3889_v47  ;;  %v4061_v47 = vrot.slane %v8684_v33, 4  ;;  %v4065_v33 = vrot.slane %v8687_v45, 4 }
 0x234   : > { %7284 = vmatpush3.bf16.msra.mxu1 %v7898_v13  ;;  %7093 = vmatprep.mubr.msk.bf16.mxu0 %vm940_vm0, %v2177_v56  ;;  %v2333_v13 = vrot.slane %v8268_v48, 7 }
 0x235   : > { %7285 = vmatprep.subr.bf16.mxu1 %v7899_v54  ;;  %7102 = vmatpush3.bf16.msra.mxu0 %v7900_v34  ;;  %v3737_v34 = vor.u32 %v3736_v62, %v3733_v32  ;;  %v4048_v32 = vshll.u32 %v9041_v59, 16  ;;  %v3894_v62 = vsel %vm3885_vm6, %v3891_v22, %v3893_v57 }
 0x236   : > { %7103 = vmatprep.subr.bf16.mxu0 %v7901_v51  ;;  %v2334_v48 = vor.u32 %v2333_v13, %v8257_v46 }
 0x237   : > { %7274 = vmatmul.mubr.msk.bf16.gmra.mrb[0].mxu1 %vm940_vm0, %v3720_v53  ;;  %v3738_v23 = vsel %vm3676_vm5, %v3728_v30, %v3737_v34  ;;  %v2337_v30 = vor.u32 %v2336_v52, %v8260_v15  ;;  %v4045_v53 = vshrl.u32 %v9041_v59, 16  ;;  %v4053_v34 = vrot.slane %v10383_v43, 4  ;;  %v10392_v43 = vld [vmem:[#allocation11_spill] sm:$0xff] }
 0x238   : > { %7277 = vmatprep.mubr.msk.bf16.mxu1 %vm940_vm0, %v3729_v1  ;;  %7286 = vmatpush3.bf16.msra.mxu1 %v7899_v54  ;;  %v2183_v54 = vsel %vm2170_vm3, %v10390_v60, %v2182_v25  ;;  %v2335_v46 = vsel %vm2328_vm4, %v2332_v40, %v2334_v48  ;;  %v4050_v21 = vrot.slane %v4048_v32, 4  ;;  %v7938_v40 = vld [vmem:[%s10307_s4 + $0x138] sm:$0xff]   ;;  %v4060_v48 = vrot.slane %v8713_v44, 3 }
 0x239   : > { %7287 = vmatprep.subr.bf16.mxu1 %v7902_v61  ;;  %7104 = vmatpush3.bf16.msra.mxu0 %v7901_v51  ;;  %v2340_v51 = vor.u32 %v2339_v28, %v8298_v0  ;;  %v2338_v56 = vsel %vm2328_vm4, %v2333_v13, %v2337_v30  ;;  %v7908_v0 = vld [vmem:[%s10307_s4 + $0x258] sm:$0xff]   ;;  %v4047_v59 = vrot.slane %v4045_v53, 3  ;;  %v2344_v13 = vsel %vm2328_vm4, %v2339_v28, %v10391_v42  ;;  %v4034_v28 = vld [vmem:[#allocation2 + $0x40] sm:$0xf] }
 0x23a   : > { %7105 = vmatprep.subr.bf16.mxu0 %v7903_v9  ;;  %v4064_v44 = vrot.slane %v8718_v63, 3  ;;  %v4076_v45 = vshll.u32 %v4034_v28, 16  ;;  %v4230_v53 = vrot.slane %v8654_v7, 4  ;;  %v4232_v32 = vrot.slane %v8656_v36, 4  ;;  %v7917_v42 = vld [vmem:[%s10307_s4 + $0x2a0] sm:$0xff]  }
 0x23b   : > { %7094 = vmatmul.mubr.msk.bf16.gmra.mrb[68].mxu0 %vm940_vm0, %v10388_v6  ;;  %v2341_v15 = vsel %vm2328_vm4, %v2336_v52, %v2340_v51  ;;  %v3897_v6 = vrot.slane %v9011_v58, 3  ;;  %v4051_v41 = vor.u32 %v4050_v21, %v4047_v59  ;;  %v4236_v59 = vrot.slane %v8663_v16, 4  ;;  %v7916_v21 = vld [vmem:[%s10307_s4 + $0x298] sm:$0xff]  }
 0x23c   : > { %7288 = vmatpush3.bf16.msra.mxu1 %v7902_v61  ;;  %7097 = vmatprep.mubr.msk.bf16.mxu0 %vm940_vm0, %v10389_v20  ;;  %v3895_v61 = vrot.slane %v8663_v16, 3  ;;  %v4066_v63 = vor.u32 %v4065_v33, %v4064_v44  ;;  %v4078_v30 = vrot.slane %v4076_v45, 4 }
 0x23d   : > { %7301 = vmatprep.subr.bf16.mxu1 %v7904_v39  ;;  %7106 = vmatpush3.bf16.msra.mxu0 %v7903_v9  ;;  %v7936_v9 = vld [vmem:[%s10307_s4 + $0x128] sm:$0xff]  }
 0x23e   : > { %7107 = vmatprep.subr.bf16.mxu0 %v7905_v12  ;;  %v3896_v1 = vsel %vm3885_vm6, %v3893_v57, %v3895_v61  ;;  %v3898_v58 = vsel %vm3885_vm6, %v3895_v61, %v3897_v6  ;;  %v4216_v57 = vld [vmem:[#allocation2 + $0x10] sm:$0xf0] }
 0x23f   : > { %7278 = vmatmul.mubr.msk.bf16.gmra.mrb[4].mxu1 %vm940_vm0, %v3738_v23  ;;  %v4056_v23 = vrot.slane %v8710_v49, 3  ;;  %v4062_v49 = vor.u32 %v4061_v47, %v4060_v48  ;;  %v4227_v61 = vrot.slane %v4216_v57, 4  ;;  %v10396_v48 = vld [vmem:[#allocation14_spill] sm:$0xff] }
 0x240   : > { %7289 = vmatprep.mubr.msk.bf16.mxu1 %vm940_vm0, %v3888_v38  ;;  %v4057_v38 = vrot.slane %v8681_v3, 4  ;;  %v7910_v3 = vld [vmem:[%s10307_s4 + $0x268] sm:$0xff]  }
 0x241   : > { %7108 = vmatpush3.bf16.msra.mxu0 %v7905_v12  ;;  %v7909_v12 = vld [vmem:[%s10307_s4 + $0x260] sm:$0xff]  }
 0x242   : > { %7121 = vmatprep.subr.bf16.mxu0 %v7935_v18  ;;  %v4058_v60 = vor.u32 %v4057_v38, %v4056_v23  ;;  %v4520_v23 = vld [vmem:[#allocation2 + $0x48] sm:$0x1] }
 0x243   : > { %7098 = vmatmul.mubr.msk.bf16.gmra.mrb[72].mxu0 %vm940_vm0, %v2183_v54  ;;  %v10393_v54 = vld [vmem:[#allocation12_spill] sm:$0xff]  ;;  %v4577_v38 = vshll.u32 %v4520_v23, 16 }
 0x244   : > { %7109 = vmatprep.mubr.msk.bf16.mxu0 %vm940_vm0, %v2335_v46  ;;  %v4063_v52 = vsel %vm4043_vm7, %v4058_v60, %v4062_v49  ;;  %v4069_v46 = vrot.slane %v8698_v29, 4  ;;  %v7912_v29 = vld [vmem:[%s10307_s4 + $0x278] sm:$0xff]  }
 0x247   : > { %7290 = vmatmul.mubr.msk.bf16.vlgmr.msra.gmra.mrb[8].mxu1 %vm940_vm0, %v3890_v8 }
 0x248   : > { %7302 = vmatpush3.bf16.msra.mxu1 %v7904_v39  ;;  %7293 = vmatprep.mubr.msk.bf16.mxu1 %vm940_vm0, %v3892_v10  ;;  %v4052_v39 = vrot.slane %v8707_v31, 3  ;;  %v7937_v31 = vld [vmem:[%s10307_s4 + $0x130] sm:$0xff]  }
 0x249   : > { %7303 = vmatprep.subr.bf16.mxu1 %v7906_v17 }
 0x24a   : > { %v4054_v20 = vor.u32 %v4053_v34, %v4052_v39  ;;  %v7915_v39 = vld [vmem:[%s10307_s4 + $0x290] sm:$0xff]   ;;  %v4234_v34 = vrot.slane %v8658_v14, 4 }
 0x24b   : > { %7110 = vmatmul.mubr.msk.bf16.vlgmr.msra.gmra.mrb[64].mxu0 %vm940_vm0, %v2338_v56  ;;  %v4228_v56 = vrot.slane %v8648_v26, 4 }
 0x24c   : > { %7304 = vmatpush3.bf16.msra.mxu1 %v7906_v17  ;;  %7113 = vmatprep.mubr.msk.bf16.mxu0 %vm940_vm0, %v2341_v15  ;;  %v4055_v25 = vsel %vm4043_vm7, %v4051_v41, %v4054_v20  ;;  %v4059_v22 = vsel %vm4043_vm7, %v4054_v20, %v4058_v60  ;;  %v4073_v17 = vshrl.u32 %v4034_v28, 16  ;;  %v4237_v6 = vsel %vm2640_vm9, %v4234_v34, %v4236_v59 }
 0x24d   : > { %7305 = vmatprep.subr.bf16.mxu1 %v7907_v24  ;;  %7122 = vmatpush3.bf16.msra.mxu0 %v7935_v18  ;;  %v4068_v18 = vrot.slane %v8729_v50, 3  ;;  %v4067_v50 = vsel %vm4043_vm7, %v4062_v49, %v4066_v63  ;;  %v4579_v49 = vrot.slane %v4577_v38, 1 }
 0x24e   : > { %7123 = vmatprep.subr.bf16.mxu0 %v7936_v9  ;;  %v4075_v10 = vrot.slane %v4073_v17, 3  ;;  %v7926_v17 = vld [vmem:[%s10307_s4 + $0x2e8] sm:$0xff]  }
 0x24f   : > { %7294 = vmatmul.mubr.msk.bf16.gmra.mrb[0].mxu1 %vm940_vm0, %v3894_v62  ;;  %v4070_v8 = vor.u32 %v4069_v46, %v4068_v18  ;;  %v7914_v62 = vld [vmem:[%s10307_s4 + $0x288] sm:$0xff]  }
 0x250   : > { %7297 = vmatprep.mubr.msk.bf16.mxu1 %vm940_vm0, %v3896_v1  ;;  %7306 = vmatpush3.bf16.msra.mxu1 %v7907_v24  ;;  %v4079_v24 = vor.u32 %v4078_v30, %v4075_v10  ;;  %v4231_v1 = vsel %vm2640_vm9, %v4228_v56, %v4230_v53  ;;  %v9249_v46 = vld [vmem:[#allocation2 + $0x28] sm:$0xff] }
 0x251   : > { %7307 = vmatprep.subr.bf16.mxu1 %v7908_v0  ;;  %7124 = vmatpush3.bf16.msra.mxu0 %v7936_v9  ;;  %v4071_v51 = vsel %vm4043_vm7, %v4066_v63, %v4070_v8  ;;  %v4233_v9 = vsel %vm2640_vm9, %v4230_v53, %v4232_v32  ;;  %v7929_v53 = vld [vmem:[%s10307_s4 + $0x300] sm:$0xff]  }
 0x252   : > { %7125 = vmatprep.subr.bf16.mxu0 %v7937_v31  ;;  %v4080_v15 = vsel %vm4043_vm7, %v4070_v8, %v4079_v24 }
 0x253   : > { %7114 = vmatmul.mubr.msk.bf16.gmra.mrb[68].mxu0 %vm940_vm0, %v2344_v13  ;;  %v4238_v13 = vrot.slane %v4034_v28, 4  ;;  %v4735_v28 = vrot.slane %v9249_v46, 1 }
 0x254   : > { %7308 = vmatpush3.bf16.msra.mxu1 %v7908_v0  ;;  %7117 = vmatprep.mubr.msk.bf16.mxu0 %vm940_vm0, %v10392_v43  ;;  %v4229_v0 = vsel %vm2640_vm9, %v4227_v61, %v4228_v56  ;;  %v7919_v43 = vld [vmem:[%s10307_s4 + $0x2b0] sm:$0xff]   ;;  %v4743_v61 = vrot.slane %v4520_v23, 1 }
 0x255   : > { %7321 = vmatprep.subr.bf16.mxu1 %v7909_v12  ;;  %7126 = vmatpush3.bf16.msra.mxu0 %v7937_v31  ;;  %v4239_v20 = vsel %vm2640_vm9, %v4236_v59, %v4238_v13  ;;  %v7918_v31 = vld [vmem:[%s10307_s4 + $0x2a8] sm:$0xff]  }
 0x256   : > { %7127 = vmatprep.subr.bf16.mxu0 %v7938_v40 }
 0x257   : > { %7298 = vmatmul.mubr.msk.bf16.gmra.mrb[4].mxu1 %vm940_vm0, %v3898_v58  ;;  %v7923_v58 = vld [vmem:[%s10307_s4 + $0x2d0] sm:$0xff]  }
 0x258   : > { %7309 = vmatprep.mubr.msk.bf16.mxu1 %vm940_vm0, %v4055_v25 }
 0x259   : > { %7128 = vmatpush3.bf16.msra.mxu0 %v7938_v40  ;;  %v10395_v40 = vld [vmem:[#allocation16_spill] sm:$0xff] }
 0x25b   : > { %7118 = vmatmul.mubr.msk.bf16.gmra.mrb[72].mxu0 %vm940_vm0, %v10393_v54  ;;  %v7925_v54 = vld [vmem:[%s10307_s4 + $0x2e0] sm:$0xff]  }
 0x25c   : > { %7129 = vmatprep.mubr.msk.bf16.mxu0 %vm940_vm0, %v8990_v55  ;;  %v7911_v55 = vld [vmem:[%s10307_s4 + $0x270] sm:$0xff]  }
 0x25f   : > { %7310 = vmatmul.mubr.msk.bf16.vlgmr.msra.gmra.mrb[8].mxu1 %vm940_vm0, %v4059_v22  ;;  %v9242_v22 = vld [vmem:[#allocation2 + $0x20] sm:$0xff] }
 0x260   : > { %7322 = vmatpush3.bf16.msra.mxu1 %v7909_v12  ;;  %7313 = vmatprep.mubr.msk.bf16.mxu1 %vm940_vm0, %v4063_v52  ;;  %v4235_v12 = vsel %vm2640_vm9, %v4232_v32, %v4234_v34  ;;  %v4733_v44 = vrot.slane %v9242_v22, 1  ;;  %vm5272_vm9 = vcmask 523268  }
 0x261   : > { %7323 = vmatprep.subr.bf16.mxu1 %v7910_v3 }
 0x262   : > { %v4736_v45 = vsel %vm1325_vm15, %v4733_v44, %v4735_v28 }
 0x263   : > { %7130 = vmatmul.mubr.msk.bf16.vlgmr.msra.gmra.mrb[64].mxu0 %vm940_vm0, %v9006_v19  ;;  %v7913_v19 = vld [vmem:[%s10307_s4 + $0x280] sm:$0xff]  }
 0x264   : > { %7324 = vmatpush3.bf16.msra.mxu1 %v7910_v3  ;;  %v4716_v3 = vld [vmem:[#allocation2 + $0x18] sm:$0xfe] }
 0x265   : > { %7325 = vmatprep.subr.bf16.mxu1 %v7911_v55  ;;  %v4732_v52 = vrot.slane %v4716_v3, 1  ;;  %v4893_v24 = vshll.u32 %v4716_v3, 16 }
 0x267   : > { %7314 = vmatmul.mubr.msk.bf16.gmra.mrb[0].mxu1 %vm940_vm0, %v4067_v50  ;;  %v4734_v18 = vsel %vm1325_vm15, %v4732_v52, %v4733_v44  ;;  %v9265_v50 = vld [vmem:[#allocation2 + $0x38] sm:$0xff] }
 0x268   : > { %7317 = vmatprep.mubr.msk.bf16.mxu1 %vm940_vm0, %v4071_v51  ;;  %7326 = vmatpush3.bf16.msra.mxu1 %v7911_v55  ;;  %v9252_v55 = vld [vmem:[#allocation2 + $0x30] sm:$0xff]  ;;  %v4739_v10 = vrot.slane %v9265_v50, 1  ;;  %v7928_v51 = vld [vmem:[%s10307_s4 + $0x2f8] sm:$0xff]  }
 0x269   : > { %7327 = vmatprep.subr.bf16.mxu1 %v7912_v29  ;;  %v4737_v63 = vrot.slane %v9252_v55, 1 }
 0x26b   : > { %v4738_v8 = vsel %vm1325_vm15, %v4735_v28, %v4737_v63  ;;  %v4740_v57 = vsel %vm1325_vm15, %v4737_v63, %v4739_v10 }
 0x26c   : > { %7328 = vmatpush3.bf16.msra.mxu1 %v7912_v29  ;;  %v7927_v29 = vld [vmem:[%s10307_s4 + $0x2f0] sm:$0xff]  }
 0x26d   : > { %7341 = vmatprep.subr.bf16.mxu1 %v7913_v19 }
 0x26f   : > { %7318 = vmatmul.mubr.msk.bf16.gmra.mrb[4].mxu1 %vm940_vm0, %v4080_v15 }
 0x270   : > { %7329 = vmatprep.mubr.msk.bf16.mxu1 %vm940_vm0, %v4229_v0  ;;  %v4895_v0 = vrot.slane %v4893_v24, 2 }
 0x277   : > { %7330 = vmatmul.mubr.msk.bf16.vlgmr.msra.gmra.mrb[8].mxu1 %vm940_vm0, %v4231_v1 }
 0x278   : > { %7342 = vmatpush3.bf16.msra.mxu1 %v7913_v19  ;;  %7333 = vmatprep.mubr.msk.bf16.mxu1 %vm940_vm0, %v4233_v9  ;;  %v4890_v19 = vshrl.u32 %v4716_v3, 16  ;;  %v7930_v9 = vld [vmem:[%s10307_s4 + $0x308] sm:$0xff]  }
 0x279   : > { %7343 = vmatprep.subr.bf16.mxu1 %v7914_v62 }
 0x27a   : > { %v4892_v15 = vrot.slane %v4890_v19, 1 }
 0x27c   : > { %7344 = vmatpush3.bf16.msra.mxu1 %v7914_v62  ;;  %v4896_v62 = vor.u32 %v4895_v0, %v4892_v15 }
 0x27d   : > { %7345 = vmatprep.subr.bf16.mxu1 %v7915_v39 }
 0x27e   : > { %v4900_v1 = vsel %vm1483_vm10, %v4896_v62, %v8776_v35 }
 0x27f   : > { %7334 = vmatmul.mubr.msk.bf16.gmra.mrb[0].mxu1 %vm940_vm0, %v4235_v12  ;;  %v7931_v12 = vld [vmem:[%s10307_s4 + $0x310] sm:$0xff]  }
 0x280   : > { %7337 = vmatprep.mubr.msk.bf16.mxu1 %vm940_vm0, %v4237_v6  ;;  %7346 = vmatpush3.bf16.msra.mxu1 %v7915_v39  ;;  %v4880_v39 = vld [vmem:[#allocation2 + $0x48] sm:$0x3] }
 0x281   : > { %7347 = vmatprep.subr.bf16.mxu1 %v7916_v21  ;;  %v4921_v35 = vshll.u32 %v4880_v39, 16 }
 0x283   : > { %v4923_v13 = vrot.slane %v4921_v35, 2 }
 0x284   : > { %7348 = vmatpush3.bf16.msra.mxu1 %v7916_v21  ;;  %v4918_v21 = vshrl.u32 %v4880_v39, 16 }
 0x285   : > { %7361 = vmatprep.subr.bf16.mxu1 %v7917_v42 }
 0x287   : > { %7338 = vmatmul.mubr.msk.bf16.gmra.mrb[4].mxu1 %vm940_vm0, %v4239_v20 }
 0x288   : > { %7349 = vmatprep.mubr.msk.bf16.mxu1 %vm940_vm0, %v8648_v26  ;;  %v7920_v26 = vld [vmem:[%s10307_s4 + $0x2b8] sm:$0xff]  }
 0x28f   : > { %7350 = vmatmul.mubr.msk.bf16.vlgmr.msra.gmra.mrb[8].mxu1 %vm940_vm0, %v8654_v7  ;;  %v7921_v7 = vld [vmem:[%s10307_s4 + $0x2c0] sm:$0xff]  }
 0x290   : > { %7362 = vmatpush3.bf16.msra.mxu1 %v7917_v42  ;;  %7353 = vmatprep.mubr.msk.bf16.mxu1 %vm940_vm0, %v8656_v36  ;;  %v9211_v36 = vld [vmem:[#allocation2 + $0x40] sm:$0xff]  ;;  %v4920_v42 = vrot.slane %v4918_v21, 1  ;;  %v5286_v21 = vld [vmem:[%s10309_s6 + $0x8] sm:$0xff] }
 0x291   : > { %7363 = vmatprep.subr.bf16.mxu1 %v7918_v31  ;;  %v4569_v41 = vshll.u32 %v9211_v36, 16  ;;  %v4573_v25 = vshrl.u32 %v9211_v36, 16  ;;  %v4741_v30 = vrot.slane %v9211_v36, 1  ;;  %v5081_v23 = vrot.slane %v9211_v36, 2 }
 0x292   : > { %v4924_v20 = vor.u32 %v4923_v13, %v4920_v42 }
 0x293   : > { %v4742_v56 = vsel %vm1325_vm15, %v4739_v10, %v4741_v30  ;;  %v4744_v32 = vsel %vm1325_vm15, %v4741_v30, %v4743_v61  ;;  %v4913_v34 = vrot.slane %v4573_v25, 1  ;;  %v4914_v59 = vrot.slane %v4569_v41, 2 }
 0x294   : > { %7364 = vmatpush3.bf16.msra.mxu1 %v7918_v31  ;;  %v5061_v31 = vld [vmem:[#allocation2 + $0x18] sm:$0xfc] }
 0x295   : > { %7365 = vmatprep.subr.bf16.mxu1 %v7919_v43  ;;  %v4915_v6 = vor.u32 %v4914_v59, %v4913_v34 }
 0x297   : > { %7354 = vmatmul.mubr.msk.bf16.gmra.mrb[0].mxu1 %vm940_vm0, %v8658_v14  ;;  %v7922_v14 = vld [vmem:[%s10307_s4 + $0x2c8] sm:$0xff]  }
 0x298   : > { %7357 = vmatprep.mubr.msk.bf16.mxu1 %vm940_vm0, %v8663_v16  ;;  %7366 = vmatpush3.bf16.msra.mxu1 %v7919_v43  ;;  %v10394_v16 = vld [vmem:[#allocation15_spill] sm:$0xff]  ;;  %v5073_v43 = vrot.slane %v9242_v22, 2 }
 0x299   : > { %7367 = vmatprep.subr.bf16.mxu1 %v7920_v26 }
 0x29c   : > { %7368 = vmatpush3.bf16.msra.mxu1 %v7920_v26  ;;  %v4925_v26 = vsel %vm1483_vm10, %v4915_v6, %v4924_v20 }
 0x29d   : > { %7381 = vmatprep.subr.bf16.mxu1 %v7921_v7 }
 0x29f   : > { %7358 = vmatmul.mubr.msk.bf16.gmra.mrb[4].mxu1 %vm940_vm0, %v9211_v36 }
 0x2a0   : > { %7369 = vmatprep.mubr.msk.bf16.mxu1 %vm940_vm0, %v8740_v2  ;;  %v4571_v2 = vrot.slane %v4569_v41, 1 }
 0x2a2   : > { %v4572_v47 = vsel %vm1016_vm8, %v10396_v48, %v4571_v2  ;;  %v4575_v60 = vor.u32 %v4573_v25, %v4571_v2 }
 0x2a4   : > { %v4580_v33 = vsel %vm1016_vm8, %v4575_v60, %v4579_v49  ;;  %vm5274_vm8 = vcmask 519168  }
 0x2a7   : > { %7370 = vmatmul.mubr.msk.bf16.vlgmr.msra.gmra.mrb[8].mxu1 %vm940_vm0, %v8747_v4  ;;  %v7924_v4 = vld [vmem:[%s10307_s4 + $0x2d8] sm:$0xff]  }
 0x2a8   : > { %7382 = vmatpush3.bf16.msra.mxu1 %v7921_v7  ;;  %7373 = vmatprep.mubr.msk.bf16.mxu1 %vm940_vm0, %v10394_v16  ;;  %v5072_v7 = vrot.slane %v5061_v31, 2 }
 0x2a9   : > { %7383 = vmatprep.subr.bf16.mxu1 %v7922_v14 }
 0x2ac   : > { %7384 = vmatpush3.bf16.msra.mxu1 %v7922_v14  ;;  %v5074_v14 = vsel %vm1667_vm12, %v5072_v7, %v5073_v43 }
 0x2ad   : > { %7385 = vmatprep.subr.bf16.mxu1 %v7923_v58 }
 0x2af   : > { %7374 = vmatmul.mubr.msk.bf16.gmra.mrb[0].mxu1 %vm940_vm0, %v10395_v40 }
 0x2b0   : > { %7377 = vmatprep.mubr.msk.bf16.mxu1 %vm940_vm0, %v4572_v47  ;;  %7386 = vmatpush3.bf16.msra.mxu1 %v7923_v58  ;;  %v5079_v58 = vrot.slane %v9265_v50, 2 }
 0x2b1   : > { %7387 = vmatprep.subr.bf16.mxu1 %v7924_v4 }
 0x2b2   : > { %v5082_v38 = vsel %vm1667_vm12, %v5079_v58, %v5081_v23 }
 0x2b4   : > { %7388 = vmatpush3.bf16.msra.mxu1 %v7924_v4  ;;  %v5083_v4 = vrot.slane %v4880_v39, 2 }
 0x2b5   : > { %7401 = vmatprep.subr.bf16.mxu1 %v7925_v54 }
 0x2b6   : > { %v5084_v25 = vsel %vm1667_vm12, %v5081_v23, %v5083_v4 }
 0x2b7   : > { %7378 = vmatmul.mubr.msk.bf16.gmra.mrb[4].mxu1 %vm940_vm0, %v4580_v33 }
 0x2b8   : > { %7389 = vmatprep.mubr.msk.bf16.mxu1 %vm940_vm0, %v4734_v18  ;;  %v7953_v18 = vmov 0.0  }
 0x2b9   : > { %5256 = vst.msk [vmem:[#allocation3 + $0x28] sm:$0xff] %vm940_vm0, %v7953_v18  ;;  %5251 = vst.msk [vmem:[#allocation3] sm:$0xff] %vm940_vm0, %v7953_v18 }
 0x2ba   : > { %5252 = vst.msk [vmem:[#allocation3 + $0x8] sm:$0xff] %vm940_vm0, %v7953_v18  ;;  %5253 = vst.msk [vmem:[#allocation3 + $0x10] sm:$0xff] %vm940_vm0, %v7953_v18 }
 0x2bb   : > { %5254 = vst.msk [vmem:[#allocation3 + $0x18] sm:$0xff] %vm940_vm0, %v7953_v18  ;;  %5255 = vst.msk [vmem:[#allocation3 + $0x20] sm:$0xff] %vm940_vm0, %v7953_v18 }
 0x2bc   : > { %5257 = vst.msk [vmem:[#allocation3 + $0x30] sm:$0xff] %vm940_vm0, %v7953_v18  ;;  %5258 = vst.msk [vmem:[#allocation3 + $0x38] sm:$0xff] %vm940_vm0, %v7953_v18 }
 0x2bd   : > { %5259 = vst.msk [vmem:[#allocation3 + $0x40] sm:$0xff] %vm940_vm0, %v7953_v18  ;;  %5260 = vst.msk [vmem:[#allocation3 + $0x48] sm:$0xff] %vm940_vm0, %v7953_v18 }
 0x2be   : > { %5261 = vst.msk [vmem:[#allocation3 + $0x50] sm:$0xff] %vm940_vm0, %v7953_v18  ;;  %5262 = vst.msk [vmem:[#allocation3 + $0x58] sm:$0xff] %vm940_vm0, %v7953_v18 }
 0x2bf   : > { %7390 = vmatmul.mubr.msk.bf16.vlgmr.msra.gmra.mrb[8].mxu1 %vm940_vm0, %v4736_v45  ;;  %5263 = vst.msk [vmem:[#allocation3 + $0x60] sm:$0xff] %vm940_vm0, %v7953_v18  ;;  %5264 = vst.msk [vmem:[#allocation3 + $0x68] sm:$0xff] %vm940_vm0, %v7953_v18 }
 0x2c0   : > { %7402 = vmatpush3.bf16.msra.mxu1 %v7925_v54  ;;  %7393 = vmatprep.mubr.msk.bf16.mxu1 %vm940_vm0, %v4738_v8  ;;  %5265 = vst.msk [vmem:[#allocation3 + $0x70] sm:$0xff] %vm940_vm0, %v7953_v18  ;;  %5266 = vst.msk [vmem:[#allocation3 + $0x78] sm:$0xff] %vm940_vm0, %v7953_v18  ;;  %v5289_v50 = vld [vmem:[#allocation3] sm:$0xff] }
 0x2c1   : > { %7403 = vmatprep.subr.bf16.mxu1 %v7926_v17  ;;  %5267 = vst.msk [vmem:[#allocation3 + $0x80] sm:$0xff] %vm940_vm0, %v7953_v18  ;;  %5268 = vst.msk [vmem:[#allocation3 + $0x88] sm:$0xff] %vm940_vm0, %v7953_v18  ;;  %v5329_v10 = vld [vmem:[#allocation3 + $0x1] sm:$0xff] }
 0x2c2   : > { %5269 = vst.msk [vmem:[#allocation3 + $0x90] sm:$0xff] %vm940_vm0, %v7953_v18  ;;  %v5449_v39 = vld [vmem:[#allocation3 + $0x4] sm:$0xff] }
 0x2c4   : > { %7404 = vmatpush3.bf16.msra.mxu1 %v7926_v17  ;;  %v5285_v17 = vld [vmem:[%s10309_s6] sm:$0xff] }
 0x2c5   : > { %7405 = vmatprep.subr.bf16.mxu1 %v7927_v29 }
 0x2c7   : > { %7394 = vmatmul.mubr.msk.bf16.gmra.mrb[0].mxu1 %vm940_vm0, %v4740_v57  ;;  %v5369_v57 = vld [vmem:[#allocation3 + $0x2] sm:$0xff] }
 0x2c8   : > { %7397 = vmatprep.mubr.msk.bf16.mxu1 %vm940_vm0, %v4742_v56  ;;  %7406 = vmatpush3.bf16.msra.mxu1 %v7927_v29 }
 0x2c9   : > { %7407 = vmatprep.subr.bf16.mxu1 %v7928_v51 }
 0x2cc   : > { %7408 = vmatpush3.bf16.msra.mxu1 %v7928_v51 }
 0x2cd   : > { %7421 = vmatprep.subr.bf16.mxu1 %v7929_v53 }
 0x2cf   : > { %7398 = vmatmul.mubr.msk.bf16.gmra.mrb[4].mxu1 %vm940_vm0, %v4744_v32 }
 0x2d0   : > { %7409 = vmatprep.mubr.msk.bf16.mxu1 %vm940_vm0, %v4900_v1 }
 0x2d7   : > { %7410 = vmatmul.mubr.msk.bf16.vlgmr.msra.gmra.mrb[8].mxu1 %vm940_vm0, %v8784_v27  ;;  %v7932_v27 = vld [vmem:[%s10307_s4 + $0x318] sm:$0xff]  }
 0x2d8   : > { %7422 = vmatpush3.bf16.msra.mxu1 %v7929_v53  ;;  %7413 = vmatprep.mubr.msk.bf16.mxu1 %vm940_vm0, %v8791_v37  ;;  %v4916_v37 = vsel %vm1483_vm10, %v8786_v11, %v4915_v6  ;;  %v5075_v11 = vrot.slane %v9249_v46, 2  ;;  %v10397_v46 = vlaneseq  ;;  %v5409_v53 = vld [vmem:[#allocation3 + $0x3] sm:$0xff]  ;;  %vm6179_vm10 = vcmask 7168  }
 0x2d9   : > { %7423 = vmatprep.subr.bf16.mxu1 %v7930_v9  ;;  %v5330_v6 = vld [vmem:[#allocation3 + $0x9] sm:$0xff] }
 0x2da   : > { %v5076_v16 = vsel %vm1667_vm12, %v5073_v43, %v5075_v11  ;;  %v5302_v28 = vshrl.u32 %v10397_v46, 7  ;;  %v5518_v46 = vld [vmem:[#allocation3 + $0xd] sm:$0xff] }
 0x2dc   : > { %7424 = vmatpush3.bf16.msra.mxu1 %v7930_v9  ;;  %v9369_v63 = vsub.s32 1, %v5302_v28  ;;  %v9380_v29 = vsub.s32 2, %v5302_v28  ;;  %v9385_v51 = vsub.s32 3, %v5302_v28  ;;  %v9392_v61 = vsub.s32 4, %v5302_v28 }
 0x2dd   : > { %7425 = vmatprep.subr.bf16.mxu1 %v7931_v12  ;;  %v9398_v62 = vsub.s32 5, %v5302_v28  ;;  %v9401_v34 = vsub.s32 6, %v5302_v28  ;;  %v9403_v59 = vsub.s32 7, %v5302_v28 }
 0x2de   : > { %v9378_v8 = vrot.slane %v5285_v17, %v9369_v63  ;;  %v9383_v30 = vrot.slane %v5285_v17, %v9380_v29  ;;  %v9390_v56 = vrot.slane %v5285_v17, %v9385_v51  ;;  %v9396_v32 = vrot.slane %v5285_v17, %v9392_v61 }
 0x2df   : > { %7414 = vmatmul.mubr.msk.bf16.gmra.mrb[0].mxu1 %vm940_vm0, %v8799_v5  ;;  %v5077_v5 = vrot.slane %v9252_v55, 2  ;;  %v9367_v55 = vsub.s32 0, %v5302_v28  ;;  %v9409_v35 = vrot.slane %v5285_v17, %v9398_v62  ;;  %v9418_v20 = vrot.slane %v5285_v17, %v9403_v59 }
 0x2e0   : > { %7417 = vmatprep.mubr.msk.bf16.mxu1 %vm940_vm0, %v4916_v37  ;;  %7426 = vmatpush3.bf16.msra.mxu1 %v7931_v12  ;;  %10398 = vst [vmem:[#allocation13_spill] sm:$0xff] %v9383_v30  ;;  %v5345_v24 = vmul.f32 %v9378_v8, %v5329_v10  ;;  %10399 = vst [vmem:[#allocation5_spill] sm:$0xff] %v9390_v56  ;;  %v5385_v0 = vmul.f32 %v9383_v30, %v5369_v57  ;;  %v5290_v12 = vld [vmem:[#allocation3 + $0x8] sm:$0xff]  ;;  %v5331_v57 = vld [vmem:[#allocation3 + $0x11] sm:$0xff] }
 0x2e1   : > { %7427 = vmatprep.subr.bf16.mxu1 %v7932_v27  ;;  %v5078_v41 = vsel %vm1667_vm12, %v5075_v11, %v5077_v5  ;;  %v5080_v2 = vsel %vm1667_vm12, %v5077_v5, %v5079_v58  ;;  %v9375_v45 = vrot.slane %v5285_v17, %v9367_v55  ;;  %v5425_v9 = vmul.f32 %v9390_v56, %v5409_v53 }
 0x2e2   : > { %10400 = vst [vmem:[#allocation7_spill] sm:$0xff] %v9409_v35  ;;  %v5465_v13 = vmul.f32 %v9396_v32, %v5449_v39  ;;  %v9415_v37 = vrot.slane %v5285_v17, %v9401_v34  ;;  %10401 = vst [vmem:[#allocation6_spill] sm:$0xff] %v9418_v20  ;;  %v9421_v31 = vrot.slane %v5286_v21, %v9367_v55 }
 0x2e3   : > { %v5305_v19 = vmul.f32 %v9375_v45, %v5289_v50  ;;  %v5306_v7 = vmul.f32 %v9375_v45, %v5290_v12  ;;  %v9431_v11 = vrot.slane %v5286_v21, %v9369_v63  ;;  %v9443_v4 = vrot.slane %v5286_v21, %v9392_v61 }
 0x2e4   : > { %7428 = vmatpush3.bf16.msra.mxu1 %v7932_v27  ;;  %v9412_v27 = vld [vmem:[#allocation3 + $0xc] sm:$0xff]  ;;  %v5534_v39 = vmul.f32 %v9415_v37, %v5518_v46  ;;  %v9462_v12 = vrot.slane %v5286_v21, %v9401_v34 }
 0x2e5   : > { %v5357_v15 = vadd.f32 %v5345_v24, %v5305_v19  ;;  %v5494_v23 = vmul.f32 %v9409_v35, %v9412_v27  ;;  %10403 = vst [vmem:[#allocation9_spill] sm:$0xff] %v9443_v4  ;;  %v9453_v24 = vld [vmem:[#allocation3 + $0x10] sm:$0xff] }
 0x2e6   : > { %10405 = vst [vmem:[#allocation11_spill] sm:$0xff] %v9462_v12 }
 0x2e7   : > { %7418 = vmatmul.mubr.msk.bf16.gmra.mrb[4].mxu1 %vm940_vm0, %v4925_v26  ;;  %v5397_v1 = vadd.f32 %v5385_v0, %v5357_v15  ;;  %v9426_v26 = vld [vmem:[%s10308_s5] ss:$0 sm:$0xff]  ;;  %v5287_v0 = vld [vmem:[%s10309_s6 + $0x10] sm:$0xff] }
 0x2e8   : > { %7429 = vmatprep.mubr.msk.bf16.mxu1 %vm940_vm0, %v5074_v14  ;;  %v5346_v14 = vmul.f32 %v9378_v8, %v5330_v6 }
 0x2e9   : > { %v5437_v42 = vadd.f32 %v5425_v9, %v5397_v1  ;;  %v5410_v9 = vld [vmem:[#allocation3 + $0xb] sm:$0xff] }
 0x2ea   : > { %v5358_v15 = vadd.f32 %v5346_v14, %v5306_v7  ;;  %v5307_v7 = vmul.f32 %v9375_v45, %v9453_v24  ;;  %v5347_v14 = vmul.f32 %v9378_v8, %v5331_v57  ;;  %v5598_v57 = vld [vmem:[#allocation3 + $0xf] sm:$0xff] }
 0x2eb   : > { %v5477_v58 = vadd.f32 %v5465_v13, %v5437_v42  ;;  %v5558_v13 = vld [vmem:[#allocation3 + $0xe] sm:$0xff] }
 0x2ef   : > { %7430 = vmatmul.mubr.msk.bf16.vlgmr.msra.gmra.mrb[8].mxu1 %vm940_vm0, %v5076_v16 }
 0x2f0   : > { %7433 = vmatprep.mubr.msk.bf16.mxu1 %vm940_vm0, %v5078_v41  ;;  %v5370_v41 = vld [vmem:[#allocation3 + $0xa] sm:$0xff] }
 0x2f7   : > { %7434 = vmatmul.mubr.msk.bf16.gmra.mrb[0].mxu1 %vm940_vm0, %v5080_v2  ;;  %v9437_v2 = vrot.slane %v5286_v21, %v9380_v29 }
 0x2f8   : > { %7437 = vmatprep.mubr.msk.bf16.mxu1 %vm940_vm0, %v5082_v38  ;;  %v9440_v38 = vrot.slane %v5286_v21, %v9385_v51 }
 0x2fa   : > { %10402 = vst [vmem:[#allocation8_spill] sm:$0xff] %v9440_v38 }
 0x2ff   : > { %7438 = vmatmul.mubr.msk.bf16.gmra.mrb[4].mxu1 %vm940_vm0, %v5084_v25 }
 0x326   : > { %v9323_v40 = vpop.f32.mrb[68].mxu0 }
 0x327   : > { %v9325_v48 = vpop.f32.mrb[69].mxu0 }
 0x328   : > { %v9327_v47 = vpop.f32.mrb[70].mxu0 }
 0x329   : > { %v9329_v36 = vpop.f32.mrb[71].mxu0 }
 0x32e   : > { %v9331_v60 = vpop.f32.mrb[72].mxu0 }
 0x32f   : > { %v9333_v49 = vpop.f32.mrb[73].mxu0 }
 0x330   : > { %v9335_v54 = vpop.f32.mrb[74].mxu0 }
 0x331   : > { %v9337_v3 = vpop.f32.mrb[75].mxu0 }
 0x336   : > { %v9339_v22 = vpop.f32.mrb[64].mxu0 }
 0x337   : > { %v9341_v44 = vpop.f32.mrb[65].mxu0 }
 0x338   : > { %v9343_v33 = vpop.f32.mrb[66].mxu0 }
 0x339   : > { %v9345_v52 = vpop.f32.mrb[67].mxu0 }
 0x3c2   : > { %v7431_v43 = vpop.f32.mrb[8].mxu1 }
 0x3c3   : > { %v7449_v5 = vadd.f32 %v7431_v43, %v9339_v22  ;;  %v5161_v16 = vpop.f32.mrb[9].mxu1  ;;  %v9447_v22 = vrot.slane %v5286_v21, %v9398_v62 }
 0x3c4   : > { %v7450_v25 = vadd.f32 %v5161_v16, %v9341_v44  ;;  %v7432_v18 = vpop.f32.mrb[10].mxu1  ;;  %v5386_v44 = vmul.f32 %v9383_v30, %v5370_v41  ;;  %v5371_v41 = vld [vmem:[#allocation3 + $0x12] sm:$0xff] }
 0x3c5   : > { %10404 = vst [vmem:[#allocation10_spill] sm:$0xff] %v9447_v22  ;;  %v5229_v28 = vadd.f32 %v7449_v5, %v9426_v26  ;;  %v7451_v17 = vadd.f32 %v7432_v18, %v9343_v33  ;;  %v5164_v50 = vpop.f32.mrb[11].mxu1  ;;  %v5506_v33 = vadd.f32 %v5494_v23, %v5477_v58  ;;  %v9473_v5 = vrot.slane %v5287_v0, %v9367_v55 }
 0x3c6   : > { %v5227_v10 = vadd.f32 %v7450_v25, %v9426_v26  ;;  %v7452_v19 = vadd.f32 %v5164_v50, %v9345_v52  ;;  %v9465_v52 = vrot.slane %v5286_v21, %v9403_v59  ;;  %v5398_v58 = vadd.f32 %v5386_v44, %v5358_v15 }
 0x3c7   : > { %v5241_v53 = vmax.f32 %v5229_v28, 0.0  ;;  %v5230_v1 = vadd.f32 %v7451_v17, %v9426_v26  ;;  %10407 = vst [vmem:[#allocation15_spill] sm:$0xff] %v9473_v5  ;;  %v5426_v23 = vmul.f32 %v9390_v56, %v5410_v9  ;;  %v9478_v25 = vrot.slane %v5287_v0, %v9369_v63 }
 0x3c8   : > { %10406 = vst [vmem:[#allocation12_spill] sm:$0xff] %v9465_v52  ;;  %v5239_v6 = vmax.f32 %v5227_v10, 0.0  ;;  %v5228_v42 = vadd.f32 %v7452_v19, %v9426_v26  ;;  %v5546_v28 = vadd.f32 %v5534_v39, %v5506_v33  ;;  %v5574_v55 = vmul.f32 %v9418_v20, %v5558_v13 }
 0x3c9   : > { %5275 = vst.msk [vmem:[#allocation3 + $0x2a] sm:$0xf] %vm5274_vm8, %v5241_v53  ;;  %v5242_v43 = vmax.f32 %v5230_v1, 0.0  ;;  %10408 = vst [vmem:[#allocation16_spill] sm:$0xff] %v9478_v25  ;;  %v9484_v17 = vrot.slane %v5287_v0, %v9380_v29  ;;  %v9487_v50 = vrot.slane %v5287_v0, %v9385_v51  ;;  %v9490_v10 = vrot.slane %v5287_v0, %v9392_v61 }
 0x3ca   : > { %5271 = vst.msk [vmem:[#allocation3 + $0x1a] sm:$0xff] %vm940_vm0, %v5239_v6  ;;  %v5240_v21 = vmax.f32 %v5228_v42, 0.0  ;;  %v7435_v16 = vpop.f32.mrb[0].mxu1  ;;  %v5359_v53 = vadd.f32 %v5347_v14, %v5307_v7  ;;  %v5387_v29 = vmul.f32 %v9383_v30, %v5371_v41  ;;  %v5438_v61 = vadd.f32 %v5426_v23, %v5398_v58 }
 0x3cb   : > { %5276 = vst.msk [vmem:[#allocation3 + $0x32] sm:$0xff] %vm940_vm0, %v5242_v43  ;;  %v7453_v18 = vadd.f32 %v7435_v16, %v9323_v40  ;;  %v5177_v46 = vpop.f32.mrb[1].mxu1  ;;  %10409 = vst [vmem:[#allocation14_spill] sm:$0xff] %v9484_v17  ;;  %v5466_v9 = vmul.f32 %v9396_v32, %v9412_v27  ;;  %v5586_v39 = vadd.f32 %v5574_v55, %v5546_v28 }
 0x3cc   : > { %10410 = vst [vmem:[#allocation17_spill] sm:$0xff] %v9487_v50  ;;  %10411 = vst [vmem:[#allocation18_spill] sm:$0xff] %v9490_v10  ;;  %v7454_v63 = vadd.f32 %v5177_v46, %v9325_v48  ;;  %v7436_v19 = vpop.f32.mrb[2].mxu1  ;;  %v5614_v6 = vmul.f32 %v9421_v31, %v5598_v57  ;;  %v9507_v42 = vrot.slane %v5287_v0, %v9401_v34 }
 0x3cd   : > { %5273 = vst.msk [vmem:[#allocation3 + $0x22] sm:$0xf0] %vm5272_vm9, %v5240_v21  ;;  %v5233_v40 = vadd.f32 %v7453_v18, %v9426_v26  ;;  %v7455_v15 = vadd.f32 %v7436_v19, %v9327_v47  ;;  %v5180_v44 = vpop.f32.mrb[3].mxu1  ;;  %v9504_v47 = vrot.slane %v5287_v0, %v9398_v62  ;;  %v5399_v62 = vadd.f32 %v5387_v29, %v5359_v53 }
 0x3ce   : > { %v5231_v51 = vadd.f32 %v7454_v63, %v9426_v26  ;;  %v7456_v1 = vadd.f32 %v5180_v44, %v9329_v36  ;;  %10413 = vst [vmem:[#allocation20_spill] sm:$0xff] %v9507_v42  ;;  %v9511_v36 = vrot.slane %v5287_v0, %v9403_v59  ;;  %v5644_v34 = vmul.f32 %v9431_v11, %v9453_v24 }
 0x3cf   : > { %v5245_v33 = vmax.f32 %v5233_v40, 0.0  ;;  %v5234_v48 = vadd.f32 %v7455_v15, %v9426_v26  ;;  %10412 = vst [vmem:[#allocation19_spill] sm:$0xff] %v9504_v47  ;;  %v9533_v46 = vadd.f32 %v5466_v9, %v5438_v61  ;;  %v5626_v57 = vadd.f32 %v5614_v6, %v5586_v39 }
 0x3d0   : > { %v5243_v13 = vmax.f32 %v5231_v51, 0.0  ;;  %v5232_v43 = vadd.f32 %v7456_v1, %v9426_v26  ;;  %10414 = vst [vmem:[#allocation21_spill] sm:$0xff] %v9511_v36 }
 0x3d1   : > { %5279 = vst.msk [vmem:[#allocation3 + $0x4a] sm:$0xff] %vm940_vm0, %v5245_v33  ;;  %v5246_v27 = vmax.f32 %v5234_v48, 0.0  ;;  %v9514_v7 = vld [vmem:[#allocation3 + $0x18] sm:$0xff] }
 0x3d2   : > { %v9516_v14 = vld [vmem:[#allocation3 + $0x19] sm:$0xff]  ;;  %5277 = vst.msk [vmem:[#allocation3 + $0x3a] sm:$0xf0] %vm5272_vm9, %v5243_v13  ;;  %v5244_v16 = vmax.f32 %v5232_v43, 0.0  ;;  %v7439_v41 = vpop.f32.mrb[4].mxu1  ;;  %v9523_v58 = vld [vmem:[#allocation3 + $0x30] sm:$0xff]  ;;  %v5308_v59 = vmul.f32 %v9375_v45, %v9514_v7 }
 0x3d3   : > { %v9518_v21 = vld [vmem:[#allocation3 + $0x1a] sm:$0xff]  ;;  %v9527_v0 = vld [vmem:[#allocation3 + $0x31] sm:$0xff]  ;;  %v5348_v23 = vmul.f32 %v9378_v8, %v9516_v14  ;;  %5280 = vst.msk [vmem:[#allocation3 + $0x52] sm:$0xf0] %vm5272_vm9, %v5246_v27  ;;  %v7457_v24 = vadd.f32 %v7439_v41, %v9331_v60  ;;  %v5193_v28 = vpop.f32.mrb[5].mxu1  ;;  %v5311_v55 = vmul.f32 %v9375_v45, %v9523_v58 }
 0x3d4   : > { %v9531_v18 = vld [vmem:[#allocation3 + $0x32] sm:$0xff]  ;;  %v5351_v63 = vmul.f32 %v9378_v8, %v9527_v0  ;;  %5278 = vst.msk [vmem:[#allocation3 + $0x42] sm:$0xf] %vm5274_vm8, %v5244_v16  ;;  %v7458_v40 = vadd.f32 %v5193_v28, %v9333_v49  ;;  %v7440_v15 = vpop.f32.mrb[6].mxu1  ;;  %v5388_v53 = vmul.f32 %v9383_v30, %v9518_v21  ;;  %v9545_v29 = vld [vmem:[#allocation3 + $0x1b] sm:$0xff] }
 0x3d5   : > { %v5411_v19 = vld [vmem:[#allocation3 + $0x13] sm:$0xff]  ;;  %v5360_v44 = vadd.f32 %v5348_v23, %v5308_v59  ;;  %v5237_v1 = vadd.f32 %v7457_v24, %v9426_v26  ;;  %v7459_v61 = vadd.f32 %v7440_v15, %v9335_v54  ;;  %v5196_v9 = vpop.f32.mrb[7].mxu1  ;;  %v5391_v49 = vmul.f32 %v9383_v30, %v9531_v18  ;;  %v9558_v27 = vld [vmem:[#allocation3 + $0x1c] sm:$0xff]  ;;  %v5374_v54 = vld [vmem:[#allocation3 + $0x2a] sm:$0xff] }
 0x3d6   : > { %v9547_v60 = vld [vmem:[#allocation3 + $0x33] sm:$0xff]  ;;  %v5427_v51 = vmul.f32 %v9390_v56, %v5411_v19  ;;  %v5363_v33 = vadd.f32 %v5351_v63, %v5311_v55  ;;  %v5235_v48 = vadd.f32 %v7458_v40, %v9426_v26  ;;  %v7460_v39 = vadd.f32 %v5196_v9, %v9337_v3  ;;  %v9564_v63 = vld [vmem:[#allocation3 + $0x24] sm:$0xff] }
 0x3d7   : > { %v5400_v6 = vadd.f32 %v5388_v53, %v5360_v44  ;;  %v5428_v13 = vmul.f32 %v9390_v56, %v9545_v29  ;;  %v5451_v43 = vld [vmem:[#allocation3 + $0x14] sm:$0xff]  ;;  %v5249_v16 = vmax.f32 %v5237_v1, 0.0  ;;  %v5238_v41 = vadd.f32 %v7459_v61, %v9426_v26  ;;  %v5334_v40 = vld [vmem:[#allocation3 + $0x29] sm:$0xff]  ;;  %v5520_v9 = vld [vmem:[#allocation3 + $0x1d] sm:$0xff] }
 0x3d8   : > { %v5403_v59 = vadd.f32 %v5391_v49, %v5363_v33  ;;  %v5431_v23 = vmul.f32 %v9390_v56, %v9547_v60  ;;  %v5247_v24 = vmax.f32 %v5235_v48, 0.0  ;;  %v5236_v28 = vadd.f32 %v7460_v39, %v9426_v26  ;;  %v5414_v15 = vld [vmem:[#allocation3 + $0x2b] sm:$0xff]  ;;  %v9567_v44 = vld [vmem:[#allocation3 + $0x34] sm:$0xff] }
 0x3d9   : > { %v5439_v55 = vadd.f32 %v5427_v51, %v5399_v62  ;;  %v5440_v3 = vadd.f32 %v5428_v13, %v5400_v6  ;;  %5283 = vst.msk [vmem:[#allocation3 + $0x6a] sm:$0xf0] %vm5272_vm9, %v5249_v16  ;;  %v5250_v19 = vmax.f32 %v5238_v41, 0.0  ;;  %v5467_v53 = vmul.f32 %v9396_v32, %v5451_v43  ;;  %v5521_v33 = vld [vmem:[#allocation3 + $0x25] sm:$0xff] }
 0x3da   : > { %v5468_v1 = vmul.f32 %v9396_v32, %v9558_v27  ;;  %v5656_v61 = vadd.f32 %v5644_v34, %v5626_v57  ;;  %5281 = vst.msk [vmem:[#allocation3 + $0x5a] sm:$0xf] %vm5274_vm8, %v5247_v24  ;;  %v5248_v26 = vmax.f32 %v5236_v28, 0.0  ;;  %v9574_v62 = vmul.f32 %v9383_v30, %v5374_v54  ;;  %v9580_v48 = vld [vmem:[#allocation3 + $0x2c] sm:$0xff]  ;;  %v5560_v13 = vld [vmem:[#allocation3 + $0x1e] sm:$0xff] }
 0x3db   : > { %v5443_v51 = vadd.f32 %v5431_v23, %v5403_v59  ;;  %v9577_v49 = vmul.f32 %v9443_v4, %v5374_v54  ;;  %5284 = vst.msk [vmem:[#allocation3 + $0x72] sm:$0xf] %vm5274_vm8, %v5250_v19  ;;  %v5479_v39 = vadd.f32 %v5467_v53, %v5439_v55  ;;  %v5496_v34 = vmul.f32 %v9409_v35, %v9558_v27  ;;  %v5561_v23 = vld [vmem:[#allocation3 + $0x26] sm:$0xff]  ;;  %v9596_v55 = vld [vmem:[#allocation3 + $0x35] sm:$0xff] }
 0x3dc   : > { %v5480_v6 = vadd.f32 %v5468_v1, %v5440_v3  ;;  %v5497_v57 = vmul.f32 %v9409_v35, %v9564_v63  ;;  %5282 = vst.msk [vmem:[#allocation3 + $0x62] sm:$0xff] %vm940_vm0, %v5248_v26  ;;  %v9588_v16 = vmul.f32 %v9378_v8, %v5334_v40  ;;  %v9591_v41 = vmul.f32 %v9390_v56, %v5414_v15  ;;  %v5600_v53 = vld [vmem:[#allocation3 + $0x1f] sm:$0xff]  ;;  %v5601_v1 = vld [vmem:[#allocation3 + $0x27] sm:$0xff] }
 0x3dd   : > { %10415 = vst [vmem:[#allocation22_spill] sm:$0xff] %v9577_v49  ;;  %v5471_v54 = vmul.f32 %v9396_v32, %v9567_v44  ;;  %v5495_v59 = vmul.f32 %v9409_v35, %v5451_v43  ;;  %v5508_v24 = vadd.f32 %v5496_v34, %v5479_v39  ;;  %10416 = vst [vmem:[#allocation23_spill] sm:$0xff] %v9596_v55 }
 0x3de   : > { %v5509_v28 = vadd.f32 %v5497_v57, %v5480_v6  ;;  %v5536_v3 = vmul.f32 %v9415_v37, %v5520_v9  ;;  %v5537_v19 = vmul.f32 %v9415_v37, %v5521_v33  ;;  %v9602_v26 = vmul.f32 %v9396_v32, %v9580_v48 }
 0x3df   : > { %v9604_v49 = vadd.f32 %v5471_v54, %v5443_v51  ;;  %v9608_v43 = vmul.f32 %v9409_v35, %v9567_v44  ;;  %v5576_v39 = vmul.f32 %v9418_v20, %v5560_v13  ;;  %v5577_v9 = vmul.f32 %v9418_v20, %v5561_v23 }
 0x3e0   : > { %v5548_v6 = vadd.f32 %v5536_v3, %v5508_v24  ;;  %v5549_v34 = vadd.f32 %v5537_v19, %v5509_v28  ;;  %v5673_v57 = vmul.f32 %v9437_v2, %v9514_v7  ;;  %v9615_v56 = vadd.f32 %v5495_v59, %v9533_v46 }
 0x3e1   : > { %10417 = vst [vmem:[#allocation24_spill] sm:$0xff] %v9604_v49  ;;  %10418 = vst [vmem:[#allocation25_spill] sm:$0xff] %v9608_v43  ;;  %v9619_v51 = vmul.f32 %v9415_v37, %v9596_v55  ;;  %v5616_v54 = vmul.f32 %v9421_v31, %v5600_v53  ;;  %v5617_v49 = vmul.f32 %v9421_v31, %v5601_v1 }
 0x3e2   : > { %v5588_v43 = vadd.f32 %v5576_v39, %v5548_v6  ;;  %v5589_v13 = vadd.f32 %v5577_v9, %v5549_v34  ;;  %v5685_v24 = vadd.f32 %v5673_v57, %v5656_v61  ;;  %v5704_v28 = vmul.f32 %v9440_v38, %v9516_v14  ;;  %v5294_v6 = vld [vmem:[#allocation3 + $0x28] sm:$0xff] }
 0x3e3   : > { %v5676_v3 = vmul.f32 %v9437_v2, %v9523_v58  ;;  %v5706_v46 = vmul.f32 %v9440_v38, %v5334_v40  ;;  %v5707_v59 = vmul.f32 %v9440_v38, %v9527_v0  ;;  %v5735_v19 = vmul.f32 %v9443_v4, %v9518_v21  ;;  %v9704_v38 = vld [vmem:[#allocation3 + $0x21] sm:$0xff] }
 0x3e4   : > { %v5716_v53 = vadd.f32 %v5704_v28, %v5685_v24  ;;  %v9634_v39 = vmul.f32 %v9443_v4, %v9531_v18  ;;  %v5766_v61 = vmul.f32 %v9447_v22, %v9545_v29  ;;  %v9639_v14 = vmul.f32 %v9447_v22, %v5414_v15 }
 0x3e5   : > { %v5628_v34 = vadd.f32 %v5616_v54, %v5588_v43  ;;  %v5629_v40 = vadd.f32 %v5617_v49, %v5589_v13  ;;  %v9643_v9 = vmul.f32 %v9447_v22, %v9547_v60  ;;  %v5796_v21 = vmul.f32 %v9462_v12, %v9558_v27  ;;  %v9657_v49 = vld [vmem:[#allocation3 + $0x20] sm:$0xff]  ;;  %v9659_v43 = vld [vmem:[#allocation3 + $0x38] sm:$0xff] }
 0x3e6   : > { %v5747_v57 = vadd.f32 %v5735_v19, %v5716_v53  ;;  %v9649_v24 = vmul.f32 %v9462_v12, %v9580_v48  ;;  %v9653_v29 = vmul.f32 %v9462_v12, %v9567_v44  ;;  %v5825_v15 = vmul.f32 %v9465_v52, %v9564_v63  ;;  %v9668_v19 = vld [vmem:[#allocation3 + $0x39] sm:$0xff] }
 0x3e7   : > { %v9663_v54 = vmul.f32 %v9465_v52, %v9567_v44  ;;  %v5856_v27 = vmul.f32 %v9473_v5, %v5521_v33  ;;  %v5887_v13 = vmul.f32 %v9478_v25, %v5561_v23  ;;  %v5918_v28 = vmul.f32 %v9484_v17, %v5601_v1 }
 0x3e8   : > { %v5778_v53 = vadd.f32 %v5766_v61, %v5747_v57  ;;  %v5948_v55 = vmul.f32 %v9487_v50, %v5294_v6  ;;  %v9673_v12 = vmul.f32 %v9490_v10, %v9523_v58  ;;  %v5310_v22 = vmul.f32 %v9375_v45, %v5294_v6  ;;  %v9685_v61 = vld [vmem:[#allocation3 + $0x3a] sm:$0xff]  ;;  %v9690_v57 = vld [vmem:[%s10309_s6 + $0x18] ss:$0 sm:$0xff] }
 0x3e9   : > { %v9678_v52 = vmul.f32 %v9504_v47, %v9527_v0  ;;  %v5646_v33 = vmul.f32 %v9431_v11, %v9657_v49  ;;  %v5647_v23 = vmul.f32 %v9431_v11, %v5294_v6  ;;  %v5312_v1 = vmul.f32 %v9375_v45, %v9659_v43  ;;  %10419 = vst [vmem:[#allocation26_spill] sm:$0xff] %v9690_v57 }
 0x3ea   : > { %v5808_v10 = vadd.f32 %v5796_v21, %v5778_v53  ;;  %v9694_v0 = vmul.f32 %v9507_v42, %v9531_v18  ;;  %v5362_v47 = vadd.f32 %v9588_v16, %v5310_v22  ;;  %v5352_v50 = vmul.f32 %v9378_v8, %v9668_v19  ;;  %v9707_v42 = vld [vmem:[#allocation3 + $0x22] sm:$0xff] }
 0x3eb   : > { %v9701_v17 = vmul.f32 %v9511_v36, %v9547_v60  ;;  %v5658_v25 = vadd.f32 %v5646_v33, %v5628_v34  ;;  %v5659_v5 = vadd.f32 %v5647_v23, %v5629_v40  ;;  %v5675_v4 = vmul.f32 %v9437_v2, %v5294_v6  ;;  %v9711_v16 = vld [vmem:[#allocation3 + $0x3c] sm:$0xff] }
 0x3ec   : > { %v5837_v21 = vadd.f32 %v5825_v15, %v5808_v10  ;;  %v5402_v53 = vadd.f32 %v9574_v62, %v5362_v47  ;;  %v5364_v18 = vadd.f32 %v5352_v50, %v5312_v1  ;;  %v5392_v22 = vmul.f32 %v9383_v30, %v9685_v61  ;;  %v5413_v40 = vld [vmem:[#allocation3 + $0x23] sm:$0xff]  ;;  %v9721_v47 = vld [vmem:[#allocation3 + $0x3b] sm:$0xff] }
 0x3ed   : > { %v9715_v60 = vmul.f32 %v9690_v57, %v9567_v44  ;;  %v9719_v6 = vmul.f32 %v9375_v45, %v9657_v49  ;;  %v5687_v34 = vadd.f32 %v5675_v4, %v5658_v25  ;;  %v5688_v10 = vadd.f32 %v5676_v3, %v5659_v5  ;;  %v5519_v23 = vld [vmem:[#allocation3 + $0x15] sm:$0xff]  ;;  %v10420_v3 = vld [vmem:[#allocation5_spill] sm:$0xff] }
 0x3ee   : > { %v5868_v50 = vadd.f32 %v5856_v27, %v5837_v21  ;;  %v5442_v62 = vadd.f32 %v9591_v41, %v5402_v53  ;;  %v9726_v15 = vmul.f32 %v9378_v8, %v9704_v38  ;;  %v5404_v33 = vadd.f32 %v5392_v22, %v5364_v18  ;;  %v5559_v21 = vld [vmem:[#allocation3 + $0x16] sm:$0xff]  ;;  %v10422_v53 = vld [vmem:[#allocation22_spill] sm:$0xff] }
 0x3ef   : > { %v5718_v44 = vadd.f32 %v5706_v46, %v5687_v34  ;;  %v5719_v1 = vadd.f32 %v5707_v59, %v5688_v10  ;;  %v9730_v57 = vmul.f32 %v9383_v30, %v9707_v42  ;;  %v5500_v4 = vmul.f32 %v9409_v35, %v9711_v16  ;;  %v9746_v22 = vld [vmem:[#allocation3 + $0x3d] sm:$0xff] }
 0x3f0   : > { %v5899_v5 = vadd.f32 %v5887_v13, %v5868_v50  ;;  %v5482_v25 = vadd.f32 %v9602_v26, %v5442_v62  ;;  %v9736_v41 = vmul.f32 %v10420_v3, %v5413_v40  ;;  %v5432_v27 = vmul.f32 %v10420_v3, %v9721_v47  ;;  %10424 = vst [vmem:[#allocation28_spill] sm:$0xff] %v9746_v22  ;;  %v10425_v34 = vld [vmem:[#allocation25_spill] sm:$0xff]  ;;  %v10426_v62 = vld [vmem:[#allocation24_spill] sm:$0xff]  ;;  %v5522_v3 = vld [vmem:[#allocation3 + $0x2d] sm:$0xff] }
 0x3f1   : > { %v5749_v46 = vadd.f32 %v10422_v53, %v5718_v44  ;;  %v5750_v59 = vadd.f32 %v9634_v39, %v5719_v1  ;;  %v9744_v18 = vmul.f32 %v9396_v32, %v9564_v63  ;;  %v5535_v13 = vmul.f32 %v9415_v37, %v5519_v23  ;;  %v5599_v36 = vld [vmem:[#allocation3 + $0x17] sm:$0xff] }
 0x3f2   : > { %10421 = vst [vmem:[#allocation27_spill] sm:$0xff] %v9736_v41  ;;  %v5930_v26 = vadd.f32 %v5918_v28, %v5899_v5  ;;  %v5511_v10 = vadd.f32 %v10425_v34, %v5482_v25  ;;  %v5444_v50 = vadd.f32 %v5432_v27, %v5404_v33  ;;  %v5512_v41 = vadd.f32 %v5500_v4, %v10426_v62  ;;  %v5562_v4 = vld [vmem:[#allocation3 + $0x2e] sm:$0xff] }
 0x3f3   : > { %10423 = vst [vmem:[#allocation22_spill] sm:$0xff] %v9744_v18  ;;  %v5780_v44 = vadd.f32 %v9639_v14, %v5749_v46  ;;  %v5781_v39 = vadd.f32 %v9643_v9, %v5750_v59  ;;  %v5547_v1 = vadd.f32 %v5535_v13, %v9615_v56  ;;  %v5575_v53 = vmul.f32 %v9418_v20, %v5559_v21  ;;  %v5602_v5 = vld [vmem:[#allocation3 + $0x2f] sm:$0xff] }
 0x3f4   : > { %v5960_v18 = vadd.f32 %v5948_v55, %v5930_v26  ;;  %v5472_v23 = vmul.f32 %v9396_v32, %v9711_v16  ;;  %v9759_v28 = vmul.f32 %v9409_v35, %v9580_v48  ;;  %v5540_v33 = vmul.f32 %v9415_v37, %v9746_v22 }
 0x3f5   : > { %v5810_v14 = vadd.f32 %v9649_v24, %v5780_v44  ;;  %v9765_v9 = vmul.f32 %v9415_v37, %v5522_v3  ;;  %v5587_v56 = vadd.f32 %v5575_v53, %v5547_v1  ;;  %v5615_v55 = vmul.f32 %v9421_v31, %v5599_v36 }
 0x3f6   : > { %v5989_v25 = vadd.f32 %v9673_v12, %v5960_v18  ;;  %v9770_v27 = vadd.f32 %v9619_v51, %v5511_v10  ;;  %v5484_v21 = vadd.f32 %v5472_v23, %v5444_v50  ;;  %v9772_v46 = vadd.f32 %v5540_v33, %v5512_v41  ;;  %v10431_v50 = vld [vmem:[#allocation9_spill] sm:$0xff] }
 0x3f7   : > { %v5811_v59 = vadd.f32 %v9653_v29, %v5781_v39  ;;  %v9776_v13 = vmul.f32 %v9418_v20, %v5562_v4  ;;  %v5627_v24 = vadd.f32 %v5615_v55, %v5587_v56  ;;  %v5645_v26 = vmul.f32 %v9431_v11, %v9514_v7  ;;  %v10433_v39 = vld [vmem:[#allocation10_spill] sm:$0xff]  ;;  %v9828_v55 = vld [vmem:[#allocation3 + $0x41] sm:$0xff] }
 0x3f8   : > { %10427 = vst [vmem:[#allocation25_spill] sm:$0xff] %v9772_v46  ;;  %v6020_v34 = vadd.f32 %v9678_v52, %v5989_v25  ;;  %v9782_v36 = vadd.f32 %v9663_v54, %v5810_v14  ;;  %v9785_v12 = vmul.f32 %v9421_v31, %v5602_v5  ;;  %v9789_v51 = vmul.f32 %v9431_v11, %v9523_v58  ;;  %v10429_v52 = vld [vmem:[#allocation8_spill] sm:$0xff] }
 0x3f9   : > { %v5657_v29 = vadd.f32 %v5645_v26, %v5627_v24  ;;  %v5674_v41 = vmul.f32 %v9437_v2, %v9657_v49  ;;  %v9795_v18 = vmul.f32 %v9437_v2, %v9659_v43  ;;  %v5705_v7 = vmul.f32 %v10429_v52, %v9704_v38  ;;  %v10435_v38 = vld [vmem:[#allocation11_spill] sm:$0xff] }
 0x3fa   : > { %v6051_v54 = vadd.f32 %v9694_v0, %v6020_v34  ;;  %v9802_v10 = vmul.f32 %v10429_v52, %v9668_v19  ;;  %v5736_v62 = vmul.f32 %v10431_v50, %v9707_v42  ;;  %v9808_v44 = vmul.f32 %v10431_v50, %v9685_v61  ;;  %v10437_v42 = vld [vmem:[#allocation12_spill] sm:$0xff]  ;;  %v10438_v24 = vld [vmem:[#allocation15_spill] sm:$0xff] }
 0x3fb   : > { %10428 = vst [vmem:[#allocation24_spill] sm:$0xff] %v9795_v18  ;;  %v5686_v49 = vadd.f32 %v5674_v41, %v5657_v29  ;;  %v5767_v1 = vmul.f32 %v10433_v39, %v5413_v40  ;;  %v9813_v53 = vmul.f32 %v10433_v39, %v9721_v47  ;;  %v5797_v0 = vmul.f32 %v10435_v38, %v9564_v63  ;;  %v9826_v40 = vld [vmem:[#allocation3 + $0x40] sm:$0xff]  ;;  %v5603_v46 = vld [vmem:[#allocation3 + $0x37] sm:$0xff]  ;;  %v10455_v18 = vld [vmem:[#allocation22_spill] sm:$0xff] }
 0x3fc   : > { %10430 = vst [vmem:[#allocation8_spill] sm:$0xff] %v9802_v10  ;;  %10432 = vst [vmem:[#allocation9_spill] sm:$0xff] %v9808_v44  ;;  %v6082_v23 = vadd.f32 %v9701_v17, %v6051_v54  ;;  %v9820_v33 = vmul.f32 %v10435_v38, %v9711_v16  ;;  %v5826_v14 = vmul.f32 %v10437_v42, %v9580_v48  ;;  %v10439_v63 = vld [vmem:[#allocation16_spill] sm:$0xff]  ;;  %v10440_v17 = vld [vmem:[#allocation14_spill] sm:$0xff] }
 0x3fd   : > { %10434 = vst [vmem:[#allocation10_spill] sm:$0xff] %v9813_v53  ;;  %v5828_v56 = vmul.f32 %v10437_v42, %v9711_v16  ;;  %v5717_v25 = vadd.f32 %v5705_v7, %v5686_v49  ;;  %v5857_v26 = vmul.f32 %v10438_v24, %v5522_v3  ;;  %v5888_v34 = vmul.f32 %v10439_v63, %v5562_v4  ;;  %v10441_v54 = vld [vmem:[#allocation17_spill] sm:$0xff]  ;;  %v10442_v48 = vld [vmem:[#allocation18_spill] sm:$0xff]  ;;  %v10445_v44 = vld [vmem:[#allocation19_spill] sm:$0xff] }
 0x3fe   : > { %10436 = vst [vmem:[#allocation11_spill] sm:$0xff] %v9820_v33  ;;  %v5919_v29 = vmul.f32 %v10440_v17, %v5602_v5  ;;  %v6112_v41 = vadd.f32 %v9715_v60, %v6082_v23  ;;  %v9836_v33 = vmul.f32 %v10441_v54, %v9523_v58  ;;  %v9840_v22 = vmul.f32 %v10442_v48, %v9659_v43  ;;  %v9844_v7 = vld [vmem:[#allocation3 + $0x42] sm:$0xff]  ;;  %v5563_v5 = vld [vmem:[#allocation3 + $0x36] sm:$0xff] }
 0x3ff   : > { %v5361_v53 = vadd.f32 %v9726_v15, %v9719_v6  ;;  %v9846_v3 = vld [vmem:[#allocation3 + $0x44] sm:$0xff]  ;;  %v5748_v4 = vadd.f32 %v5736_v62, %v5717_v25  ;;  %v9848_v49 = vadd.f32 %v5828_v56, %v5811_v59  ;;  %v5313_v60 = vmul.f32 %v9375_v45, %v9826_v40  ;;  %v10447_v6 = vld [vmem:[#allocation20_spill] sm:$0xff] }
 0x400   : > { %10443 = vst [vmem:[#allocation12_spill] sm:$0xff] %v9840_v22  ;;  %v5353_v58 = vmul.f32 %v9378_v8, %v9828_v55  ;;  %v6124_v23 = vsel %vm940_vm0, %v6112_v41, 0.0  ;;  %v9857_v10 = vmul.f32 %v10445_v44, %v9668_v19  ;;  %v9861_v15 = vmul.f32 %v10447_v6, %v9685_v61  ;;  %v9864_v62 = vld [vmem:[#allocation3 + $0x43] sm:$0xff] }
 0x401   : > { %10444 = vst [vmem:[#allocation15_spill] sm:$0xff] %v9848_v49  ;;  %v5401_v59 = vadd.f32 %v9730_v57, %v5361_v53  ;;  %6125 = vadd.xlane.f32.xlu0 %v6124_v23  ;;  %v5779_v56 = vadd.f32 %v5767_v1, %v5748_v4  ;;  %v5393_v49 = vmul.f32 %v9383_v30, %v9844_v7  ;;  %v10449_v19 = vld [vmem:[#allocation21_spill] sm:$0xff]  ;;  %v10450_v61 = vld [vmem:[#allocation26_spill] sm:$0xff]  ;;  %v10452_v57 = vld [vmem:[#allocation27_spill] sm:$0xff] }
 0x402   : > { %10446 = vst [vmem:[#allocation16_spill] sm:$0xff] %v9857_v10  ;;  %10448 = vst [vmem:[#allocation14_spill] sm:$0xff] %v9861_v15  ;;  %v5365_v25 = vadd.f32 %v5353_v58, %v5313_v60  ;;  %v5501_v41 = vmul.f32 %v9409_v35, %v9846_v3  ;;  %v9872_v10 = vmul.f32 %v10449_v19, %v9721_v47  ;;  %v9879_v23 = vld [vmem:[#allocation3 + $0x45] sm:$0xff] }
 0x403   : > { %v9876_v15 = vmul.f32 %v10450_v61, %v9711_v16  ;;  %v5441_v53 = vadd.f32 %v10452_v57, %v5401_v59  ;;  %10453 = vst [vmem:[#allocation18_spill] sm:$0xff] %v9879_v23  ;;  %v5579_v1 = vmul.f32 %v9418_v20, %v5563_v5  ;;  %v5809_v4 = vadd.f32 %v5797_v0, %v5779_v56  ;;  %v10454_v58 = vld [vmem:[#allocation5_spill] sm:$0xff] }
 0x404   : > { %v5405_v60 = vadd.f32 %v5393_v49, %v5365_v25  ;;  %v5433_v35 = vmul.f32 %v10454_v58, %v9864_v62  ;;  %v5513_v30 = vadd.f32 %v5501_v41, %v5484_v21  ;;  %v5473_v47 = vmul.f32 %v9396_v32, %v9846_v3 }
 0x405   : > { %10451 = vst [vmem:[#allocation17_spill] sm:$0xff] %v9876_v15  ;;  %v5481_v22 = vadd.f32 %v10455_v18, %v5441_v53  ;;  %v5591_v16 = vadd.f32 %v5579_v1, %v9770_v27  ;;  %v5619_v15 = vmul.f32 %v9421_v31, %v5603_v46  ;;  %v5838_v59 = vadd.f32 %v5826_v14, %v5809_v4  ;;  %v10457_v53 = vld [vmem:[#allocation23_spill] sm:$0xff] }
 0x406   : > { %v5541_v57 = vmul.f32 %v9415_v37, %v9879_v23  ;;  %v5649_v0 = vmul.f32 %v9431_v11, %v9659_v43  ;;  %v5678_v49 = vmul.f32 %v9437_v2, %v9826_v40  ;;  %v5445_v18 = vadd.f32 %v5433_v35, %v5405_v60 }
 0x407   : > { %v5510_v21 = vadd.f32 %v9759_v28, %v5481_v22  ;;  %v5631_v56 = vadd.f32 %v5619_v15, %v5591_v16  ;;  %v5709_v25 = vmul.f32 %v10429_v52, %v9828_v55  ;;  %v5869_v27 = vadd.f32 %v5857_v26, %v5838_v59  ;;  %v9909_v28 = vld [vmem:[#allocation3 + $0x48] sm:$0xff] }
 0x408   : > { %v9898_v41 = vadd.f32 %v5541_v57, %v5513_v30  ;;  %v5740_v14 = vmul.f32 %v10431_v50, %v9844_v7  ;;  %v5858_v1 = vmul.f32 %v10438_v24, %v10457_v53  ;;  %v5771_v22 = vmul.f32 %v10433_v39, %v9864_v62  ;;  %v9917_v16 = vld [vmem:[#allocation3 + $0x49] sm:$0xff] }
 0x409   : > { %v5550_v4 = vadd.f32 %v9765_v9, %v5510_v21  ;;  %v5661_v23 = vadd.f32 %v5649_v0, %v5631_v56  ;;  %v5801_v35 = vmul.f32 %v10435_v38, %v9846_v3  ;;  %v5900_v26 = vadd.f32 %v5888_v34, %v5869_v27 }
 0x40a   : > { %10456 = vst [vmem:[#allocation19_spill] sm:$0xff] %v9898_v41  ;;  %v9913_v30 = vmul.f32 %v10437_v42, %v9846_v3  ;;  %v5870_v15 = vadd.f32 %v5858_v1, %v9782_v36  ;;  %v5889_v60 = vmul.f32 %v10439_v63, %v5563_v5  ;;  %v5485_v59 = vadd.f32 %v5473_v47, %v5445_v18 }
 0x40b   : > { %v5590_v9 = vadd.f32 %v9776_v13, %v5550_v4  ;;  %v5690_v57 = vadd.f32 %v5678_v49, %v5661_v23  ;;  %v5920_v0 = vmul.f32 %v10440_v17, %v5603_v46  ;;  %v5931_v21 = vadd.f32 %v5919_v29, %v5900_v26  ;;  %v5564_v23 = vld [vmem:[#allocation3 + $0x3e] sm:$0xff]  ;;  %v9935_v49 = vld [vmem:[#allocation3 + $0x4a] sm:$0xff] }
 0x40c   : > { %v5901_v56 = vadd.f32 %v5889_v60, %v5870_v15  ;;  %v5950_v34 = vmul.f32 %v10441_v54, %v9659_v43  ;;  %v5314_v27 = vmul.f32 %v9375_v45, %v9909_v28  ;;  %v5979_v5 = vmul.f32 %v10442_v48, %v9826_v40  ;;  %v5604_v26 = vld [vmem:[#allocation3 + $0x3f] sm:$0xff] }
 0x40d   : > { %v5630_v36 = vadd.f32 %v9785_v12, %v5590_v9  ;;  %v5721_v53 = vadd.f32 %v5709_v25, %v5690_v57  ;;  %v5354_v13 = vmul.f32 %v9378_v8, %v9917_v16  ;;  %v5961_v46 = vadd.f32 %v9836_v33, %v5931_v21  ;;  %v9937_v12 = vld [vmem:[#allocation3 + $0x4c] sm:$0xff]  ;;  %v10458_v33 = vld [vmem:[#allocation12_spill] sm:$0xff] }
 0x40e   : > { %v5932_v29 = vadd.f32 %v5920_v0, %v5901_v56  ;;  %v6010_v47 = vmul.f32 %v10445_v44, %v9828_v55  ;;  %v6041_v43 = vmul.f32 %v10447_v6, %v9844_v7  ;;  %v6072_v1 = vmul.f32 %v10449_v19, %v9864_v62  ;;  %v9945_v9 = vld [vmem:[#allocation3 + $0x4b] sm:$0xff]  ;;  %v10459_v57 = vld [vmem:[#allocation24_spill] sm:$0xff] }
 0x40f   : > { %v5660_v18 = vadd.f32 %v9789_v51, %v5630_v36  ;;  %v5752_v25 = vadd.f32 %v5740_v14, %v5721_v53  ;;  %v5366_v4 = vadd.f32 %v5354_v13, %v5314_v27  ;;  %v5990_v15 = vadd.f32 %v10458_v33, %v5961_v46  ;;  %v10460_v51 = vld [vmem:[#allocation13_spill] sm:$0xff]  ;;  %v10461_v62 = vld [vmem:[#allocation7_spill] sm:$0xff]  ;;  %v10462_v27 = vld [vmem:[#allocation16_spill] sm:$0xff] }
 0x410   : > { %v5962_v60 = vadd.f32 %v5950_v34, %v5932_v29  ;;  %v6102_v55 = vmul.f32 %v10450_v61, %v9846_v3  ;;  %v5580_v7 = vmul.f32 %v9418_v20, %v5564_v23  ;;  %v5394_v14 = vmul.f32 %v10460_v51, %v9935_v49  ;;  %v9954_v34 = vld [vmem:[#allocation3 + $0x4d] sm:$0xff]  ;;  %v10463_v13 = vld [vmem:[#allocation25_spill] sm:$0xff]  ;;  %v10464_v29 = vld [vmem:[#allocation8_spill] sm:$0xff] }
 0x411   : > { %v5689_v0 = vadd.f32 %v10459_v57, %v5660_v18  ;;  %v5783_v21 = vadd.f32 %v5771_v22, %v5752_v25  ;;  %v5502_v56 = vmul.f32 %v10461_v62, %v9937_v12  ;;  %v6021_v36 = vadd.f32 %v10462_v27, %v5990_v15  ;;  %v10465_v25 = vld [vmem:[#allocation14_spill] sm:$0xff]  ;;  %v10466_v15 = vld [vmem:[#allocation9_spill] sm:$0xff] }
 0x412   : > { %v5991_v53 = vadd.f32 %v5979_v5, %v5962_v60  ;;  %v5592_v3 = vadd.f32 %v5580_v7, %v10463_v13  ;;  %v5620_v46 = vmul.f32 %v9421_v31, %v5604_v26  ;;  %v5406_v41 = vadd.f32 %v5394_v14, %v5366_v4 }
 0x413   : > { %v5720_v33 = vadd.f32 %v10464_v29, %v5689_v0  ;;  %v5434_v22 = vmul.f32 %v10454_v58, %v9945_v9  ;;  %v5514_v18 = vadd.f32 %v5502_v56, %v5485_v59  ;;  %v6052_v57 = vadd.f32 %v10465_v25, %v6021_v36  ;;  %v10467_v56 = vld [vmem:[#allocation10_spill] sm:$0xff] }
 0x414   : > { %v6022_v61 = vadd.f32 %v6010_v47, %v5991_v53  ;;  %v5632_v20 = vadd.f32 %v5620_v46, %v5592_v3  ;;  %v5650_v5 = vmul.f32 %v9431_v11, %v9826_v40  ;;  %v5813_v27 = vadd.f32 %v5801_v35, %v5783_v21  ;;  %v10468_v21 = vld [vmem:[#allocation17_spill] sm:$0xff] }
 0x415   : > { %v5751_v60 = vadd.f32 %v10466_v15, %v5720_v33  ;;  %v5474_v7 = vmul.f32 %v9396_v32, %v9937_v12  ;;  %v5542_v4 = vmul.f32 %v9415_v37, %v9954_v34  ;;  %v6083_v0 = vadd.f32 %v9872_v10, %v6052_v57  ;;  %v10469_v33 = vld [vmem:[#allocation28_spill] sm:$0xff]  ;;  %v9988_v15 = vld [vmem:[#allocation3 + $0x50] sm:$0xff] }
 0x416   : > { %v6053_v14 = vadd.f32 %v6041_v43, %v6022_v61  ;;  %v5662_v59 = vadd.f32 %v5650_v5, %v5632_v20  ;;  %v5679_v47 = vmul.f32 %v9437_v2, %v9909_v28  ;;  %v5446_v53 = vadd.f32 %v5434_v22, %v5406_v41  ;;  %v10470_v61 = vld [vmem:[#allocation11_spill] sm:$0xff] }
 0x417   : > { %v5782_v36 = vadd.f32 %v10467_v56, %v5751_v60  ;;  %v9973_v13 = vadd.f32 %v5542_v4, %v5514_v18  ;;  %v5710_v35 = vmul.f32 %v10429_v52, %v9917_v16  ;;  %v6113_v3 = vadd.f32 %v10468_v21, %v6083_v0  ;;  %v10471_v5 = vld [vmem:[#allocation15_spill] sm:$0xff] }
 0x418   : > { %v6084_v46 = vadd.f32 %v6072_v1, %v6053_v14  ;;  %v5691_v29 = vadd.f32 %v5679_v47, %v5662_v59  ;;  %v5859_v10 = vmul.f32 %v10438_v24, %v10469_v33  ;;  %v5741_v43 = vmul.f32 %v10431_v50, %v9935_v49  ;;  %v9990_v60 = vld [vmem:[#allocation3 + $0x51] sm:$0xff] }
 0x419   : > { %v5812_v20 = vadd.f32 %v10470_v61, %v5782_v36  ;;  %v5830_v41 = vmul.f32 %v10437_v42, %v9937_v12  ;;  %v5890_v22 = vmul.f32 %v10439_v63, %v5564_v23  ;;  %v6127_v18 = vsel %vm940_vm0, %v6113_v3, 0.0  ;;  %v10000_v36 = vld [vmem:[#allocation3 + $0x52] sm:$0xff] }
 0x41a   : > { %v6114_v25 = vadd.f32 %v6102_v55, %v6084_v46  ;;  %v5722_v57 = vadd.f32 %v5710_v35, %v5691_v29  ;;  %v5871_v1 = vadd.f32 %v5859_v10, %v10471_v5  ;;  %6128 = vadd.xlane.f32.xlu1 %v6127_v18  ;;  %v5486_v4 = vadd.f32 %v5474_v7, %v5446_v53  ;;  %v10002_v35 = vld [vmem:[#allocation3 + $0x53] sm:$0xff]  ;;  %v5565_v46 = vld [vmem:[#allocation3 + $0x46] sm:$0xff] }
 0x41b   : > { %v5772_v0 = vmul.f32 %v10433_v39, %v9945_v9  ;;  %v5802_v14 = vmul.f32 %v10435_v38, %v9937_v12  ;;  %v9996_v59 = vadd.f32 %v5830_v41, %v5813_v27  ;;  %v5921_v56 = vmul.f32 %v10440_v17, %v5604_v26  ;;  %v10004_v21 = vld [vmem:[#allocation3 + $0x54] sm:$0xff]  ;;  %v5605_v41 = vld [vmem:[#allocation3 + $0x47] sm:$0xff] }
 0x41c   : > { %v6130_v23 = vsel %vm940_vm0, %v6114_v25, 0.0  ;;  %v5753_v55 = vadd.f32 %v5741_v43, %v5722_v57  ;;  %v5902_v47 = vadd.f32 %v5890_v22, %v5871_v1  ;;  %v5841_v7 = vadd.f32 %v9913_v30, %v5812_v20  ;;  %v10023_v43 = vld [vmem:[#allocation3 + $0x55] sm:$0xff]  ;;  %v10473_v25 = vld [vmem:[#allocation6_spill] sm:$0xff] }
 0x41d   : > { %6131 = vadd.xlane.f32.xlu0 %v6130_v23  ;;  %v5951_v53 = vmul.f32 %v10441_v54, %v9826_v40  ;;  %v5315_v27 = vmul.f32 %v9375_v45, %v9988_v15  ;;  %v5355_v3 = vmul.f32 %v9378_v8, %v9990_v60  ;;  %v5980_v33 = vmul.f32 %v10442_v48, %v9909_v28  ;;  %v10474_v5 = vld [vmem:[#allocation26_spill] sm:$0xff] }
 0x41e   : > { %v5784_v26 = vadd.f32 %v5772_v0, %v5753_v55  ;;  %v5933_v29 = vadd.f32 %v5921_v56, %v5902_v47  ;;  %v6011_v10 = vmul.f32 %v10445_v44, %v9917_v16  ;;  %v5395_v30 = vmul.f32 %v10460_v51, %v10000_v36  ;;  %10472 = vst [vmem:[#allocation20_spill] sm:$0xff] %v10023_v43 }
 0x41f   : > { %v5367_v61 = vadd.f32 %v5355_v3, %v5315_v27  ;;  %v5435_v40 = vmul.f32 %v10454_v58, %v10002_v35  ;;  %v5503_v20 = vmul.f32 %v10461_v62, %v10004_v21  ;;  %v6042_v18 = vmul.f32 %v10447_v6, %v9935_v49 }
 0x420   : > { %v5963_v22 = vadd.f32 %v5951_v53, %v5933_v29  ;;  %v6073_v16 = vmul.f32 %v10449_v19, %v9945_v9  ;;  %v5581_v57 = vmul.f32 %v10473_v25, %v5565_v46  ;;  %v6103_v1 = vmul.f32 %v10474_v5, %v9937_v12  ;;  %v10475_v53 = vld [vmem:[#allocation19_spill] sm:$0xff] }
 0x421   : > { %v5407_v0 = vadd.f32 %v5395_v30, %v5367_v61  ;;  %v5475_v23 = vmul.f32 %v9396_v32, %v10004_v21  ;;  %v5515_v55 = vadd.f32 %v5503_v20, %v5486_v4  ;;  %v5543_v56 = vmul.f32 %v9415_v37, %v10023_v43 }
 0x422   : > { %v5992_v47 = vadd.f32 %v5980_v33, %v5963_v22  ;;  %v5593_v27 = vadd.f32 %v5581_v57, %v10475_v53  ;;  %v5621_v49 = vmul.f32 %v9421_v31, %v5605_v41  ;;  %v5814_v3 = vadd.f32 %v5802_v14, %v5784_v26  ;;  %v10476_v33 = vld [vmem:[#allocation18_spill] sm:$0xff]  ;;  %v10055_v53 = vld [vmem:[#allocation3 + $0x58] sm:$0xff] }
 0x423   : > { %v5447_v9 = vadd.f32 %v5435_v40, %v5407_v0  ;;  %v5651_v29 = vmul.f32 %v9431_v11, %v9909_v28  ;;  %v5680_v12 = vmul.f32 %v9437_v2, %v9988_v15  ;;  %v5711_v4 = vmul.f32 %v10429_v52, %v9990_v60 }
 0x424   : > { %v6023_v61 = vadd.f32 %v6011_v10, %v5992_v47  ;;  %v5633_v30 = vadd.f32 %v5621_v49, %v5593_v27  ;;  %v5860_v20 = vmul.f32 %v10438_v24, %v10476_v33  ;;  %v10046_v22 = vadd.f32 %v5543_v56, %v5515_v55  ;;  %v10057_v27 = vld [vmem:[#allocation3 + $0x59] sm:$0xff] }
 0x425   : > { %v5742_v14 = vmul.f32 %v10431_v50, %v10000_v36  ;;  %v5773_v26 = vmul.f32 %v10433_v39, %v10002_v35  ;;  %v5831_v40 = vmul.f32 %v10437_v42, %v10004_v21  ;;  %v5891_v47 = vmul.f32 %v10439_v63, %v5565_v46  ;;  %v10068_v46 = vld [vmem:[#allocation3 + $0x5c] sm:$0xff] }
 0x426   : > { %10477 = vst [vmem:[#allocation21_spill] sm:$0xff] %v10046_v22  ;;  %v6054_v57 = vadd.f32 %v6042_v18, %v6023_v61  ;;  %v5663_v10 = vadd.f32 %v5651_v29, %v5633_v30  ;;  %v5872_v0 = vadd.f32 %v5860_v20, %v5841_v7  ;;  %v5487_v55 = vadd.f32 %v5475_v23, %v5447_v9  ;;  %v10066_v29 = vld [vmem:[#allocation3 + $0x5a] sm:$0xff]  ;;  %v5566_v61 = vld [vmem:[#allocation3 + $0x4e] sm:$0xff] }
 0x427   : > { %v5803_v56 = vmul.f32 %v10435_v38, %v10004_v21  ;;  %v5922_v49 = vmul.f32 %v10440_v17, %v5605_v41  ;;  %v5952_v33 = vmul.f32 %v10441_v54, %v9909_v28  ;;  %v10064_v18 = vadd.f32 %v5831_v40, %v5814_v3  ;;  %v5606_v40 = vld [vmem:[#allocation3 + $0x4f] sm:$0xff] }
 0x428   : > { %v6085_v43 = vadd.f32 %v6073_v16, %v6054_v57  ;;  %v5692_v22 = vadd.f32 %v5680_v12, %v5663_v10  ;;  %v5903_v7 = vadd.f32 %v5891_v47, %v5872_v0  ;;  %v5981_v23 = vmul.f32 %v10442_v48, %v9988_v15  ;;  %v10078_v16 = vld [vmem:[#allocation3 + $0x5b] sm:$0xff] }
 0x429   : > { %v6012_v9 = vmul.f32 %v10445_v44, %v9990_v60  ;;  %v5316_v41 = vmul.f32 %v9375_v45, %v10055_v53  ;;  %v5356_v28 = vmul.f32 %v9378_v8, %v10057_v27  ;;  %v6043_v20 = vmul.f32 %v10447_v6, %v10000_v36 }
 0x42a   : > { %v6115_v3 = vadd.f32 %v6103_v1, %v6085_v43  ;;  %v5723_v12 = vadd.f32 %v5711_v4, %v5692_v22  ;;  %v5934_v30 = vadd.f32 %v5922_v49, %v5903_v7  ;;  %v5396_v10 = vmul.f32 %v10460_v51, %v10066_v29  ;;  %v10090_v1 = vld [vmem:[#allocation3 + $0x5d] sm:$0xff] }
 0x42b   : > { %v5368_v57 = vadd.f32 %v5356_v28, %v5316_v41  ;;  %v5504_v60 = vmul.f32 %v10461_v62, %v10068_v46  ;;  %v5582_v45 = vmul.f32 %v10473_v25, %v5566_v61  ;;  %v5436_v43 = vmul.f32 %v10454_v58, %v10078_v16 }
 0x42c   : > { %v6133_v8 = vsel %vm940_vm0, %v6115_v3, 0.0  ;;  %v5754_v0 = vadd.f32 %v5742_v14, %v5723_v12  ;;  %v5964_v47 = vadd.f32 %v5952_v33, %v5934_v30  ;;  %v5622_v51 = vmul.f32 %v9421_v31, %v5606_v40 }
 0x42d   : > { %6134 = vadd.xlane.f32.xlu0 %v6133_v8  ;;  %v5408_v36 = vadd.f32 %v5396_v10, %v5368_v57  ;;  %v5516_v4 = vadd.f32 %v5504_v60, %v5487_v55  ;;  %v5594_v22 = vadd.f32 %v5582_v45, %v9973_v13  ;;  %v6074_v41 = vmul.f32 %v10449_v19, %v10002_v35  ;;  %v10116_v60 = vld [vmem:[#allocation3 + $0x64] sm:$0xff] }
 0x42e   : > { %v5785_v49 = vadd.f32 %v5773_v26, %v5754_v0  ;;  %v5993_v7 = vadd.f32 %v5981_v23, %v5964_v47  ;;  %v6104_v14 = vmul.f32 %v10474_v5, %v10004_v21  ;;  %v5544_v58 = vmul.f32 %v9415_v37, %v10090_v1  ;;  %v5567_v47 = vld [vmem:[#allocation3 + $0x56] sm:$0xff] }
 0x42f   : > { %v5448_v33 = vadd.f32 %v5436_v43, %v5408_v36  ;;  %v5634_v28 = vadd.f32 %v5622_v51, %v5594_v22  ;;  %v5652_v55 = vmul.f32 %v9431_v11, %v9988_v15  ;;  %v5476_v13 = vmul.f32 %v9396_v32, %v10068_v46 }
 0x430   : > { %v6024_v3 = vadd.f32 %v6012_v9, %v5993_v7  ;;  %v5681_v26 = vmul.f32 %v9437_v2, %v10055_v53  ;;  %v5712_v35 = vmul.f32 %v10429_v52, %v10057_v27  ;;  %v5815_v23 = vadd.f32 %v5803_v56, %v5785_v49  ;;  %v5607_v7 = vld [vmem:[#allocation3 + $0x57] sm:$0xff] }
 0x431   : > { %v10108_v21 = vadd.f32 %v5544_v58, %v5516_v4  ;;  %v5664_v12 = vadd.f32 %v5652_v55, %v5634_v28  ;;  %v5861_v30 = vmul.f32 %v10438_v24, %v9954_v34  ;;  %v5488_v10 = vadd.f32 %v5476_v13, %v5448_v33  ;;  %v10478_v13 = vld [vmem:[#allocation21_spill] sm:$0xff] }
 0x432   : > { %v6055_v57 = vadd.f32 %v6043_v20, %v6024_v3  ;;  %v5743_v9 = vmul.f32 %v10431_v50, %v10066_v29  ;;  %v5774_v32 = vmul.f32 %v10433_v39, %v10078_v16  ;;  %v5832_v56 = vmul.f32 %v10437_v42, %v10068_v46  ;;  %v10138_v3 = vld [vmem:[#allocation3 + $0x66] sm:$0xff] }
 0x433   : > { %v5693_v45 = vadd.f32 %v5681_v26, %v5664_v12  ;;  %v5873_v8 = vadd.f32 %v5861_v30, %v9996_v59  ;;  %v5892_v0 = vmul.f32 %v10439_v63, %v5566_v61  ;;  %v5804_v20 = vmul.f32 %v10435_v38, %v10068_v46  ;;  %v5529_v59 = vld [vmem:[#allocation3 + $0x65] sm:$0xff] }
 0x434   : > { %v6086_v34 = vadd.f32 %v6074_v41, %v6055_v57  ;;  %v5923_v43 = vmul.f32 %v10440_v17, %v5606_v40  ;;  %v5953_v36 = vmul.f32 %v10441_v54, %v9988_v15  ;;  %v10127_v22 = vadd.f32 %v5832_v56, %v5815_v23  ;;  %v10144_v23 = vld [vmem:[#allocation3 + $0x60] sm:$0xff] }
 0x435   : > { %v5724_v4 = vadd.f32 %v5712_v35, %v5693_v45  ;;  %v5904_v51 = vadd.f32 %v5892_v0, %v5873_v8  ;;  %v5505_v49 = vmul.f32 %v10461_v62, %v10116_v60  ;;  %v5982_v41 = vmul.f32 %v10442_v48, %v10055_v53  ;;  %v5697_v57 = vld [vmem:[#allocation3 + $0x61] sm:$0xff] }
 0x436   : > { %v6116_v61 = vadd.f32 %v6104_v14, %v6086_v34  ;;  %v6013_v33 = vmul.f32 %v10445_v44, %v10057_v27  ;;  %v5583_v40 = vmul.f32 %v10473_v25, %v5567_v47  ;;  %v6044_v28 = vmul.f32 %v10447_v6, %v10066_v29  ;;  %v5759_v8 = vld [vmem:[#allocation3 + $0x63] sm:$0xff] }
 0x437   : > { %v5755_v58 = vadd.f32 %v5743_v9, %v5724_v4  ;;  %v5935_v15 = vadd.f32 %v5923_v43, %v5904_v51  ;;  %v5517_v55 = vadd.f32 %v5505_v49, %v5488_v10  ;;  %v5545_v14 = vmul.f32 %v9415_v37, %v5529_v59  ;;  %v5728_v10 = vld [vmem:[#allocation3 + $0x62] sm:$0xff]  ;;  %v10479_v4 = vld [vmem:[#allocation20_spill] sm:$0xff] }
 0x438   : > { %v6136_v62 = vsel %vm940_vm0, %v6116_v61, 0.0  ;;  %v5595_v26 = vadd.f32 %v5583_v40, %v10478_v13  ;;  %v5623_v35 = vmul.f32 %v9421_v31, %v5607_v7  ;;  %v6075_v30 = vmul.f32 %v10449_v19, %v10078_v16  ;;  %v5568_v40 = vld [vmem:[#allocation3 + $0x5e] sm:$0xff] }
 0x439   : > { %6137 = vadd.xlane.f32.xlu1 %v6136_v62  ;;  %v5786_v27 = vadd.f32 %v5774_v32, %v5755_v58  ;;  %v5965_v12 = vadd.f32 %v5953_v36, %v5935_v15  ;;  %v6105_v29 = vmul.f32 %v10474_v5, %v10068_v46  ;;  %v5557_v9 = vadd.f32 %v5545_v14, %v5517_v55 }
 0x43a   : > { %v5585_v37 = vmul.f32 %v10473_v25, %v10138_v3  ;;  %v5635_v45 = vadd.f32 %v5623_v35, %v5595_v26  ;;  %v5653_v56 = vmul.f32 %v9431_v11, %v10055_v53  ;;  %v5682_v34 = vmul.f32 %v9437_v2, %v10144_v23  ;;  %v5608_v35 = vld [vmem:[#allocation3 + $0x5f] sm:$0xff] }
 0x43b   : > { %v5816_v0 = vadd.f32 %v5804_v20, %v5786_v27  ;;  %v5994_v32 = vadd.f32 %v5982_v41, %v5965_v12  ;;  %v5833_v16 = vmul.f32 %v10437_v42, %v10116_v60  ;;  %v5713_v43 = vmul.f32 %v10429_v52, %v5697_v57 }
 0x43c   : > { %v5665_v46 = vadd.f32 %v5653_v56, %v5635_v45  ;;  %v5744_v36 = vmul.f32 %v10431_v50, %v5728_v10  ;;  %v5862_v51 = vmul.f32 %v10438_v24, %v10479_v4  ;;  %v5775_v61 = vmul.f32 %v10433_v39, %v5759_v8  ;;  %v5760_v4 = vld [vmem:[#allocation3 + $0x6b] sm:$0xff] }
 0x43d   : > { %v6025_v49 = vadd.f32 %v6013_v33, %v5994_v32  ;;  %v5805_v20 = vmul.f32 %v10435_v38, %v10116_v60  ;;  %v5845_v41 = vadd.f32 %v5833_v16, %v5816_v0  ;;  %v10165_v58 = vadd.f32 %v5585_v37, %v5557_v9  ;;  %v5698_v32 = vld [vmem:[#allocation3 + $0x69] sm:$0xff] }
 0x43e   : > { %v5694_v15 = vadd.f32 %v5682_v34, %v5665_v46  ;;  %v5874_v55 = vadd.f32 %v5862_v51, %v10064_v18  ;;  %v5893_v62 = vmul.f32 %v10439_v63, %v5567_v47  ;;  %v5864_v13 = vmul.f32 %v10438_v24, %v5529_v59  ;;  %v5729_v34 = vld [vmem:[#allocation3 + $0x6a] sm:$0xff] }
 0x43f   : > { %v6056_v14 = vadd.f32 %v6044_v28, %v6025_v49  ;;  %v5924_v26 = vmul.f32 %v10440_v17, %v5607_v7  ;;  %v5954_v33 = vmul.f32 %v10441_v54, %v10055_v53  ;;  %v5983_v9 = vmul.f32 %v10442_v48, %v10144_v23  ;;  %v10180_v28 = vld [vmem:[#allocation3 + $0x68] sm:$0xff] }
 0x440   : > { %v5725_v27 = vadd.f32 %v5713_v43, %v5694_v15  ;;  %v5905_v12 = vadd.f32 %v5893_v62, %v5874_v55  ;;  %v5584_v37 = vmul.f32 %v10473_v25, %v5568_v40  ;;  %v10176_v18 = vadd.f32 %v5864_v13, %v5845_v41  ;;  %v5849_v49 = vld [vmem:[#allocation3 + $0x6d] sm:$0xff] }
 0x441   : > { %v6087_v45 = vadd.f32 %v6075_v30, %v6056_v14  ;;  %v6014_v47 = vmul.f32 %v10445_v44, %v5697_v57  ;;  %v6045_v59 = vmul.f32 %v10447_v6, %v5728_v10  ;;  %v5624_v0 = vmul.f32 %v9421_v31, %v5608_v35  ;;  %v5790_v10 = vld [vmem:[#allocation3 + $0x6c] sm:$0xff] }
 0x442   : > { %v5756_v7 = vadd.f32 %v5744_v36, %v5725_v27  ;;  %v5936_v56 = vadd.f32 %v5924_v26, %v5905_v12  ;;  %v5596_v53 = vadd.f32 %v5584_v37, %v10108_v21  ;;  %v6076_v25 = vmul.f32 %v10449_v19, %v5759_v8  ;;  %v5880_v62 = vld [vmem:[#allocation3 + $0x6e] sm:$0xff] }
 0x443   : > { %v6117_v16 = vadd.f32 %v6105_v29, %v6087_v45  ;;  %v6106_v30 = vmul.f32 %v10474_v5, %v10116_v60  ;;  %v5654_v57 = vmul.f32 %v9431_v11, %v10144_v23  ;;  %v5683_v21 = vmul.f32 %v9437_v2, %v10180_v28  ;;  %v5609_v27 = vld [vmem:[#allocation3 + $0x67] sm:$0xff] }
 0x444   : > { %v5787_v46 = vadd.f32 %v5775_v61, %v5756_v7  ;;  %v5966_v43 = vadd.f32 %v5954_v33, %v5936_v56  ;;  %v5636_v36 = vadd.f32 %v5624_v0, %v5596_v53  ;;  %v5714_v29 = vmul.f32 %v10429_v52, %v5698_v32 }
 0x445   : > { %v6139_v51 = vsel %vm940_vm0, %v6117_v16, 0.0  ;;  %v5745_v8 = vmul.f32 %v10431_v50, %v5729_v34  ;;  %v5863_v60 = vmul.f32 %v10438_v24, %v10090_v1  ;;  %v5834_v55 = vmul.f32 %v10437_v42, %v5790_v10 }
 0x446   : > { %6140 = vadd.xlane.f32.xlu0 %v6139_v51  ;;  %v5817_v41 = vadd.f32 %v5805_v20, %v5787_v46  ;;  %v5995_v15 = vadd.f32 %v5983_v9, %v5966_v43  ;;  %v5666_v61 = vadd.f32 %v5654_v57, %v5636_v36  ;;  %v5776_v14 = vmul.f32 %v10433_v39, %v5760_v4  ;;  %v5699_v36 = vld [vmem:[#allocation3 + $0x71] sm:$0xff] }
 0x447   : > { %v5806_v13 = vmul.f32 %v10435_v38, %v5790_v10  ;;  %v5875_v26 = vadd.f32 %v5863_v60, %v10127_v22  ;;  %v5894_v33 = vmul.f32 %v10439_v63, %v5568_v40  ;;  %v5865_v1 = vmul.f32 %v10438_v24, %v5849_v49 }
 0x448   : > { %v6026_v12 = vadd.f32 %v6014_v47, %v5995_v15  ;;  %v5695_v37 = vadd.f32 %v5683_v21, %v5666_v61  ;;  %v5846_v45 = vadd.f32 %v5834_v55, %v5817_v41  ;;  %v5896_v20 = vmul.f32 %v10439_v63, %v5880_v62  ;;  %v5668_v47 = vld [vmem:[#allocation3 + $0x70] sm:$0xff] }
 0x449   : > { %v5906_v9 = vadd.f32 %v5894_v33, %v5875_v26  ;;  %v5925_v7 = vmul.f32 %v10440_v17, %v5608_v35  ;;  %v5955_v56 = vmul.f32 %v10441_v54, %v10144_v23  ;;  %v5984_v22 = vmul.f32 %v10442_v48, %v10180_v28  ;;  %v10217_v41 = vld [vmem:[#allocation3 + $0x74] sm:$0xff] }
 0x44a   : > { %v6057_v53 = vadd.f32 %v6045_v59, %v6026_v12  ;;  %v5726_v0 = vadd.f32 %v5714_v29, %v5695_v37  ;;  %v5625_v40 = vmul.f32 %v9421_v31, %v5609_v27  ;;  %v5877_v16 = vadd.f32 %v5865_v1, %v5846_v45  ;;  %v5730_v59 = vld [vmem:[#allocation3 + $0x72] sm:$0xff] }
 0x44b   : > { %v5937_v57 = vadd.f32 %v5925_v7, %v5906_v9  ;;  %v6015_v46 = vmul.f32 %v10445_v44, %v5698_v32  ;;  %v6046_v43 = vmul.f32 %v10447_v6, %v5729_v34  ;;  %v5655_v23 = vmul.f32 %v9431_v11, %v10180_v28  ;;  %v5850_v55 = vld [vmem:[#allocation3 + $0x75] sm:$0xff] }
 0x44c   : > { %v6088_v21 = vadd.f32 %v6076_v25, %v6057_v53  ;;  %v5757_v35 = vadd.f32 %v5745_v8, %v5726_v0  ;;  %v5637_v51 = vadd.f32 %v5625_v40, %v10165_v58  ;;  %v6077_v49 = vmul.f32 %v10449_v19, %v5760_v4  ;;  %v5761_v8 = vld [vmem:[#allocation3 + $0x73] sm:$0xff] }
 0x44d   : > { %v5967_v29 = vadd.f32 %v5955_v56, %v5937_v57  ;;  %v6107_v31 = vmul.f32 %v10474_v5, %v5790_v10  ;;  %v5684_v60 = vmul.f32 %v9437_v2, %v5668_v47  ;;  %v5715_v25 = vmul.f32 %v10429_v52, %v5699_v36  ;;  %v5881_v62 = vld [vmem:[#allocation3 + $0x76] sm:$0xff] }
 0x44e   : > { %v6118_v32 = vadd.f32 %v6106_v30, %v6088_v21  ;;  %v5788_v34 = vadd.f32 %v5776_v14, %v5757_v35  ;;  %v5667_v15 = vadd.f32 %v5655_v23, %v5637_v51  ;;  %v5908_v58 = vadd.f32 %v5896_v20, %v5877_v16  ;;  %v5911_v45 = vld [vmem:[#allocation3 + $0x6f] sm:$0xff]  ;;  %v5942_v53 = vld [vmem:[#allocation3 + $0x78] sm:$0xff] }
 0x44f   : > { %v5996_v61 = vadd.f32 %v5984_v22, %v5967_v29  ;;  %v5746_v11 = vmul.f32 %v10431_v50, %v5730_v59  ;;  %v5895_v4 = vmul.f32 %v10439_v63, %v10138_v3  ;;  %v5835_v30 = vmul.f32 %v10437_v42, %v10217_v41  ;;  %v5851_v16 = vld [vmem:[#allocation3 + $0x7d] sm:$0xff] }
 0x450   : > { %v6142_v5 = vsel %vm940_vm0, %v6118_v32, 0.0  ;;  %v5818_v2 = vadd.f32 %v5806_v13, %v5788_v34  ;;  %v5696_v10 = vadd.f32 %v5684_v60, %v5667_v15  ;;  %v5777_v52 = vmul.f32 %v10433_v39, %v5761_v8  ;;  %v5820_v39 = vld [vmem:[#allocation3 + $0x7c] sm:$0xff] }
 0x451   : > { %6143 = vadd.xlane.f32.xlu1 %v6142_v5  ;;  %v6027_v14 = vadd.f32 %v6015_v46, %v5996_v61  ;;  %v5907_v26 = vadd.f32 %v5895_v4, %v10176_v18  ;;  %v5926_v50 = vmul.f32 %v10440_v17, %v5609_v27  ;;  %v5866_v37 = vmul.f32 %v10438_v24, %v5850_v55  ;;  %v5912_v35 = vld [vmem:[#allocation3 + $0x77] sm:$0xff]  ;;  %v5913_v55 = vld [vmem:[#allocation3 + $0x7f] sm:$0xff] }
 0x452   : > { %v5727_v33 = vadd.f32 %v5715_v25, %v5696_v10  ;;  %v5847_v12 = vadd.f32 %v5835_v30, %v5818_v2  ;;  %v5897_v3 = vmul.f32 %v10439_v63, %v5881_v62  ;;  %v5807_v1 = vmul.f32 %v10435_v38, %v10217_v41  ;;  %v6001_v38 = vld [vmem:[#allocation3 + $0x79] sm:$0xff] }
 0x453   : > { %v6058_v13 = vadd.f32 %v6046_v43, %v6027_v14  ;;  %v5938_v20 = vadd.f32 %v5926_v50, %v5907_v26  ;;  %v5956_v9 = vmul.f32 %v10441_v54, %v10180_v28  ;;  %v5985_v27 = vmul.f32 %v10442_v48, %v5668_v47  ;;  %v5882_v29 = vld [vmem:[#allocation3 + $0x7e] sm:$0xff]  ;;  %v7943_v14 = vld [vmem:[%s10309_s6 + $0x18] ss:$0 sm:$0xff] }
 0x454   : > { %v5758_v7 = vadd.f32 %v5746_v11, %v5727_v33  ;;  %v5878_v18 = vadd.f32 %v5866_v37, %v5847_v12  ;;  %v6016_v56 = vmul.f32 %v10445_v44, %v5699_v36  ;;  %v6047_v40 = vmul.f32 %v10447_v6, %v5730_v59  ;;  %v6032_v60 = vld [vmem:[#allocation3 + $0x7a] sm:$0xff] }
 0x455   : > { %v6089_v0 = vadd.f32 %v6077_v49, %v6058_v13  ;;  %v5968_v22 = vadd.f32 %v5956_v9, %v5938_v20  ;;  %v5927_v57 = vmul.f32 %v10440_v17, %v5911_v45  ;;  %v5836_v28 = vmul.f32 %v10437_v42, %v5820_v39  ;;  %v5943_v25 = vld [vmem:[#allocation3 + $0x80] sm:$0xff]  ;;  %v5972_v13 = vld [vmem:[#allocation3 + $0x88] sm:$0xff] }
 0x456   : > { %v5789_v46 = vadd.f32 %v5777_v52, %v5758_v7  ;;  %v5909_v43 = vadd.f32 %v5897_v3, %v5878_v18  ;;  %v5957_v21 = vmul.f32 %v10441_v54, %v5668_v47  ;;  %v5986_v49 = vmul.f32 %v10442_v48, %v5942_v53  ;;  %v6063_v11 = vld [vmem:[#allocation3 + $0x7b] sm:$0xff]  ;;  %v6064_v9 = vld [vmem:[#allocation3 + $0x83] sm:$0xff] }
 0x457   : > { %v6119_v51 = vadd.f32 %v6107_v31, %v6089_v0  ;;  %v5997_v23 = vadd.f32 %v5985_v27, %v5968_v22  ;;  %v5939_v36 = vadd.f32 %v5927_v57, %v5908_v58  ;;  %v6078_v59 = vmul.f32 %v10449_v19, %v5761_v8  ;;  %v6094_v0 = vld [vmem:[#allocation3 + $0x84] sm:$0xff] }
 0x458   : > { %v5819_v32 = vadd.f32 %v5807_v1, %v5789_v46  ;;  %v5867_v34 = vmul.f32 %v10438_v24, %v5851_v16  ;;  %v6017_v15 = vmul.f32 %v10445_v44, %v6001_v38  ;;  %v5928_v31 = vmul.f32 %v10440_v17, %v5912_v35  ;;  %v6002_v24 = vld [vmem:[#allocation3 + $0x81] sm:$0xff]  ;;  %v6065_v35 = vld [vmem:[#allocation3 + $0x8b] sm:$0xff] }
 0x459   : > { %v6145_v42 = vsel %vm940_vm0, %v6119_v51, 0.0  ;;  %v6028_v61 = vadd.f32 %v6016_v56, %v5997_v23  ;;  %v5969_v47 = vadd.f32 %v5957_v21, %v5939_v36  ;;  %v5898_v62 = vmul.f32 %v10439_v63, %v5882_v29  ;;  %v6033_v63 = vld [vmem:[#allocation3 + $0x82] sm:$0xff]  ;;  %v6095_v36 = vld [vmem:[#allocation3 + $0x8c] sm:$0xff] }
 0x45a   : > { %6146 = vadd.xlane.f32.xlu0 %v6145_v42  ;;  %v5848_v58 = vadd.f32 %v5836_v28, %v5819_v32  ;;  %v6048_v8 = vmul.f32 %v10447_v6, %v6032_v60  ;;  %v5958_v4 = vmul.f32 %v10441_v54, %v5942_v53  ;;  %v5940_v10 = vadd.f32 %v5928_v31, %v5909_v43  ;;  %v6003_v53 = vld [vmem:[#allocation3 + $0x89] sm:$0xff] }
 0x45b   : > { %v6059_v5 = vadd.f32 %v6047_v40, %v6028_v61  ;;  %v5998_v2 = vadd.f32 %v5986_v49, %v5969_v47  ;;  %v5987_v30 = vmul.f32 %v10442_v48, %v5943_v25  ;;  %v6108_v52 = vmul.f32 %v7943_v14, %v10217_v41 }
 0x45c   : > { %v5879_v26 = vadd.f32 %v5867_v34, %v5848_v58  ;;  %v6079_v50 = vmul.f32 %v10449_v19, %v6063_v11  ;;  %v5929_v33 = vmul.f32 %v10440_v17, %v5913_v55  ;;  %v5970_v3 = vadd.f32 %v5958_v4, %v5940_v10 }
 0x45d   : > { %v6090_v12 = vadd.f32 %v6078_v59, %v6059_v5  ;;  %v6029_v37 = vadd.f32 %v6017_v15, %v5998_v2  ;;  %v6018_v45 = vmul.f32 %v10445_v44, %v6002_v24  ;;  %v6109_v20 = vmul.f32 %v7943_v14, %v5820_v39  ;;  %v6034_v39 = vld [vmem:[#allocation3 + $0x8a] sm:$0xff] }
 0x45e   : > { %v5910_v1 = vadd.f32 %v5898_v62, %v5879_v26  ;;  %v5959_v7 = vmul.f32 %v10441_v54, %v5943_v25  ;;  %v5999_v41 = vadd.f32 %v5987_v30, %v5970_v3  ;;  %v6049_v56 = vmul.f32 %v10447_v6, %v6033_v63 }
 0x45f   : > { %v6120_v18 = vadd.f32 %v6108_v52, %v6090_v12  ;;  %v6060_v27 = vadd.f32 %v6048_v8, %v6029_v37  ;;  %v5988_v17 = vmul.f32 %v10442_v48, %v5972_v13  ;;  %v6080_v38 = vmul.f32 %v10449_v19, %v6064_v9 }
 0x460   : > { %v5941_v22 = vadd.f32 %v5929_v33, %v5910_v1  ;;  %v6030_v57 = vadd.f32 %v6018_v45, %v5999_v41  ;;  %v6019_v54 = vmul.f32 %v10445_v44, %v6003_v53  ;;  %v6110_v21 = vmul.f32 %v7943_v14, %v6094_v0 }
 0x461   : > { %v6148_v40 = vsel %vm940_vm0, %v6120_v18, 0.0  ;;  %v6091_v16 = vadd.f32 %v6079_v50, %v6060_v27  ;;  %v6050_v23 = vmul.f32 %v10447_v6, %v6034_v39  ;;  %v6081_v60 = vmul.f32 %v10449_v19, %v6065_v35  ;;  %v6575_v6 = vld [vmem:[#allocation4] ss:$0 sm:$0xff] }
 0x462   : > { %6149 = vadd.xlane.f32.xlu1 %v6148_v40  ;;  %v5971_v46 = vadd.f32 %v5959_v7, %v5941_v22  ;;  %v6061_v28 = vadd.f32 %v6049_v56, %v6030_v57  ;;  %v6111_v34 = vmul.f32 %v7943_v14, %v6095_v36 }
 0x463   : > { %v6121_v43 = vadd.f32 %v6109_v20, %v6091_v16 }
 0x464   : > { %v6000_v51 = vadd.f32 %v5988_v17, %v5971_v46  ;;  %v6092_v29 = vadd.f32 %v6080_v38, %v6061_v28 }
 0x465   : > { %v6151_v48 = vsel %vm940_vm0, %v6121_v43, 0.0 }
 0x466   : > { %6152 = vadd.xlane.f32.xlu0 %v6151_v48  ;;  %v6031_v49 = vadd.f32 %v6019_v54, %v6000_v51  ;;  %v6122_v59 = vadd.f32 %v6110_v21, %v6092_v29 }
 0x468   : > { %v6062_v32 = vadd.f32 %v6050_v23, %v6031_v49  ;;  %v6154_v44 = vsel %vm940_vm0, %v6122_v59, 0.0 }
 0x469   : > { %6155 = vadd.xlane.f32.xlu1 %v6154_v44 }
 0x46a   : > { %v6093_v15 = vadd.f32 %v6081_v60, %v6062_v32 }
 0x46c   : > { %v6123_v25 = vadd.f32 %v6111_v34, %v6093_v15 }
 0x46e   : > { %v6157_v42 = vsel %vm940_vm0, %v6123_v25, 0.0  ;;  %vm6183_vm0 = vcmask 3072  }
 0x46f   : > { %6158 = vadd.xlane.f32.xlu0 %v6157_v42 }
 0x48e   : > { %v6126_v19 = vpop.xlane.xlu0 %6125 }
 0x48f   : > { %v6167_v61 = vadd.f32 %v6575_v6, %v6126_v19 }
 0x491   : > { %6180 = vst.msk [vmem:[%s10274_s12] sm:$0xff] %vm6179_vm10, %v6167_v61 }
 0x4a7   : > { %v6129_v47 = vpop.xlane.xlu1 %6128 }
 0x4a8   : > { %v6168_v11 = vadd.f32 %v6575_v6, %v6129_v47 }
 0x4aa   : > { %v6132_v31 = vpop.xlane.xlu0 %6131  ;;  %6182 = vst.msk [vmem:[%s10274_s12 + $0x4] sm:$0xf0] %vm6181_vm11, %v6168_v11 }
 0x4ab   : > { %v6169_v55 = vadd.f32 %v6575_v6, %v6132_v31 }
 0x4ad   : > { %6184 = vst.msk [vmem:[%s10274_s12 + $0xc] sm:$0xf] %vm6183_vm0, %v6169_v55 }
 0x4ba   : > { %v6135_v58 = vpop.xlane.xlu0 %6134 }
 0x4bb   : > { %v6170_v62 = vadd.f32 %v6575_v6, %v6135_v58 }
 0x4bd   : > { %6185 = vst.msk [vmem:[%s10274_s12 + $0x10] sm:$0xff] %vm6179_vm10, %v6170_v62 }
 0x4c6   : > { %v6138_v8 = vpop.xlane.xlu1 %6137 }
 0x4c7   : > { %v6171_v4 = vadd.f32 %v6575_v6, %v6138_v8 }
 0x4c9   : > { %6186 = vst.msk [vmem:[%s10274_s12 + $0x14] sm:$0xf0] %vm6181_vm11, %v6171_v4 }
 0x4d3   : > { %v6141_v24 = vpop.xlane.xlu0 %6140 }
 0x4d4   : > { %v6172_v5 = vadd.f32 %v6575_v6, %v6141_v24 }
 0x4d6   : > { %6187 = vst.msk [vmem:[%s10274_s12 + $0x1c] sm:$0xf] %vm6183_vm0, %v6172_v5 }
 0x4de   : > { %v6144_v2 = vpop.xlane.xlu1 %6143 }
 0x4df   : > { %v6173_v10 = vadd.f32 %v6575_v6, %v6144_v2 }
 0x4e1   : > { %6188 = vst.msk [vmem:[%s10274_s12 + $0x20] sm:$0xff] %vm6179_vm10, %v6173_v10 }
 0x4e7   : > { %v6147_v30 = vpop.xlane.xlu0 %6146 }
 0x4e8   : > { %v6174_v14 = vadd.f32 %v6575_v6, %v6147_v30 }
 0x4ea   : > { %6189 = vst.msk [vmem:[%s10274_s12 + $0x24] sm:$0xf0] %vm6181_vm11, %v6174_v14 }
 0x4ef   : > { %v6150_v52 = vpop.xlane.xlu1 %6149 }
 0x4f0   : > { %v6175_v26 = vadd.f32 %v6575_v6, %v6150_v52 }
 0x4f2   : > { %6190 = vst.msk [vmem:[%s10274_s12 + $0x2c] sm:$0xf] %vm6183_vm0, %v6175_v26 }
 0x4f3   : > { %v6153_v50 = vpop.xlane.xlu0 %6152 }
 0x4f4   : > { %v6176_v63 = vadd.f32 %v6575_v6, %v6153_v50 }
 0x4f6   : > { %6191 = vst.msk [vmem:[%s10274_s12 + $0x30] sm:$0xff] %vm6179_vm10, %v6176_v63  ;;  %v6156_v33 = vpop.xlane.xlu1 %6155 }
 0x4f7   : > { %v6177_v12 = vadd.f32 %v6575_v6, %v6156_v33 }
 0x4f9   : > { %6192 = vst.msk [vmem:[%s10274_s12 + $0x34] sm:$0xf0] %vm6181_vm11, %v6177_v12 }
 0x4fc   : > { %v6159_v37 = vpop.xlane.xlu0 %6158 }
 0x4fd   : > { %v6178_v3 = vadd.f32 %v6575_v6, %v6159_v37 }
 0x4ff   : > { %6193 = vst.msk [vmem:[%s10274_s12 + $0x3c] sm:$0xf] %vm6183_vm0, %v6178_v3 }
 0x500 PF: > { %s20_s29 = sadd.s32 1, %s7950_s29  }
 0x501   : > { %p17_p5 = scmp.ge.s32.totalorder %s20_s29, 4  }
 0x503   :  { %19 = sbr.rel (!%p17_p5) target bundleno = 3 (0x3), region = 85 }

</bundles_post_ra>
